<compile_context>
chip_gen: v7x
topology: tpu7x:2x2x1
jax: 0.10.0
libtpu: 0.0.40
codegen_flags: <defaults>
</compile_context>

<pallas_src>
import functools

import jax
import jax.numpy as jnp
from jax.experimental import pallas as pl
from jax.experimental.pallas import tpu as pltpu


_CONV_ORDER = ("rcu0_0_w1", "rcu0_0_w2", "rcu0_1_w1", "rcu0_1_w2",
               "out_w1", "out_w2")
_NCONV = len(_CONV_ORDER)


# ---------------------------------------------------------------------------
# Fused kernel: 3 ResidualConvUnits (6 convs) for one batch shard, all in VMEM.
# ---------------------------------------------------------------------------
def _refine_block_kernel(x_ref, m_ref, o_ref, pad_ref, *, H):
    # x_ref  : (1, T, WC) f32    halo-padded lane-dense activations; T = ns*(H+2)
    #                            (each image occupies an (H+2)-row slab whose
    #                             first/last rows are zero halos)
    # m_ref  : (6, 3*WC, WC) bf16 per-conv banded matrices, ky-stacked along K
    # o_ref  : (1, T, WC) f32    same layout as x (halo rows contain junk)
    # pad_ref: (T, WC) bf16 VMEM scratch holding relu(act), halos forced to 0
    T, WC = pad_ref.shape

    # Interior-row mask (computed once): within each (H+2)-row slab, rows
    # 1..H are real image rows; rows 0 and H+1 are zero halos.
    rows = jax.lax.broadcasted_iota(jnp.int32, (T, 1), 0)
    rel = rows % (H + 2)
    interior = jnp.logical_and(rel >= 1, rel <= H)
    zrow = jnp.zeros((1, WC), jnp.float32)

    def conv3x3(a, idx):
        # SAME 3x3 conv of relu(a). Horizontal taps + channel mixing are
        # pre-folded into the banded matrices; the 3 vertical taps come from
        # the three row-shifted reads of the halo buffer, fused into one
        # K = 3*WC matmul. The masked store both writes relu(a) into the
        # interior rows and (re)zeros the halo rows in a single pass.
        pad_ref[...] = jnp.where(interior, jnp.maximum(a, 0.0),
                                 0.0).astype(pad_ref.dtype)
        lhs = jnp.concatenate(
            [pad_ref[pl.ds(0, T - 2), :],
             pad_ref[pl.ds(1, T - 2), :],
             pad_ref[pl.ds(2, T - 2), :]], axis=1)          # (T-2, 3*WC) bf16
        yb = jnp.dot(lhs, m_ref[idx],
                     preferred_element_type=jnp.float32)     # (T-2, WC) f32
        # Re-align to the halo-slab layout (conv value for pad row r is yb[r-1]).
        return jnp.concatenate([zrow, yb, zrow], axis=0)     # (T, WC) f32

    def rcu(a, i):
        # ResidualConvUnit: a + conv2(relu(conv1(relu(a)))); residual in f32.
        y = conv3x3(a, 2 * i)
        return conv3x3(y, 2 * i + 1) + a

    a = x_ref[0]
    a = rcu(a, 0)          # rcu0[0]
    a = rcu(a, 1)          # rcu0[1]   (mrf is None -> out = rcu_xs[0])
    a = rcu(a, 2)          # output_conv
    o_ref[0] = a.astype(o_ref.dtype)


# ---------------------------------------------------------------------------
# Host-side, parameter-load-time weight folding.
# ---------------------------------------------------------------------------
def _banded_conv_matrix(w9, W):
    """Fold the 3 horizontal taps + channel mixing of each kernel row ky into
    a banded (W*C, W*C) matrix acting on a lane-dense (., W*C) row, then stack
    the three ky matrices along K.

    w9: (9, C_in, C_out) taps, tap index = ky*3 + kx.
    Returns (3*W*C, W*C) float32.
    """
    C = w9.shape[1]
    mats = []
    for ky in range(3):
        m = jnp.zeros((W * C, W * C), jnp.float32)
        for kx in range(3):
            # sel[wp, w] = 1 iff wp == w + kx - 1. Out-of-range taps are
            # clipped by the matrix edge -- exact, since they would only
            # multiply the zero 'SAME' padding.
            sel = jnp.eye(W, k=1 - kx, dtype=jnp.float32)
            m = m + jnp.kron(sel, w9[ky * 3 + kx].astype(jnp.float32))
        mats.append(m)
    return jnp.concatenate(mats, axis=0)


def prepare_banded_weights(taps, W):
    """One-time (parameter-load-time) folding of the six conv weights into
    bf16 banded matrices. Cache the result with the params; do NOT call per
    forward pass."""
    return jnp.stack([_banded_conv_matrix(taps[k], W)
                      for k in _CONV_ORDER]).astype(jnp.bfloat16)


def _auto_num_shards(n):
    """1 grid step on single-TensorCore chips (v5e/v6e); split the batch
    across the two TensorCores on v7x-class chips."""
    try:
        kind = jax.local_devices()[0].device_kind.lower()
    except Exception:
        return 1
    if n >= 2 and n % 2 == 0 and "v7" in kind:
        return 2
    return 1


# ---------------------------------------------------------------------------
# Forward wrapper.
# ---------------------------------------------------------------------------
def base_refinenet_block_forward(m_all, x_nchw, *, num_shards=None):
    """BaseRefineNetBlock.forward (single input, with_CRP=False, mrf=None).

    m_all: (6, 3*W*C, W*C) bf16 banded matrices from prepare_banded_weights.
    """
    N, C, H, W = x_nchw.shape
    WC = W * C
    if num_shards is None:
        num_shards = _auto_num_shards(N)
    num_shards = max(1, min(num_shards, N))
    if N % num_shards:
        num_shards = 1
    ns = N // num_shards
    T = ns * (H + 2)

    # layout: NCHW (PyTorch) -> lane-dense (N, H, W*C) -> zero halo rows above
    # and below each image -> ns images stacked per shard.
    x = jnp.transpose(x_nchw, (0, 2, 3, 1)).reshape(N, H, WC).astype(jnp.float32)
    x = jnp.pad(x, ((0, 0), (1, 1), (0, 0)))                 # (N, H+2, WC)
    x = x.reshape(num_shards, T, WC)

    # TODO(synk): with_CRP=True path (ChainedResidualPool: 5x5 maxpools +
    # convs) and the multi-input mrf fusion path are not implemented; the
    # module default / only well-defined path (mrf=None, with_CRP=False) is.
    def call(single_buffer_weights):
        w_kwargs = ({"pipeline_mode": pl.Buffered(1)}
                    if single_buffer_weights else {})
        return pl.pallas_call(
            functools.partial(_refine_block_kernel, H=H),
            out_shape=jax.ShapeDtypeStruct((num_shards, T, WC), jnp.float32),
            grid=(num_shards,),
            in_specs=[
                pl.BlockSpec((1, T, WC), lambda s: (s, 0, 0)),
                pl.BlockSpec((_NCONV, 3 * WC, WC), lambda s: (0, 0, 0),
                             **w_kwargs),
            ],
            out_specs=pl.BlockSpec((1, T, WC), lambda s: (s, 0, 0)),
            scratch_shapes=[pltpu.VMEM((T, WC), jnp.bfloat16)],
            compiler_params=pltpu.CompilerParams(
                dimension_semantics=("parallel",)),
        )(x, m_all)

    try:
        out = call(True)
    except Exception:
        # pl.Buffered(1) unsupported on this jax version: let the weights be
        # double-buffered (only costs extra VMEM; correctness unchanged).
        out = call(False)

    # Drop halo rows, back to NCHW.
    out = out.reshape(N, H + 2, WC)[:, 1:H + 1, :]
    out = out.reshape(N, H, W, C).transpose(0, 3, 1, 2)
    return out.astype(x_nchw.dtype)


# ---------------------------------------------------------------------------
# Parameter setup + pure-JAX reference for verification.
# ---------------------------------------------------------------------------
def pt_weight_to_taps(w_oihw):
    """PyTorch (C_out, C_in, 3, 3) -> kernel taps (9, C_in, C_out)."""
    c_in = w_oihw.shape[1]
    c_out = w_oihw.shape[0]
    return jnp.transpose(w_oihw, (2, 3, 1, 0)).reshape(9, c_in, c_out)


def _conv_ref(x, w):
    return jax.lax.conv_general_dilated(
        x, w, window_strides=(1, 1), padding="SAME",
        dimension_numbers=("NCHW", "OIHW", "NCHW"))


def _rcu_ref(x, w1, w2):
    y = _conv_ref(jax.nn.relu(x), w1)
    return _conv_ref(jax.nn.relu(y), w2) + x


def reference_forward(w_pt, x):
    y = _rcu_ref(x, w_pt["rcu0_0_w1"], w_pt["rcu0_0_w2"])
    y = _rcu_ref(y, w_pt["rcu0_1_w1"], w_pt["rcu0_1_w2"])
    return _rcu_ref(y, w_pt["out_w1"], w_pt["out_w2"])


if __name__ == "__main__":
    # features = 8, shapes = [(8, 16, 16)]  ->  W*C = 128 (lane-dense).
    N, C, H, W = 2, 8, 16, 16
    key = jax.random.PRNGKey(0)
    keys = jax.random.split(key, 1 + _NCONV)
    x = jax.random.normal(keys[0], (N, C, H, W), jnp.float32)

    # Deterministic synthetic weights in PyTorch layout (C_out, C_in, 3, 3).
    w_pt = {name: 0.1 * jax.random.normal(k, (C, C, 3, 3), jnp.float32)
            for name, k in zip(_CONV_ORDER, keys[1:])}
    taps = {name: pt_weight_to_taps(w) for name, w in w_pt.items()}

    # One-time, parameter-load-time weight folding (not per forward call).
    m_all = jax.block_until_ready(prepare_banded_weights(taps, W))

    out = base_refinenet_block_forward(m_all, x)
    out = jax.block_until_ready(out)

    ref = reference_forward(w_pt, x)
    assert out.shape == (N, C, H, W)
    max_err = float(jnp.max(jnp.abs(out - ref)))
    scale = float(jnp.max(jnp.abs(ref)))
    # bf16 MXU path over a 6-conv chain: allow ~4e-2 relative error
    # (a structural bug would produce O(1) errors).
    assert max_err < 4e-2 * (1.0 + scale), (
        f"mismatch vs reference: {max_err} (ref scale {scale})")
    print("KERNEL_OK")
</pallas_src>

<mosaic_0001>
module attributes {stable_mosaic.version = 11 : i64} {
  func.func @_refine_block_kernel(%arg0: i32, %arg1: memref<1x36x128xf32, #tpu.memory_space<vmem>>, %arg2: memref<6x384x128xbf16, #tpu.memory_space<vmem>>, %arg3: memref<1x36x128xf32, #tpu.memory_space<vmem>>, %arg4: memref<36x128xbf16, #tpu.memory_space<vmem>>) attributes {dimension_semantics = [#tpu.dimension_semantics<parallel>], iteration_bounds = array<i64: 1>, scalar_prefetch = 0 : i64, scratch_operands = 1 : i64, tpu.core_type = #tpu.core_type<tc>, window_params = [{transform_indices = @transform_0, window_bounds = array<i64: 1, 36, 128>}, {pipeline_mode = #tpu.pipeline_mode<synchronous>, transform_indices = @transform_1, window_bounds = array<i64: 6, 384, 128>}, {transform_indices = @transform_2, window_bounds = array<i64: 1, 36, 128>}]} {
    %0 = tpu.iota {dimensions = array<i32: 0>} : vector<36x1xi32>
    %c18_i32 = arith.constant 18 : i32
    %c0_i32 = arith.constant 0 : i32
    %1 = arith.cmpi eq, %c18_i32, %c0_i32 : i32
    %c1_i32 = arith.constant 1 : i32
    %2 = arith.select %1, %c1_i32, %c18_i32 : i32
    %3 = vector.broadcast %2 : i32 to vector<36x1xi32>
    %4 = arith.remsi %0, %3 : vector<36x1xi32>
    %c0_i32_0 = arith.constant 0 : i32
    %5 = vector.broadcast %c0_i32_0 : i32 to vector<36x1xi32>
    %6 = arith.cmpi ne, %4, %5 : vector<36x1xi32>
    %c0_i32_1 = arith.constant 0 : i32
    %7 = vector.broadcast %c0_i32_1 : i32 to vector<36x1xi32>
    %8 = arith.cmpi slt, %4, %7 : vector<36x1xi32>
    %c0_i32_2 = arith.constant 0 : i32
    %9 = arith.cmpi slt, %2, %c0_i32_2 : i32
    %10 = vector.broadcast %9 : i1 to vector<36x1xi1>
    %11 = vector.broadcast %10 : vector<36x1xi1> to vector<36x1xi1>
    %12 = arith.xori %8, %11 : vector<36x1xi1>
    %13 = arith.andi %12, %6 : vector<36x1xi1>
    %14 = vector.broadcast %2 : i32 to vector<36x1xi32>
    %15 = arith.addi %4, %14 : vector<36x1xi32>
    %16 = arith.select %13, %15, %4 : vector<36x1xi1>, vector<36x1xi32>
    %c1_i32_3 = arith.constant 1 : i32
    %17 = vector.broadcast %c1_i32_3 : i32 to vector<36x1xi32>
    %18 = arith.cmpi sge, %16, %17 : vector<36x1xi32>
    %c16_i32 = arith.constant 16 : i32
    %19 = vector.broadcast %c16_i32 : i32 to vector<36x1xi32>
    %20 = arith.cmpi sle, %16, %19 : vector<36x1xi32>
    %21 = arith.andi %18, %20 : vector<36x1xi1>
    %cst = arith.constant 0.000000e+00 : f32
    %22 = vector.broadcast %cst : f32 to vector<1x128xf32>
    %c0 = arith.constant 0 : index
    %c0_4 = arith.constant 0 : index
    %c0_5 = arith.constant 0 : index
    %23 = vector.load %arg1[%c0, %c0_4, %c0_5] : memref<1x36x128xf32, #tpu.memory_space<vmem>>, vector<1x36x128xf32>
    %24 = vector.shape_cast %23 : vector<1x36x128xf32> to vector<36x128xf32>
    %cst_6 = arith.constant 0.000000e+00 : f32
    %25 = vector.broadcast %cst_6 : f32 to vector<36x128xf32>
    %26 = arith.maximumf %24, %25 : vector<36x128xf32>
    %cst_7 = arith.constant 0.000000e+00 : f32
    %27 = vector.shape_cast %21 : vector<36x1xi1> to vector<36x1xi1>
    %28 = vector.broadcast %27 : vector<36x1xi1> to vector<36x128xi1>
    %29 = vector.broadcast %cst_7 : f32 to vector<36x128xf32>
    %30 = arith.select %28, %26, %29 : vector<36x128xi1>, vector<36x128xf32>
    %31 = arith.truncf %30 : vector<36x128xf32> to vector<36x128xbf16>
    %c0_8 = arith.constant 0 : index
    %c0_9 = arith.constant 0 : index
    %32 = vector.load %arg4[%c0_8, %c0_9] : memref<36x128xbf16, #tpu.memory_space<vmem>>, vector<36x128xbf16>
    tpu.vector_store %arg4[%c0_8, %c0_9], %31 {strides = array<i32>} : memref<36x128xbf16, #tpu.memory_space<vmem>>, vector<36x128xbf16>,
    %c0_10 = arith.constant 0 : index
    %c0_11 = arith.constant 0 : index
    %33 = vector.load %arg4[%c0_10, %c0_11] : memref<36x128xbf16, #tpu.memory_space<vmem>>, vector<34x128xbf16>
    %c1 = arith.constant 1 : index
    %c0_12 = arith.constant 0 : index
    %34 = vector.load %arg4[%c1, %c0_12] : memref<36x128xbf16, #tpu.memory_space<vmem>>, vector<34x128xbf16>
    %c2 = arith.constant 2 : index
    %c0_13 = arith.constant 0 : index
    %35 = vector.load %arg4[%c2, %c0_13] : memref<36x128xbf16, #tpu.memory_space<vmem>>, vector<34x128xbf16>
    %36 = tpu.concatenate %33, %34, %35 in 1 : vector<34x128xbf16>, vector<34x128xbf16>, vector<34x128xbf16> -> vector<34x384xbf16>
    %c0_14 = arith.constant 0 : index
    %c0_15 = arith.constant 0 : index
    %c0_16 = arith.constant 0 : index
    %37 = vector.load %arg2[%c0_14, %c0_15, %c0_16] : memref<6x384x128xbf16, #tpu.memory_space<vmem>>, vector<1x384x128xbf16>
    %38 = vector.shape_cast %37 : vector<1x384x128xbf16> to vector<384x128xbf16>
    %cst_17 = arith.constant dense<0.000000e+00> : vector<34x128xf32>
    %39 = tpu.matmul %36, %38, %cst_17 {dimension_numbers = #tpu.dot_dimension_numbers<[1], [0], [0], [1], [0, 0, 1, 1], [], []>} : vector<34x384xbf16>, vector<384x128xbf16>, vector<34x128xf32> -> vector<34x128xf32>
    %40 = tpu.concatenate %22, %39, %22 in 0 : vector<1x128xf32>, vector<34x128xf32>, vector<1x128xf32> -> vector<36x128xf32>
    %cst_18 = arith.constant 0.000000e+00 : f32
    %41 = vector.broadcast %cst_18 : f32 to vector<36x128xf32>
    %42 = arith.maximumf %40, %41 : vector<36x128xf32>
    %cst_19 = arith.constant 0.000000e+00 : f32
    %43 = vector.shape_cast %21 : vector<36x1xi1> to vector<36x1xi1>
    %44 = vector.broadcast %43 : vector<36x1xi1> to vector<36x128xi1>
    %45 = vector.broadcast %cst_19 : f32 to vector<36x128xf32>
    %46 = arith.select %44, %42, %45 : vector<36x128xi1>, vector<36x128xf32>
    %47 = arith.truncf %46 : vector<36x128xf32> to vector<36x128xbf16>
    %c0_20 = arith.constant 0 : index
    %c0_21 = arith.constant 0 : index
    %48 = vector.load %arg4[%c0_20, %c0_21] : memref<36x128xbf16, #tpu.memory_space<vmem>>, vector<36x128xbf16>
    tpu.vector_store %arg4[%c0_20, %c0_21], %47 {strides = array<i32>} : memref<36x128xbf16, #tpu.memory_space<vmem>>, vector<36x128xbf16>,
    %c0_22 = arith.constant 0 : index
    %c0_23 = arith.constant 0 : index
    %49 = vector.load %arg4[%c0_22, %c0_23] : memref<36x128xbf16, #tpu.memory_space<vmem>>, vector<34x128xbf16>
    %c1_24 = arith.constant 1 : index
    %c0_25 = arith.constant 0 : index
    %50 = vector.load %arg4[%c1_24, %c0_25] : memref<36x128xbf16, #tpu.memory_space<vmem>>, vector<34x128xbf16>
    %c2_26 = arith.constant 2 : index
    %c0_27 = arith.constant 0 : index
    %51 = vector.load %arg4[%c2_26, %c0_27] : memref<36x128xbf16, #tpu.memory_space<vmem>>, vector<34x128xbf16>
    %52 = tpu.concatenate %49, %50, %51 in 1 : vector<34x128xbf16>, vector<34x128xbf16>, vector<34x128xbf16> -> vector<34x384xbf16>
    %c1_28 = arith.constant 1 : index
    %c0_29 = arith.constant 0 : index
    %c0_30 = arith.constant 0 : index
    %53 = vector.load %arg2[%c1_28, %c0_29, %c0_30] : memref<6x384x128xbf16, #tpu.memory_space<vmem>>, vector<1x384x128xbf16>
    %54 = vector.shape_cast %53 : vector<1x384x128xbf16> to vector<384x128xbf16>
    %cst_31 = arith.constant dense<0.000000e+00> : vector<34x128xf32>
    %55 = tpu.matmul %52, %54, %cst_31 {dimension_numbers = #tpu.dot_dimension_numbers<[1], [0], [0], [1], [0, 0, 1, 1], [], []>} : vector<34x384xbf16>, vector<384x128xbf16>, vector<34x128xf32> -> vector<34x128xf32>
    %56 = tpu.concatenate %22, %55, %22 in 0 : vector<1x128xf32>, vector<34x128xf32>, vector<1x128xf32> -> vector<36x128xf32>
    %57 = arith.addf %56, %24 : vector<36x128xf32>
    %cst_32 = arith.constant 0.000000e+00 : f32
    %58 = vector.broadcast %cst_32 : f32 to vector<36x128xf32>
    %59 = arith.maximumf %57, %58 : vector<36x128xf32>
    %cst_33 = arith.constant 0.000000e+00 : f32
    %60 = vector.shape_cast %21 : vector<36x1xi1> to vector<36x1xi1>
    %61 = vector.broadcast %60 : vector<36x1xi1> to vector<36x128xi1>
    %62 = vector.broadcast %cst_33 : f32 to vector<36x128xf32>
    %63 = arith.select %61, %59, %62 : vector<36x128xi1>, vector<36x128xf32>
    %64 = arith.truncf %63 : vector<36x128xf32> to vector<36x128xbf16>
    %c0_34 = arith.constant 0 : index
    %c0_35 = arith.constant 0 : index
    %65 = vector.load %arg4[%c0_34, %c0_35] : memref<36x128xbf16, #tpu.memory_space<vmem>>, vector<36x128xbf16>
    tpu.vector_store %arg4[%c0_34, %c0_35], %64 {strides = array<i32>} : memref<36x128xbf16, #tpu.memory_space<vmem>>, vector<36x128xbf16>,
    %c0_36 = arith.constant 0 : index
    %c0_37 = arith.constant 0 : index
    %66 = vector.load %arg4[%c0_36, %c0_37] : memref<36x128xbf16, #tpu.memory_space<vmem>>, vector<34x128xbf16>
    %c1_38 = arith.constant 1 : index
    %c0_39 = arith.constant 0 : index
    %67 = vector.load %arg4[%c1_38, %c0_39] : memref<36x128xbf16, #tpu.memory_space<vmem>>, vector<34x128xbf16>
    %c2_40 = arith.constant 2 : index
    %c0_41 = arith.constant 0 : index
    %68 = vector.load %arg4[%c2_40, %c0_41] : memref<36x128xbf16, #tpu.memory_space<vmem>>, vector<34x128xbf16>
    %69 = tpu.concatenate %66, %67, %68 in 1 : vector<34x128xbf16>, vector<34x128xbf16>, vector<34x128xbf16> -> vector<34x384xbf16>
    %c2_42 = arith.constant 2 : index
    %c0_43 = arith.constant 0 : index
    %c0_44 = arith.constant 0 : index
    %70 = vector.load %arg2[%c2_42, %c0_43, %c0_44] : memref<6x384x128xbf16, #tpu.memory_space<vmem>>, vector<1x384x128xbf16>
    %71 = vector.shape_cast %70 : vector<1x384x128xbf16> to vector<384x128xbf16>
    %cst_45 = arith.constant dense<0.000000e+00> : vector<34x128xf32>
    %72 = tpu.matmul %69, %71, %cst_45 {dimension_numbers = #tpu.dot_dimension_numbers<[1], [0], [0], [1], [0, 0, 1, 1], [], []>} : vector<34x384xbf16>, vector<384x128xbf16>, vector<34x128xf32> -> vector<34x128xf32>
    %73 = tpu.concatenate %22, %72, %22 in 0 : vector<1x128xf32>, vector<34x128xf32>, vector<1x128xf32> -> vector<36x128xf32>
    %cst_46 = arith.constant 0.000000e+00 : f32
    %74 = vector.broadcast %cst_46 : f32 to vector<36x128xf32>
    %75 = arith.maximumf %73, %74 : vector<36x128xf32>
    %cst_47 = arith.constant 0.000000e+00 : f32
    %76 = vector.shape_cast %21 : vector<36x1xi1> to vector<36x1xi1>
    %77 = vector.broadcast %76 : vector<36x1xi1> to vector<36x128xi1>
    %78 = vector.broadcast %cst_47 : f32 to vector<36x128xf32>
    %79 = arith.select %77, %75, %78 : vector<36x128xi1>, vector<36x128xf32>
    %80 = arith.truncf %79 : vector<36x128xf32> to vector<36x128xbf16>
    %c0_48 = arith.constant 0 : index
    %c0_49 = arith.constant 0 : index
    %81 = vector.load %arg4[%c0_48, %c0_49] : memref<36x128xbf16, #tpu.memory_space<vmem>>, vector<36x128xbf16>
    tpu.vector_store %arg4[%c0_48, %c0_49], %80 {strides = array<i32>} : memref<36x128xbf16, #tpu.memory_space<vmem>>, vector<36x128xbf16>,
    %c0_50 = arith.constant 0 : index
    %c0_51 = arith.constant 0 : index
    %82 = vector.load %arg4[%c0_50, %c0_51] : memref<36x128xbf16, #tpu.memory_space<vmem>>, vector<34x128xbf16>
    %c1_52 = arith.constant 1 : index
    %c0_53 = arith.constant 0 : index
    %83 = vector.load %arg4[%c1_52, %c0_53] : memref<36x128xbf16, #tpu.memory_space<vmem>>, vector<34x128xbf16>
    %c2_54 = arith.constant 2 : index
    %c0_55 = arith.constant 0 : index
    %84 = vector.load %arg4[%c2_54, %c0_55] : memref<36x128xbf16, #tpu.memory_space<vmem>>, vector<34x128xbf16>
    %85 = tpu.concatenate %82, %83, %84 in 1 : vector<34x128xbf16>, vector<34x128xbf16>, vector<34x128xbf16> -> vector<34x384xbf16>
    %c3 = arith.constant 3 : index
    %c0_56 = arith.constant 0 : index
    %c0_57 = arith.constant 0 : index
    %86 = vector.load %arg2[%c3, %c0_56, %c0_57] : memref<6x384x128xbf16, #tpu.memory_space<vmem>>, vector<1x384x128xbf16>
    %87 = vector.shape_cast %86 : vector<1x384x128xbf16> to vector<384x128xbf16>
    %cst_58 = arith.constant dense<0.000000e+00> : vector<34x128xf32>
    %88 = tpu.matmul %85, %87, %cst_58 {dimension_numbers = #tpu.dot_dimension_numbers<[1], [0], [0], [1], [0, 0, 1, 1], [], []>} : vector<34x384xbf16>, vector<384x128xbf16>, vector<34x128xf32> -> vector<34x128xf32>
    %89 = tpu.concatenate %22, %88, %22 in 0 : vector<1x128xf32>, vector<34x128xf32>, vector<1x128xf32> -> vector<36x128xf32>
    %90 = arith.addf %89, %57 : vector<36x128xf32>
    %cst_59 = arith.constant 0.000000e+00 : f32
    %91 = vector.broadcast %cst_59 : f32 to vector<36x128xf32>
    %92 = arith.maximumf %90, %91 : vector<36x128xf32>
    %cst_60 = arith.constant 0.000000e+00 : f32
    %93 = vector.shape_cast %21 : vector<36x1xi1> to vector<36x1xi1>
    %94 = vector.broadcast %93 : vector<36x1xi1> to vector<36x128xi1>
    %95 = vector.broadcast %cst_60 : f32 to vector<36x128xf32>
    %96 = arith.select %94, %92, %95 : vector<36x128xi1>, vector<36x128xf32>
    %97 = arith.truncf %96 : vector<36x128xf32> to vector<36x128xbf16>
    %c0_61 = arith.constant 0 : index
    %c0_62 = arith.constant 0 : index
    %98 = vector.load %arg4[%c0_61, %c0_62] : memref<36x128xbf16, #tpu.memory_space<vmem>>, vector<36x128xbf16>
    tpu.vector_store %arg4[%c0_61, %c0_62], %97 {strides = array<i32>} : memref<36x128xbf16, #tpu.memory_space<vmem>>, vector<36x128xbf16>,
    %c0_63 = arith.constant 0 : index
    %c0_64 = arith.constant 0 : index
    %99 = vector.load %arg4[%c0_63, %c0_64] : memref<36x128xbf16, #tpu.memory_space<vmem>>, vector<34x128xbf16>
    %c1_65 = arith.constant 1 : index
    %c0_66 = arith.constant 0 : index
    %100 = vector.load %arg4[%c1_65, %c0_66] : memref<36x128xbf16, #tpu.memory_space<vmem>>, vector<34x128xbf16>
    %c2_67 = arith.constant 2 : index
    %c0_68 = arith.constant 0 : index
    %101 = vector.load %arg4[%c2_67, %c0_68] : memref<36x128xbf16, #tpu.memory_space<vmem>>, vector<34x128xbf16>
    %102 = tpu.concatenate %99, %100, %101 in 1 : vector<34x128xbf16>, vector<34x128xbf16>, vector<34x128xbf16> -> vector<34x384xbf16>
    %c4 = arith.constant 4 : index
    %c0_69 = arith.constant 0 : index
    %c0_70 = arith.constant 0 : index
    %103 = vector.load %arg2[%c4, %c0_69, %c0_70] : memref<6x384x128xbf16, #tpu.memory_space<vmem>>, vector<1x384x128xbf16>
    %104 = vector.shape_cast %103 : vector<1x384x128xbf16> to vector<384x128xbf16>
    %cst_71 = arith.constant dense<0.000000e+00> : vector<34x128xf32>
    %105 = tpu.matmul %102, %104, %cst_71 {dimension_numbers = #tpu.dot_dimension_numbers<[1], [0], [0], [1], [0, 0, 1, 1], [], []>} : vector<34x384xbf16>, vector<384x128xbf16>, vector<34x128xf32> -> vector<34x128xf32>
    %106 = tpu.concatenate %22, %105, %22 in 0 : vector<1x128xf32>, vector<34x128xf32>, vector<1x128xf32> -> vector<36x128xf32>
    %cst_72 = arith.constant 0.000000e+00 : f32
    %107 = vector.broadcast %cst_72 : f32 to vector<36x128xf32>
    %108 = arith.maximumf %106, %107 : vector<36x128xf32>
    %cst_73 = arith.constant 0.000000e+00 : f32
    %109 = vector.shape_cast %21 : vector<36x1xi1> to vector<36x1xi1>
    %110 = vector.broadcast %109 : vector<36x1xi1> to vector<36x128xi1>
    %111 = vector.broadcast %cst_73 : f32 to vector<36x128xf32>
    %112 = arith.select %110, %108, %111 : vector<36x128xi1>, vector<36x128xf32>
    %113 = arith.truncf %112 : vector<36x128xf32> to vector<36x128xbf16>
    %c0_74 = arith.constant 0 : index
    %c0_75 = arith.constant 0 : index
    %114 = vector.load %arg4[%c0_74, %c0_75] : memref<36x128xbf16, #tpu.memory_space<vmem>>, vector<36x128xbf16>
    tpu.vector_store %arg4[%c0_74, %c0_75], %113 {strides = array<i32>} : memref<36x128xbf16, #tpu.memory_space<vmem>>, vector<36x128xbf16>,
    %c0_76 = arith.constant 0 : index
    %c0_77 = arith.constant 0 : index
    %115 = vector.load %arg4[%c0_76, %c0_77] : memref<36x128xbf16, #tpu.memory_space<vmem>>, vector<34x128xbf16>
    %c1_78 = arith.constant 1 : index
    %c0_79 = arith.constant 0 : index
    %116 = vector.load %arg4[%c1_78, %c0_79] : memref<36x128xbf16, #tpu.memory_space<vmem>>, vector<34x128xbf16>
    %c2_80 = arith.constant 2 : index
    %c0_81 = arith.constant 0 : index
    %117 = vector.load %arg4[%c2_80, %c0_81] : memref<36x128xbf16, #tpu.memory_space<vmem>>, vector<34x128xbf16>
    %118 = tpu.concatenate %115, %116, %117 in 1 : vector<34x128xbf16>, vector<34x128xbf16>, vector<34x128xbf16> -> vector<34x384xbf16>
    %c5 = arith.constant 5 : index
    %c0_82 = arith.constant 0 : index
    %c0_83 = arith.constant 0 : index
    %119 = vector.load %arg2[%c5, %c0_82, %c0_83] : memref<6x384x128xbf16, #tpu.memory_space<vmem>>, vector<1x384x128xbf16>
    %120 = vector.shape_cast %119 : vector<1x384x128xbf16> to vector<384x128xbf16>
    %cst_84 = arith.constant dense<0.000000e+00> : vector<34x128xf32>
    %121 = tpu.matmul %118, %120, %cst_84 {dimension_numbers = #tpu.dot_dimension_numbers<[1], [0], [0], [1], [0, 0, 1, 1], [], []>} : vector<34x384xbf16>, vector<384x128xbf16>, vector<34x128xf32> -> vector<34x128xf32>
    %122 = tpu.concatenate %22, %121, %22 in 0 : vector<1x128xf32>, vector<34x128xf32>, vector<1x128xf32> -> vector<36x128xf32>
    %123 = arith.addf %122, %90 : vector<36x128xf32>
    %c0_85 = arith.constant 0 : index
    %c0_86 = arith.constant 0 : index
    %c0_87 = arith.constant 0 : index
    %124 = vector.load %arg3[%c0_85, %c0_86, %c0_87] : memref<1x36x128xf32, #tpu.memory_space<vmem>>, vector<1x36x128xf32>
    %125 = vector.shape_cast %124 : vector<1x36x128xf32> to vector<36x128xf32>
    %126 = vector.shape_cast %123 : vector<36x128xf32> to vector<1x36x128xf32>
    tpu.vector_store %arg3[%c0_85, %c0_86, %c0_87], %126 {strides = array<i32>} : memref<1x36x128xf32, #tpu.memory_space<vmem>>, vector<1x36x128xf32>,
    return
  }
  func.func @transform_0(%arg0: i32) -> (i32, i32, i32) {
    %c0_i32 = arith.constant 0 : i32
    %c0_i32_0 = arith.constant 0 : i32
    %c0_i32_1 = arith.constant 0 : i32
    return %arg0, %c0_i32, %c0_i32_0 : i32, i32, i32
  }
  func.func @transform_1(%arg0: i32) -> (i32, i32, i32) {
    %c0_i32 = arith.constant 0 : i32
    %c0_i32_0 = arith.constant 0 : i32
    %c0_i32_1 = arith.constant 0 : i32
    %c0_i32_2 = arith.constant 0 : i32
    return %c0_i32, %c0_i32_0, %c0_i32_1 : i32, i32, i32
  }
  func.func @transform_2(%arg0: i32) -> (i32, i32, i32) {
    %c0_i32 = arith.constant 0 : i32
    %c0_i32_0 = arith.constant 0 : i32
    %c0_i32_1 = arith.constant 0 : i32
    return %arg0, %c0_i32, %c0_i32_0 : i32, i32, i32
  }
}

module attributes {stable_mosaic.version = 11 : i64} {
  func.func @_refine_block_kernel(%arg0: i32, %arg1: memref<1x36x128xf32, #tpu.memory_space<vmem>>, %arg2: memref<6x384x128xbf16, #tpu.memory_space<vmem>>, %arg3: memref<1x36x128xf32, #tpu.memory_space<vmem>>, %arg4: memref<36x128xbf16, #tpu.memory_space<vmem>>) attributes {dimension_semantics = [#tpu.dimension_semantics<parallel>], iteration_bounds = array<i64: 1>, scalar_prefetch = 0 : i64, scratch_operands = 1 : i64, tpu.core_type = #tpu.core_type<tc>, window_params = [{transform_indices = @transform_0, window_bounds = array<i64: 1, 36, 128>}, {pipeline_mode = #tpu.pipeline_mode<synchronous>, transform_indices = @transform_1, window_bounds = array<i64: 6, 384, 128>}, {transform_indices = @transform_2, window_bounds = array<i64: 1, 36, 128>}]} {
    %0 = tpu.iota {dimensions = array<i32: 0>} : vector<36x1xi32>
    %c18_i32 = arith.constant 18 : i32
    %c0_i32 = arith.constant 0 : i32
    %1 = arith.cmpi eq, %c18_i32, %c0_i32 : i32
    %c1_i32 = arith.constant 1 : i32
    %2 = arith.select %1, %c1_i32, %c18_i32 : i32
    %3 = vector.broadcast %2 : i32 to vector<36x1xi32>
    %4 = arith.remsi %0, %3 : vector<36x1xi32>
    %c0_i32_0 = arith.constant 0 : i32
    %5 = vector.broadcast %c0_i32_0 : i32 to vector<36x1xi32>
    %6 = arith.cmpi ne, %4, %5 : vector<36x1xi32>
    %c0_i32_1 = arith.constant 0 : i32
    %7 = vector.broadcast %c0_i32_1 : i32 to vector<36x1xi32>
    %8 = arith.cmpi slt, %4, %7 : vector<36x1xi32>
    %c0_i32_2 = arith.constant 0 : i32
    %9 = arith.cmpi slt, %2, %c0_i32_2 : i32
    %10 = vector.broadcast %9 : i1 to vector<36x1xi1>
    %11 = vector.broadcast %10 : vector<36x1xi1> to vector<36x1xi1>
    %12 = arith.xori %8, %11 : vector<36x1xi1>
    %13 = arith.andi %12, %6 : vector<36x1xi1>
    %14 = vector.broadcast %2 : i32 to vector<36x1xi32>
    %15 = arith.addi %4, %14 : vector<36x1xi32>
    %16 = arith.select %13, %15, %4 : vector<36x1xi1>, vector<36x1xi32>
    %c1_i32_3 = arith.constant 1 : i32
    %17 = vector.broadcast %c1_i32_3 : i32 to vector<36x1xi32>
    %18 = arith.cmpi sge, %16, %17 : vector<36x1xi32>
    %c16_i32 = arith.constant 16 : i32
    %19 = vector.broadcast %c16_i32 : i32 to vector<36x1xi32>
    %20 = arith.cmpi sle, %16, %19 : vector<36x1xi32>
    %21 = arith.andi %18, %20 : vector<36x1xi1>
    %cst = arith.constant 0.000000e+00 : f32
    %22 = vector.broadcast %cst : f32 to vector<1x128xf32>
    %c0 = arith.constant 0 : index
    %c0_4 = arith.constant 0 : index
    %c0_5 = arith.constant 0 : index
    %23 = vector.load %arg1[%c0, %c0_4, %c0_5] : memref<1x36x128xf32, #tpu.memory_space<vmem>>, vector<1x36x128xf32>
    %24 = vector.shape_cast %23 : vector<1x36x128xf32> to vector<36x128xf32>
    %cst_6 = arith.constant 0.000000e+00 : f32
    %25 = vector.broadcast %cst_6 : f32 to vector<36x128xf32>
    %26 = arith.maximumf %24, %25 : vector<36x128xf32>
    %cst_7 = arith.constant 0.000000e+00 : f32
    %27 = vector.shape_cast %21 : vector<36x1xi1> to vector<36x1xi1>
    %28 = vector.broadcast %27 : vector<36x1xi1> to vector<36x128xi1>
    %29 = vector.broadcast %cst_7 : f32 to vector<36x128xf32>
    %30 = arith.select %28, %26, %29 : vector<36x128xi1>, vector<36x128xf32>
    %31 = arith.truncf %30 : vector<36x128xf32> to vector<36x128xbf16>
    %c0_8 = arith.constant 0 : index
    %c0_9 = arith.constant 0 : index
    %32 = vector.load %arg4[%c0_8, %c0_9] : memref<36x128xbf16, #tpu.memory_space<vmem>>, vector<36x128xbf16>
    tpu.vector_store %arg4[%c0_8, %c0_9], %31 {strides = array<i32>} : memref<36x128xbf16, #tpu.memory_space<vmem>>, vector<36x128xbf16>,
    %c0_10 = arith.constant 0 : index
    %c0_11 = arith.constant 0 : index
    %33 = vector.load %arg4[%c0_10, %c0_11] : memref<36x128xbf16, #tpu.memory_space<vmem>>, vector<34x128xbf16>
    %c1 = arith.constant 1 : index
    %c0_12 = arith.constant 0 : index
    %34 = vector.load %arg4[%c1, %c0_12] : memref<36x128xbf16, #tpu.memory_space<vmem>>, vector<34x128xbf16>
    %c2 = arith.constant 2 : index
    %c0_13 = arith.constant 0 : index
    %35 = vector.load %arg4[%c2, %c0_13] : memref<36x128xbf16, #tpu.memory_space<vmem>>, vector<34x128xbf16>
    %36 = tpu.concatenate %33, %34, %35 in 1 : vector<34x128xbf16>, vector<34x128xbf16>, vector<34x128xbf16> -> vector<34x384xbf16>
    %c0_14 = arith.constant 0 : index
    %c0_15 = arith.constant 0 : index
    %c0_16 = arith.constant 0 : index
    %37 = vector.load %arg2[%c0_14, %c0_15, %c0_16] : memref<6x384x128xbf16, #tpu.memory_space<vmem>>, vector<1x384x128xbf16>
    %38 = vector.shape_cast %37 : vector<1x384x128xbf16> to vector<384x128xbf16>
    %cst_17 = arith.constant dense<0.000000e+00> : vector<34x128xf32>
    %39 = tpu.matmul %36, %38, %cst_17 {dimension_numbers = #tpu.dot_dimension_numbers<[1], [0], [0], [1], [0, 0, 1, 1], [], []>} : vector<34x384xbf16>, vector<384x128xbf16>, vector<34x128xf32> -> vector<34x128xf32>
    %40 = tpu.concatenate %22, %39, %22 in 0 : vector<1x128xf32>, vector<34x128xf32>, vector<1x128xf32> -> vector<36x128xf32>
    %cst_18 = arith.constant 0.000000e+00 : f32
    %41 = vector.broadcast %cst_18 : f32 to vector<36x128xf32>
    %42 = arith.maximumf %40, %41 : vector<36x128xf32>
    %cst_19 = arith.constant 0.000000e+00 : f32
    %43 = vector.shape_cast %21 : vector<36x1xi1> to vector<36x1xi1>
    %44 = vector.broadcast %43 : vector<36x1xi1> to vector<36x128xi1>
    %45 = vector.broadcast %cst_19 : f32 to vector<36x128xf32>
    %46 = arith.select %44, %42, %45 : vector<36x128xi1>, vector<36x128xf32>
    %47 = arith.truncf %46 : vector<36x128xf32> to vector<36x128xbf16>
    %c0_20 = arith.constant 0 : index
    %c0_21 = arith.constant 0 : index
    %48 = vector.load %arg4[%c0_20, %c0_21] : memref<36x128xbf16, #tpu.memory_space<vmem>>, vector<36x128xbf16>
    tpu.vector_store %arg4[%c0_20, %c0_21], %47 {strides = array<i32>} : memref<36x128xbf16, #tpu.memory_space<vmem>>, vector<36x128xbf16>,
    %c0_22 = arith.constant 0 : index
    %c0_23 = arith.constant 0 : index
    %49 = vector.load %arg4[%c0_22, %c0_23] : memref<36x128xbf16, #tpu.memory_space<vmem>>, vector<34x128xbf16>
    %c1_24 = arith.constant 1 : index
    %c0_25 = arith.constant 0 : index
    %50 = vector.load %arg4[%c1_24, %c0_25] : memref<36x128xbf16, #tpu.memory_space<vmem>>, vector<34x128xbf16>
    %c2_26 = arith.constant 2 : index
    %c0_27 = arith.constant 0 : index
    %51 = vector.load %arg4[%c2_26, %c0_27] : memref<36x128xbf16, #tpu.memory_space<vmem>>, vector<34x128xbf16>
    %52 = tpu.concatenate %49, %50, %51 in 1 : vector<34x128xbf16>, vector<34x128xbf16>, vector<34x128xbf16> -> vector<34x384xbf16>
    %c1_28 = arith.constant 1 : index
    %c0_29 = arith.constant 0 : index
    %c0_30 = arith.constant 0 : index
    %53 = vector.load %arg2[%c1_28, %c0_29, %c0_30] : memref<6x384x128xbf16, #tpu.memory_space<vmem>>, vector<1x384x128xbf16>
    %54 = vector.shape_cast %53 : vector<1x384x128xbf16> to vector<384x128xbf16>
    %cst_31 = arith.constant dense<0.000000e+00> : vector<34x128xf32>
    %55 = tpu.matmul %52, %54, %cst_31 {dimension_numbers = #tpu.dot_dimension_numbers<[1], [0], [0], [1], [0, 0, 1, 1], [], []>} : vector<34x384xbf16>, vector<384x128xbf16>, vector<34x128xf32> -> vector<34x128xf32>
    %56 = tpu.concatenate %22, %55, %22 in 0 : vector<1x128xf32>, vector<34x128xf32>, vector<1x128xf32> -> vector<36x128xf32>
    %57 = arith.addf %56, %24 : vector<36x128xf32>
    %cst_32 = arith.constant 0.000000e+00 : f32
    %58 = vector.broadcast %cst_32 : f32 to vector<36x128xf32>
    %59 = arith.maximumf %57, %58 : vector<36x128xf32>
    %cst_33 = arith.constant 0.000000e+00 : f32
    %60 = vector.shape_cast %21 : vector<36x1xi1> to vector<36x1xi1>
    %61 = vector.broadcast %60 : vector<36x1xi1> to vector<36x128xi1>
    %62 = vector.broadcast %cst_33 : f32 to vector<36x128xf32>
    %63 = arith.select %61, %59, %62 : vector<36x128xi1>, vector<36x128xf32>
    %64 = arith.truncf %63 : vector<36x128xf32> to vector<36x128xbf16>
    %c0_34 = arith.constant 0 : index
    %c0_35 = arith.constant 0 : index
    %65 = vector.load %arg4[%c0_34, %c0_35] : memref<36x128xbf16, #tpu.memory_space<vmem>>, vector<36x128xbf16>
    tpu.vector_store %arg4[%c0_34, %c0_35], %64 {strides = array<i32>} : memref<36x128xbf16, #tpu.memory_space<vmem>>, vector<36x128xbf16>,
    %c0_36 = arith.constant 0 : index
    %c0_37 = arith.constant 0 : index
    %66 = vector.load %arg4[%c0_36, %c0_37] : memref<36x128xbf16, #tpu.memory_space<vmem>>, vector<34x128xbf16>
    %c1_38 = arith.constant 1 : index
    %c0_39 = arith.constant 0 : index
    %67 = vector.load %arg4[%c1_38, %c0_39] : memref<36x128xbf16, #tpu.memory_space<vmem>>, vector<34x128xbf16>
    %c2_40 = arith.constant 2 : index
    %c0_41 = arith.constant 0 : index
    %68 = vector.load %arg4[%c2_40, %c0_41] : memref<36x128xbf16, #tpu.memory_space<vmem>>, vector<34x128xbf16>
    %69 = tpu.concatenate %66, %67, %68 in 1 : vector<34x128xbf16>, vector<34x128xbf16>, vector<34x128xbf16> -> vector<34x384xbf16>
    %c2_42 = arith.constant 2 : index
    %c0_43 = arith.constant 0 : index
    %c0_44 = arith.constant 0 : index
    %70 = vector.load %arg2[%c2_42, %c0_43, %c0_44] : memref<6x384x128xbf16, #tpu.memory_space<vmem>>, vector<1x384x128xbf16>
    %71 = vector.shape_cast %70 : vector<1x384x128xbf16> to vector<384x128xbf16>
    %cst_45 = arith.constant dense<0.000000e+00> : vector<34x128xf32>
    %72 = tpu.matmul %69, %71, %cst_45 {dimension_numbers = #tpu.dot_dimension_numbers<[1], [0], [0], [1], [0, 0, 1, 1], [], []>} : vector<34x384xbf16>, vector<384x128xbf16>, vector<34x128xf32> -> vector<34x128xf32>
    %73 = tpu.concatenate %22, %72, %22 in 0 : vector<1x128xf32>, vector<34x128xf32>, vector<1x128xf32> -> vector<36x128xf32>
    %cst_46 = arith.constant 0.000000e+00 : f32
    %74 = vector.broadcast %cst_46 : f32 to vector<36x128xf32>
    %75 = arith.maximumf %73, %74 : vector<36x128xf32>
    %cst_47 = arith.constant 0.000000e+00 : f32
    %76 = vector.shape_cast %21 : vector<36x1xi1> to vector<36x1xi1>
    %77 = vector.broadcast %76 : vector<36x1xi1> to vector<36x128xi1>
    %78 = vector.broadcast %cst_47 : f32 to vector<36x128xf32>
    %79 = arith.select %77, %75, %78 : vector<36x128xi1>, vector<36x128xf32>
    %80 = arith.truncf %79 : vector<36x128xf32> to vector<36x128xbf16>
    %c0_48 = arith.constant 0 : index
    %c0_49 = arith.constant 0 : index
    %81 = vector.load %arg4[%c0_48, %c0_49] : memref<36x128xbf16, #tpu.memory_space<vmem>>, vector<36x128xbf16>
    tpu.vector_store %arg4[%c0_48, %c0_49], %80 {strides = array<i32>} : memref<36x128xbf16, #tpu.memory_space<vmem>>, vector<36x128xbf16>,
    %c0_50 = arith.constant 0 : index
    %c0_51 = arith.constant 0 : index
    %82 = vector.load %arg4[%c0_50, %c0_51] : memref<36x128xbf16, #tpu.memory_space<vmem>>, vector<34x128xbf16>
    %c1_52 = arith.constant 1 : index
    %c0_53 = arith.constant 0 : index
    %83 = vector.load %arg4[%c1_52, %c0_53] : memref<36x128xbf16, #tpu.memory_space<vmem>>, vector<34x128xbf16>
    %c2_54 = arith.constant 2 : index
    %c0_55 = arith.constant 0 : index
    %84 = vector.load %arg4[%c2_54, %c0_55] : memref<36x128xbf16, #tpu.memory_space<vmem>>, vector<34x128xbf16>
    %85 = tpu.concatenate %82, %83, %84 in 1 : vector<34x128xbf16>, vector<34x128xbf16>, vector<34x128xbf16> -> vector<34x384xbf16>
    %c3 = arith.constant 3 : index
    %c0_56 = arith.constant 0 : index
    %c0_57 = arith.constant 0 : index
    %86 = vector.load %arg2[%c3, %c0_56, %c0_57] : memref<6x384x128xbf16, #tpu.memory_space<vmem>>, vector<1x384x128xbf16>
    %87 = vector.shape_cast %86 : vector<1x384x128xbf16> to vector<384x128xbf16>
    %cst_58 = arith.constant dense<0.000000e+00> : vector<34x128xf32>
    %88 = tpu.matmul %85, %87, %cst_58 {dimension_numbers = #tpu.dot_dimension_numbers<[1], [0], [0], [1], [0, 0, 1, 1], [], []>} : vector<34x384xbf16>, vector<384x128xbf16>, vector<34x128xf32> -> vector<34x128xf32>
    %89 = tpu.concatenate %22, %88, %22 in 0 : vector<1x128xf32>, vector<34x128xf32>, vector<1x128xf32> -> vector<36x128xf32>
    %90 = arith.addf %89, %57 : vector<36x128xf32>
    %cst_59 = arith.constant 0.000000e+00 : f32
    %91 = vector.broadcast %cst_59 : f32 to vector<36x128xf32>
    %92 = arith.maximumf %90, %91 : vector<36x128xf32>
    %cst_60 = arith.constant 0.000000e+00 : f32
    %93 = vector.shape_cast %21 : vector<36x1xi1> to vector<36x1xi1>
    %94 = vector.broadcast %93 : vector<36x1xi1> to vector<36x128xi1>
    %95 = vector.broadcast %cst_60 : f32 to vector<36x128xf32>
    %96 = arith.select %94, %92, %95 : vector<36x128xi1>, vector<36x128xf32>
    %97 = arith.truncf %96 : vector<36x128xf32> to vector<36x128xbf16>
    %c0_61 = arith.constant 0 : index
    %c0_62 = arith.constant 0 : index
    %98 = vector.load %arg4[%c0_61, %c0_62] : memref<36x128xbf16, #tpu.memory_space<vmem>>, vector<36x128xbf16>
    tpu.vector_store %arg4[%c0_61, %c0_62], %97 {strides = array<i32>} : memref<36x128xbf16, #tpu.memory_space<vmem>>, vector<36x128xbf16>,
    %c0_63 = arith.constant 0 : index
    %c0_64 = arith.constant 0 : index
    %99 = vector.load %arg4[%c0_63, %c0_64] : memref<36x128xbf16, #tpu.memory_space<vmem>>, vector<34x128xbf16>
    %c1_65 = arith.constant 1 : index
    %c0_66 = arith.constant 0 : index
    %100 = vector.load %arg4[%c1_65, %c0_66] : memref<36x128xbf16, #tpu.memory_space<vmem>>, vector<34x128xbf16>
    %c2_67 = arith.constant 2 : index
    %c0_68 = arith.constant 0 : index
    %101 = vector.load %arg4[%c2_67, %c0_68] : memref<36x128xbf16, #tpu.memory_space<vmem>>, vector<34x128xbf16>
    %102 = tpu.concatenate %99, %100, %101 in 1 : vector<34x128xbf16>, vector<34x128xbf16>, vector<34x128xbf16> -> vector<34x384xbf16>
    %c4 = arith.constant 4 : index
    %c0_69 = arith.constant 0 : index
    %c0_70 = arith.constant 0 : index
    %103 = vector.load %arg2[%c4, %c0_69, %c0_70] : memref<6x384x128xbf16, #tpu.memory_space<vmem>>, vector<1x384x128xbf16>
    %104 = vector.shape_cast %103 : vector<1x384x128xbf16> to vector<384x128xbf16>
    %cst_71 = arith.constant dense<0.000000e+00> : vector<34x128xf32>
    %105 = tpu.matmul %102, %104, %cst_71 {dimension_numbers = #tpu.dot_dimension_numbers<[1], [0], [0], [1], [0, 0, 1, 1], [], []>} : vector<34x384xbf16>, vector<384x128xbf16>, vector<34x128xf32> -> vector<34x128xf32>
    %106 = tpu.concatenate %22, %105, %22 in 0 : vector<1x128xf32>, vector<34x128xf32>, vector<1x128xf32> -> vector<36x128xf32>
    %cst_72 = arith.constant 0.000000e+00 : f32
    %107 = vector.broadcast %cst_72 : f32 to vector<36x128xf32>
    %108 = arith.maximumf %106, %107 : vector<36x128xf32>
    %cst_73 = arith.constant 0.000000e+00 : f32
    %109 = vector.shape_cast %21 : vector<36x1xi1> to vector<36x1xi1>
    %110 = vector.broadcast %109 : vector<36x1xi1> to vector<36x128xi1>
    %111 = vector.broadcast %cst_73 : f32 to vector<36x128xf32>
    %112 = arith.select %110, %108, %111 : vector<36x128xi1>, vector<36x128xf32>
    %113 = arith.truncf %112 : vector<36x128xf32> to vector<36x128xbf16>
    %c0_74 = arith.constant 0 : index
    %c0_75 = arith.constant 0 : index
    %114 = vector.load %arg4[%c0_74, %c0_75] : memref<36x128xbf16, #tpu.memory_space<vmem>>, vector<36x128xbf16>
    tpu.vector_store %arg4[%c0_74, %c0_75], %113 {strides = array<i32>} : memref<36x128xbf16, #tpu.memory_space<vmem>>, vector<36x128xbf16>,
    %c0_76 = arith.constant 0 : index
    %c0_77 = arith.constant 0 : index
    %115 = vector.load %arg4[%c0_76, %c0_77] : memref<36x128xbf16, #tpu.memory_space<vmem>>, vector<34x128xbf16>
    %c1_78 = arith.constant 1 : index
    %c0_79 = arith.constant 0 : index
    %116 = vector.load %arg4[%c1_78, %c0_79] : memref<36x128xbf16, #tpu.memory_space<vmem>>, vector<34x128xbf16>
    %c2_80 = arith.constant 2 : index
    %c0_81 = arith.constant 0 : index
    %117 = vector.load %arg4[%c2_80, %c0_81] : memref<36x128xbf16, #tpu.memory_space<vmem>>, vector<34x128xbf16>
    %118 = tpu.concatenate %115, %116, %117 in 1 : vector<34x128xbf16>, vector<34x128xbf16>, vector<34x128xbf16> -> vector<34x384xbf16>
    %c5 = arith.constant 5 : index
    %c0_82 = arith.constant 0 : index
    %c0_83 = arith.constant 0 : index
    %119 = vector.load %arg2[%c5, %c0_82, %c0_83] : memref<6x384x128xbf16, #tpu.memory_space<vmem>>, vector<1x384x128xbf16>
    %120 = vector.shape_cast %119 : vector<1x384x128xbf16> to vector<384x128xbf16>
    %cst_84 = arith.constant dense<0.000000e+00> : vector<34x128xf32>
    %121 = tpu.matmul %118, %120, %cst_84 {dimension_numbers = #tpu.dot_dimension_numbers<[1], [0], [0], [1], [0, 0, 1, 1], [], []>} : vector<34x384xbf16>, vector<384x128xbf16>, vector<34x128xf32> -> vector<34x128xf32>
    %122 = tpu.concatenate %22, %121, %22 in 0 : vector<1x128xf32>, vector<34x128xf32>, vector<1x128xf32> -> vector<36x128xf32>
    %123 = arith.addf %122, %90 : vector<36x128xf32>
    %c0_85 = arith.constant 0 : index
    %c0_86 = arith.constant 0 : index
    %c0_87 = arith.constant 0 : index
    %124 = vector.load %arg3[%c0_85, %c0_86, %c0_87] : memref<1x36x128xf32, #tpu.memory_space<vmem>>, vector<1x36x128xf32>
    %125 = vector.shape_cast %124 : vector<1x36x128xf32> to vector<36x128xf32>
    %126 = vector.shape_cast %123 : vector<36x128xf32> to vector<1x36x128xf32>
    tpu.vector_store %arg3[%c0_85, %c0_86, %c0_87], %126 {strides = array<i32>} : memref<1x36x128xf32, #tpu.memory_space<vmem>>, vector<1x36x128xf32>,
    return
  }
  func.func @transform_0(%arg0: i32) -> (i32, i32, i32) {
    %c0_i32 = arith.constant 0 : i32
    %c0_i32_0 = arith.constant 0 : i32
    %c0_i32_1 = arith.constant 0 : i32
    return %arg0, %c0_i32, %c0_i32_0 : i32, i32, i32
  }
  func.func @transform_1(%arg0: i32) -> (i32, i32, i32) {
    %c0_i32 = arith.constant 0 : i32
    %c0_i32_0 = arith.constant 0 : i32
    %c0_i32_1 = arith.constant 0 : i32
    %c0_i32_2 = arith.constant 0 : i32
    return %c0_i32, %c0_i32_0, %c0_i32_1 : i32, i32, i32
  }
  func.func @transform_2(%arg0: i32) -> (i32, i32, i32) {
    %c0_i32 = arith.constant 0 : i32
    %c0_i32_0 = arith.constant 0 : i32
    %c0_i32_1 = arith.constant 0 : i32
    return %arg0, %c0_i32, %c0_i32_0 : i32, i32, i32
  }
}

</mosaic_0001>

<bundles_post_ra>
// kernel: tpu_custom_call.1
= control target key start
LH: loop header
LB: loop body
LE: loop exit
PB: predicated region body
PF: predicated region fallthrough
CT: control target
= control target key end

     0   :  { %7 = vsyncpa [#allocation4], 0  ;;  %s3676_s9 = smov [#allocation3]   ;;  %s4051_s0 = inlined_call_operand.vmem [shape: f32[1,36,128], index: 0, kind: input, shape index: {}]   ;;  %s4052_s1 = inlined_call_operand.hbm [shape: bf16[6,384,128], index: 1, kind: input, shape index: {}]   ;;  %s4053_s2 = inlined_call_operand.vmem [shape: f32[1,36,128], index: 2, kind: output, shape index: {}]  }
   0x1   :  { %s15_s10 = sshll.u32 %s3676_s9, 4  ;;  %s3652_s13 = scalar_lea.hbm %s4052_s1, 18432  ;;  %s16_s10 = int_to_ptr.vmem [resolvable:$true] %s15_s10 }
   0x2   :  { %p3653_p0 = scmp.ne.s32.totalorder %s4052_s1, %s3652_s13  ;;  %p3656_p1 = scmp.lt.u32.totalorder %s3652_s13, %s4052_s1 }
   0x4   :  { %p3658_p2 = pnand %p3656_p1, %p3653_p0 }
   0x6   :  { %3661 = shalt.err (!%p3658_p2)
}
   0x7   :  { %s3662_s18 = scalar_lea.vmem %s16_s10, 18432  ;;  %p3667_p4 = scmp.lt.s32.totalorder %s16_s10, %s16_s10 }
   0x8   :  { %p3663_p3 = scmp.ne.s32.totalorder %s16_s10, %s3662_s18  ;;  %p3668_p5 = scmp.lt.s32.totalorder %s3662_s18, %s3662_s18 }
   0xa   :  { %p3669_p6 = por %p3668_p5, %p3667_p4 }
   0xc   :  { %p3670_p7 = pnand %p3669_p6, %p3663_p3 }
   0xe   :  { %3673 = shalt.err (!%p3670_p7)
}
   0xf   :  { %s3677_s19 = smov 64   ;;  %s3678_s20 = smov 4  }
  0x10   :  { %21 = dma.hbm_to_vmem [thread:$0]  %s4052_s1, 18432, %s16_s10, [#allocation4], %s3677_s19, %s3677_s19, %s3678_s20  }
  0x11   :  { %3674 = dma.done.wait [#allocation4], 18432  }
  0x12   :  { %3675 = vsyncadd [#allocation4], 4294948864  ;;  %v26_v0 = vlaneseq  ;;  %v3679_v1 = vmov 0.0   ;;  %vm3680_vm0 = vmmov 0   ;;  %v3473_v11 = vld [vmem:[#allocation3 + $0x40] sm:$0xff]   ;;  %v3476_v14 = vld [vmem:[#allocation3 + $0x48] sm:$0xff]  }
  0x13   :  { %3290 = vmatprep.subr.bf16.mxu1 %v3679_v1  ;;  %3306 = vmatprep.mubr.msk.bf16.mxu1 %vm3680_vm0, %v3679_v1  ;;  %v3474_v12 = vld [vmem:[#allocation3] sm:$0xff]   ;;  %v3477_v15 = vld [vmem:[#allocation3 + $0x8] sm:$0xff]   ;;  %v3479_v19 = vld [vmem:[#allocation3 + $0x50] sm:$0xff]  }
  0x14   :  { %v27_v2 = vshrl.u32 %v26_v0, 7  ;;  %3020 = vmatprep.subr.bf16.mxu0 %v3473_v11  ;;  %v3475_v13 = vld [vmem:[#allocation3 + $0x80] sm:$0xff]   ;;  %v3478_v17 = vld [vmem:[#allocation3 + $0x88] sm:$0xff]   ;;  %v3480_v21 = vld [vmem:[#allocation3 + $0x10] sm:$0xff]  }
  0x15   :  { %3021 = vmatpush3.bf16.msra.mxu0 %v3474_v12  ;;  %3291 = vmatpush3.bf16.msra.mxu1 %v3475_v13  ;;  %v3481_v22 = vld [vmem:[#allocation3 + $0x90] sm:$0xff]   ;;  %v3482_v24 = vld [vmem:[#allocation3 + $0x58] sm:$0xff]   ;;  %v3485_v29 = vld [vmem:[#allocation3 + $0x60] sm:$0xff]  }
  0x16   :  { %v28_v3 = vadd.s32 8, %v27_v2  ;;  %v29_v4 = vadd.s32 16, %v27_v2  ;;  %v3711_v5 = vmul.u32.u64.low 3817748708, %v27_v2  ;;  %v3712_v6 = vmul.u32.u64.high 3817748708, %v27_v2, %v3711_v5  ;;  %3022 = vmatprep.subr.bf16.mxu0 %v3476_v14  ;;  %3292 = vmatprep.subr.bf16.mxu1 %v3679_v1  ;;  %v3483_v26 = vld [vmem:[#allocation3 + $0x18] sm:$0xff]   ;;  %v3486_v32 = vld [vmem:[#allocation3 + $0x20] sm:$0xff]  }
  0x17   :  { %v3484_v28 = vld [vmem:[#allocation3 + $0x98] sm:$0xff]   ;;  %v3726_v33 = vadd.s32 24, %v27_v2  ;;  %v3487_v35 = vld [vmem:[#allocation3 + $0xa0] sm:$0xff]   ;;  %v3728_v36 = vadd.s32 32, %v27_v2  ;;  %v3488_v37 = vld [vmem:[#allocation3 + $0x68] sm:$0xff]  }
  0x18   :  { %v3714_v7 = vmul.u32.u64.low 3817748708, %v28_v3  ;;  %v3715_v8 = vmul.u32.u64.high 3817748708, %v28_v3, %v3714_v7  ;;  %v3717_v9 = vmul.u32.u64.low 3817748708, %v29_v4  ;;  %v3718_v10 = vmul.u32.u64.high 3817748708, %v29_v4, %v3717_v9  ;;  %v3489_v38 = vld [vmem:[#allocation3 + $0x28] sm:$0xff]   ;;  %v3491_v40 = vld [vmem:[#allocation3 + $0x70] sm:$0xff]  }
  0x19   :  { %v38_v16 = vshrl.u32 %v3712_v6, 4  ;;  %3023 = vmatpush3.bf16.msra.mxu0 %v3477_v15  ;;  %3293 = vmatpush3.bf16.msra.mxu1 %v3478_v17  ;;  %v3490_v39 = vld [vmem:[#allocation3 + $0xa8] sm:$0xff]   ;;  %v3492_v41 = vld [vmem:[#allocation3 + $0x30] sm:$0xff]   ;;  %v3494_v45 = vld [vmem:[#allocation3 + $0x78] sm:$0xff]   ;;  %v3733_v47 = vmul.u32.u64.low 3817748708, %v3726_v33  ;;  %v3734_v48 = vmul.u32.u64.high 3817748708, %v3726_v33, %v3733_v47 }
  0x1a   :  { %v49_v18 = vshrl.u32 %v3715_v8, 4  ;;  %v60_v20 = vshrl.u32 %v3718_v10, 4  ;;  %3024 = vmatprep.subr.bf16.mxu0 %v3479_v19  ;;  %3294 = vmatprep.subr.bf16.mxu1 %v3679_v1  ;;  %v3493_v43 = vld [vmem:[#allocation3 + $0xb0] sm:$0xff]   ;;  %v3745_v51 = vmul.u32.u64.low 3817748708, %v3728_v36  ;;  %v3746_v52 = vmul.u32.u64.high 3817748708, %v3728_v36, %v3745_v51  ;;  %v3495_v56 = vld [vmem:[#allocation3 + $0x38] sm:$0xff]  }
  0x1b   :  { %v39_v23 = vmul.u32 18, %v38_v16  ;;  %v127_v49 = vld [vmem:[%s4051_s0] sm:$0xff]  ;;  %v128_v50 = vld [vmem:[%s4051_s0 + $0x8] sm:$0xff]  ;;  %v129_v61 = vld [vmem:[%s4051_s0 + $0x10] sm:$0xff]  ;;  %v71_v62 = vshrl.u32 %v3734_v48, 4 }
  0x1c   :  { %v50_v25 = vmul.u32 18, %v49_v18  ;;  %v61_v27 = vmul.u32 18, %v60_v20  ;;  %v132_v54 = vmax.f32 %v127_v49, 0.0  ;;  %v133_v55 = vmax.f32 %v128_v50, 0.0  ;;  %v3496_v57 = vld [vmem:[#allocation3 + $0xb8] sm:$0xff]   ;;  %v130_v5 = vld [vmem:[%s4051_s0 + $0x18] sm:$0xff] }
  0x1d   :  { %3025 = vmatpush3.bf16.msra.mxu0 %v3480_v21  ;;  %3295 = vmatpush3.bf16.msra.mxu1 %v3481_v22  ;;  %v40_v30 = vsub.s32 %v27_v2, %v39_v23  ;;  %v134_v8 = vmax.f32 %v129_v61, 0.0  ;;  %v131_v10 = vld [vmem:[%s4051_s0 + $0x20] sm:$0xf]  ;;  %v135_v14 = vmax.f32 %v130_v5, 0.0  ;;  %v3509_v61 = vld [vmem:[#allocation3 + $0x110] sm:$0xff]   ;;  %v3515_v5 = vld [vmem:[#allocation3 + $0x120] sm:$0xff]  }
  0x1e   :  { %3026 = vmatprep.subr.bf16.mxu0 %v3482_v24  ;;  %3296 = vmatprep.subr.bf16.mxu1 %v3679_v1  ;;  %v51_v31 = vsub.s32 %v28_v3, %v50_v25  ;;  %v62_v34 = vsub.s32 %v29_v4, %v61_v27  ;;  %v82_v3 = vshrl.u32 %v3746_v52, 4  ;;  %v72_v4 = vmul.u32 18, %v71_v62  ;;  %v3510_v62 = vld [vmem:[#allocation3 + $0xd0] sm:$0xff]  }
  0x1f   :  { %vm87_vm1 = vcmp.ne.s32.totalorder %v40_v30, 0  ;;  %vm92_vm3 = vcmp.lt.s32.totalorder %v40_v30, 0  ;;  %v102_v42 = vadd.s32 18, %v40_v30  ;;  %v136_v18 = vmax.f32 %v131_v10, 0.0  ;;  %v3519_v10 = vld [vmem:[#allocation3 + $0xe8] sm:$0xff]  }
  0x20   :  { %vm88_vm2 = vcmp.ne.s32.totalorder %v51_v31, 0  ;;  %vm89_vm4 = vcmp.ne.s32.totalorder %v62_v34, 0  ;;  %vm93_vm5 = vcmp.lt.s32.totalorder %v51_v31, 0  ;;  %vm94_vm6 = vcmp.lt.s32.totalorder %v62_v34, 0  ;;  %vm97_vm7 = vmand %vm92_vm3, %vm87_vm1 }
  0x21   :  { %3027 = vmatpush3.bf16.msra.mxu0 %v3483_v26  ;;  %3297 = vmatpush3.bf16.msra.mxu1 %v3484_v28  ;;  %v103_v44 = vadd.s32 18, %v51_v31  ;;  %v104_v46 = vadd.s32 18, %v62_v34  ;;  %vm98_vm8 = vmand %vm93_vm5, %vm88_vm2  ;;  %v107_v53 = vsel %vm97_vm7, %v102_v42, %v40_v30  ;;  %v83_v9 = vmul.u32 18, %v82_v3  ;;  %v3513_v3 = vld [vmem:[#allocation3 + $0xd8] sm:$0xff]  }
  0x22   :  { %3028 = vmatprep.subr.bf16.mxu0 %v3485_v29  ;;  %3298 = vmatprep.subr.bf16.mxu1 %v3679_v1  ;;  %vm99_vm9 = vmand %vm94_vm6, %vm89_vm4  ;;  %vm112_vm10 = vcmp.ge.s32.totalorder %v107_v53, 1  ;;  %vm117_vm11 = vcmp.le.s32.totalorder %v107_v53, 16  ;;  %v73_v11 = vsub.s32 %v3726_v33, %v72_v4  ;;  %v3502_v53 = vld [vmem:[#allocation3 + $0x140] sm:$0xff]  }
  0x23   :  { %v108_v58 = vsel %vm98_vm8, %v103_v44, %v51_v31  ;;  %v109_v59 = vsel %vm99_vm9, %v104_v46, %v62_v34  ;;  %vm3753_vm14 = vmand %vm112_vm10, %vm117_vm11  ;;  %v84_v12 = vsub.s32 %v3728_v36, %v83_v9  ;;  %v3514_v4 = vld [vmem:[#allocation3 + $0x160] sm:$0xff]   ;;  %v3518_v9 = vld [vmem:[#allocation3 + $0x128] sm:$0xff]  }
  0x24   :  { %vm113_vm12 = vcmp.ge.s32.totalorder %v108_v58, 1  ;;  %vm118_vm13 = vcmp.le.s32.totalorder %v108_v58, 16  ;;  %vm114_vm15 = vcmp.ge.s32.totalorder %v109_v59, 1  ;;  %vm119_vm1 = vcmp.le.s32.totalorder %v109_v59, 16  ;;  %v3507_v58 = vld [vmem:[#allocation3 + $0xc8] sm:$0xff]   ;;  %v3508_v59 = vld [vmem:[#allocation3 + $0x150] sm:$0xff]  }
  0x25   :  { %3029 = vmatpush3.bf16.msra.mxu0 %v3486_v32  ;;  %3299 = vmatpush3.bf16.msra.mxu1 %v3487_v35  ;;  %vm3761_vm2 = vmand %vm113_vm12, %vm118_vm13  ;;  %v147_v0 = vsel %vm3753_vm14, %v132_v54, 0.0  ;;  %vm90_vm4 = vcmp.ne.s32.totalorder %v73_v11, 0  ;;  %vm95_vm5 = vcmp.lt.s32.totalorder %v73_v11, 0  ;;  %v105_v13 = vadd.s32 18, %v73_v11  ;;  %v3503_v54 = vld [vmem:[#allocation3 + $0x100] sm:$0xff]  }
  0x26   :  { %3030 = vmatprep.subr.bf16.mxu0 %v3488_v37  ;;  %3300 = vmatprep.subr.bf16.mxu1 %v3679_v1  ;;  %v148_v2 = vsel %vm3761_vm2, %v133_v55, 0.0  ;;  %vm3774_vm3 = vmand %vm114_vm15, %vm119_vm1  ;;  %vm91_vm7 = vcmp.ne.s32.totalorder %v84_v12, 0  ;;  %vm96_vm8 = vcmp.lt.s32.totalorder %v84_v12, 0  ;;  %v106_v15 = vadd.s32 18, %v84_v12  ;;  %v3504_v55 = vld [vmem:[#allocation3 + $0xc0] sm:$0xff]  }
  0x27   :  { %v2957_v6 = vpack.c.bf16 %v148_v2, %v147_v0  ;;  %vm100_vm6 = vmand %vm95_vm5, %vm90_vm4  ;;  %v149_v17 = vsel %vm3774_vm3, %v134_v8, 0.0  ;;  %vm234_vm4 = vcmask 1046528   ;;  %vm204_vm5 = vsmask.f32 7424  ;;  %v3511_v0 = vld [vmem:[#allocation3 + $0x158] sm:$0xff]   ;;  %v3517_v8 = vld [vmem:[#allocation3 + $0x168] sm:$0xff]  }
  0x28   :  { %v110_v16 = vsel %vm100_vm6, %v105_v13, %v73_v11  ;;  %vm101_vm9 = vmand %vm96_vm8, %vm91_vm7  ;;  %v3512_v2 = vld [vmem:[#allocation3 + $0x118] sm:$0xff]   ;;  %v3520_v11 = vld [vmem:[#allocation3 + $0x170] sm:$0xff]   ;;  %vm552_vm6 = vcmask 1040384   ;;  %vm568_vm7 = vcmask 1042432  }
  0x29   :  { %3031 = vmatpush3.bf16.msra.mxu0 %v3489_v38  ;;  %3301 = vmatpush3.bf16.msra.mxu1 %v3490_v39  ;;  %2958 = vst [vmem:[#allocation2] sm:$0xff] %v2957_v6   ;;  %vm115_vm10 = vcmp.ge.s32.totalorder %v110_v16, 1  ;;  %vm120_vm11 = vcmp.le.s32.totalorder %v110_v16, 16  ;;  %v111_v19 = vsel %vm101_vm9, %v106_v15, %v84_v12  ;;  %v3516_v6 = vld [vmem:[#allocation3 + $0xe0] sm:$0xff]   ;;  %v3521_v12 = vld [vmem:[#allocation3 + $0x130] sm:$0xff]   ;;  %v3524_v15 = vld [vmem:[#allocation3 + $0x138] sm:$0xff]  }
  0x2a   :  { %3032 = vmatprep.subr.bf16.mxu0 %v3491_v40  ;;  %3302 = vmatprep.subr.bf16.mxu1 %v3679_v1  ;;  %vm3786_vm12 = vmand %vm115_vm10, %vm120_vm11  ;;  %vm116_vm13 = vcmp.ge.s32.totalorder %v111_v19, 1  ;;  %vm121_vm15 = vcmp.le.s32.totalorder %v111_v19, 16  ;;  %v3522_v13 = vld [vmem:[#allocation3 + $0xf0] sm:$0xff]   ;;  %v3525_v16 = vld [vmem:[#allocation3 + $0xf8] sm:$0xff]  }
  0x2b   :  { %v150_v21 = vsel %vm3786_vm12, %v135_v14, 0.0  ;;  %vm3792_vm1 = vmand %vm116_vm13, %vm121_vm15  ;;  %v3523_v14 = vld [vmem:[#allocation3 + $0x178] sm:$0xff]  }
  0x2c   :  { %v2962_v25 = vpack.c.bf16 %v150_v21, %v149_v17  ;;  %v151_v28 = vsel %vm3792_vm1, %v136_v18, 0.0 }
  0x2d   :  { %3033 = vmatpush3.bf16.msra.mxu0 %v3492_v41  ;;  %3303 = vmatpush3.bf16.msra.mxu1 %v3493_v43  ;;  %v2928_v29 = vpack.c.bf16 %v151_v28, %v151_v28 }
  0x2e   :  { %3034 = vmatprep.subr.bf16.mxu0 %v3494_v45  ;;  %3304 = vmatprep.subr.bf16.mxu1 %v3679_v1  ;;  %3014 = vst [vmem:[#allocation2 + $0x8] sm:$0xff] %v2962_v25  }
  0x2f   :  { %177 = vst [vmem:[#allocation2 + $0x10] sm:$0x3] %v2928_v29 }
  0x30   :  { %v178_v22 = vld [vmem:[#allocation2] sm:$0xf]  ;;  %v179_v23 = vld [vmem:[#allocation2 + $0x4] sm:$0xf] }
  0x31   :  { %3035 = vmatpush3.bf16.msra.mxu0 %v3495_v56  ;;  %3305 = vmatpush3.bf16.msra.mxu1 %v3496_v57  ;;  %v2725_v26 = vcombine.low %v178_v22, %v179_v23  ;;  %v184_v27 = vld [vmem:[#allocation2] sm:$0xe] }
  0x32   :  { %3318 = vmatprep.subr.bf16.mxu1 %v3679_v1  ;;  %v2729_v33 = vcombine.low %v184_v27, %v179_v23  ;;  %3065 = vmatprep.subr.bf16.mxu0 %v3503_v54  ;;  %v3505_v56 = vld [vmem:[#allocation3 + $0x148] sm:$0xff]  }
  0x33   :  { %v208_v30 = vshll.u32 %v2725_v26, 16  ;;  %v206_v31 = vshrl.u32 %v2725_v26, 16  ;;  %v3506_v57 = vld [vmem:[#allocation3 + $0x108] sm:$0xff]  }
  0x34   :  { %v235_v35 = vrot.slane %v2729_v33, 1 }
  0x35   :  { %v210_v32 = vrot.slane %v208_v30, 1  ;;  %v3498_v34 = vld [vmem:[#allocation2 + $0x8] sm:$0xff]  }
  0x36   :  { %v3500_v36 = vld [vmem:[#allocation2 + $0x10] ss:$0 sps:$4 sm:$0x33]   ;;  %v213_v38 = vshll.u32 %v3498_v34, 16  ;;  %v236_v39 = vrot.slane %v3498_v34, 1  ;;  %v217_v40 = vshrl.u32 %v3498_v34, 16 }
  0x37   :  { %v211_v37 = vor.u32 %v210_v32, %v206_v31  ;;  %v221_v41 = vshll.u32 %v3500_v36, 16  ;;  %v238_v44 = vrot.slane %v3500_v36, 1  ;;  %v225_v46 = vshrl.u32 %v3500_v36, 16  ;;  %v3501_v52 = vld [vmem:[#allocation2 + $0x10] ss:$0 sps:$4 sm:$0x11]  }
  0x38   :  { %v215_v42 = vrot.slane %v213_v38, 1  ;;  %v237_v43 = vsel %vm234_vm4, %v235_v35, %v236_v39 }
  0x39   :  { %3307 = vmatmul.mubr.bf16.vlgmr.msra.gmra.mrb[0].mxu1 %v237_v43  ;;  %v223_v45 = vrot.slane %v221_v41, 1  ;;  %v239_v50 = vsel %vm234_vm4, %v236_v39, %v238_v44 }
  0x3a   :  { %v216_v47 = vsel %vm204_vm5, %v211_v37, %v215_v42  ;;  %v219_v48 = vor.u32 %v217_v40, %v215_v42  ;;  %3310 = vmatprep.mubr.msk.bf16.mxu1 %vm3680_vm0, %v3679_v1  ;;  %3319 = vmatpush3.bf16.msra.mxu1 %v3502_v53 }
  0x3b   :  { %467 = vmatprep.mubr.bf16.mxu0 %v216_v47  ;;  %v227_v51 = vor.u32 %v225_v46, %v223_v45  ;;  %3320 = vmatprep.subr.bf16.mxu1 %v3679_v1 }
  0x3c   :  { %468 = vmatmul.mubr.bf16.vlgmr.msra.gmra.mrb[0].mxu0 %v2725_v26  ;;  %v224_v49 = vsel %vm204_vm5, %v219_v48, %v223_v45 }
  0x3d   :  { %475 = vmatprep.mubr.bf16.mxu0 %v224_v49  ;;  %3066 = vmatpush3.bf16.msra.mxu0 %v3504_v55 }
  0x3e   :  { %3321 = vmatpush3.bf16.msra.mxu1 %v3505_v56  ;;  %3067 = vmatprep.subr.bf16.mxu0 %v3506_v57 }
  0x3f   :  { %3322 = vmatprep.subr.bf16.mxu1 %v3679_v1 }
  0x41   :  { %3311 = vmatmul.mubr.bf16.gmra.mrb[4].mxu1 %v239_v50  ;;  %3068 = vmatpush3.bf16.msra.mxu0 %v3507_v58 }
  0x42   :  { %3314 = vmatprep.mubr.msk.bf16.mxu1 %vm3680_vm0, %v3679_v1  ;;  %3323 = vmatpush3.bf16.msra.mxu1 %v3508_v59 }
  0x43   :  { %3324 = vmatprep.subr.bf16.mxu1 %v3679_v1  ;;  %3069 = vmatprep.subr.bf16.mxu0 %v3509_v61 }
  0x44   :  { %476 = vmatmul.mubr.bf16.gmra.mrb[4].mxu0 %v3498_v34 }
  0x45   :  { %483 = vmatprep.mubr.bf16.mxu0 %v227_v51  ;;  %3070 = vmatpush3.bf16.msra.mxu0 %v3510_v62 }
  0x46   :  { %3325 = vmatpush3.bf16.msra.mxu1 %v3511_v0  ;;  %3071 = vmatprep.subr.bf16.mxu0 %v3512_v2 }
  0x47   :  { %3326 = vmatprep.subr.bf16.mxu1 %v3679_v1 }
  0x49   :  { %3315 = vmatmul.mubr.bf16.gmra.mrb[8].mxu1 %v238_v44  ;;  %3072 = vmatpush3.bf16.msra.mxu0 %v3513_v3 }
  0x4a   :  { %3334 = vmatprep.mubr.msk.bf16.mxu1 %vm3680_vm0, %v3679_v1  ;;  %3327 = vmatpush3.bf16.msra.mxu1 %v3514_v4 }
  0x4b   :  { %3328 = vmatprep.subr.bf16.mxu1 %v3679_v1  ;;  %3073 = vmatprep.subr.bf16.mxu0 %v3515_v5 }
  0x4c   :  { %484 = vmatmul.mubr.bf16.gmra.mrb[8].mxu0 %v3501_v52 }
  0x4d   :  { %3074 = vmatpush3.bf16.msra.mxu0 %v3516_v6 }
  0x4e   :  { %3329 = vmatpush3.bf16.msra.mxu1 %v3517_v8  ;;  %3075 = vmatprep.subr.bf16.mxu0 %v3518_v9 }
  0x4f   :  { %3330 = vmatprep.subr.bf16.mxu1 %v3679_v1 }
  0x51   :  { %3076 = vmatpush3.bf16.msra.mxu0 %v3519_v10 }
  0x52   :  { %3331 = vmatpush3.bf16.msra.mxu1 %v3520_v11  ;;  %3077 = vmatprep.subr.bf16.mxu0 %v3521_v12 }
  0x53   :  { %3332 = vmatprep.subr.bf16.mxu1 %v3679_v1 }
  0x55   :  { %3078 = vmatpush3.bf16.msra.mxu0 %v3522_v13 }
  0x56   :  { %3333 = vmatpush3.bf16.msra.mxu1 %v3523_v14  ;;  %3079 = vmatprep.subr.bf16.mxu0 %v3524_v15 }
  0x57   :  { %3346 = vmatprep.subr.bf16.mxu1 %v3679_v1 }
  0x59   :  { %3080 = vmatpush3.bf16.msra.mxu0 %v3525_v16 }
 0x10c   :  { %v525_v17 = vpop.f32.mrb[0].mxu1 }
 0x10d   :  { %v3308_v18 = vpop.f32.mrb[1].mxu1 }
 0x10e   :  { %v528_v19 = vpop.f32.mrb[2].mxu1 }
 0x10f   :  { %v3036_v21 = vpop.f32.mrb[0].mxu0  ;;  %v3309_v22 = vpop.f32.mrb[3].mxu1 }
 0x110   :  { %v3037_v23 = vpop.f32.mrb[1].mxu0 }
 0x111   :  { %v3038_v25 = vadd.f32 %v3037_v23, %v3036_v21  ;;  %v3039_v26 = vpop.f32.mrb[2].mxu0 }
 0x112   :  { %v3040_v27 = vpop.f32.mrb[3].mxu0 }
 0x113   :  { %v526_v28 = vadd.f32 %v3038_v25, %v525_v17  ;;  %v3041_v29 = vadd.f32 %v3040_v27, %v3039_v26 }
 0x114   :  { %v533_v30 = vpop.f32.mrb[4].mxu1 }
 0x115   :  { %v553_v31 = vrot.slane %v526_v28, 7  ;;  %v529_v32 = vadd.f32 %v3041_v29, %v528_v19  ;;  %v3312_v33 = vpop.f32.mrb[5].mxu1 }
 0x116   :  { %v536_v34 = vpop.f32.mrb[6].mxu1 }
 0x117   :  { %v567_v35 = vsel %vm552_vm6, 0.0, %v553_v31  ;;  %v554_v36 = vrot.slane %v529_v32, 7  ;;  %v3042_v37 = vpop.f32.mrb[4].mxu0  ;;  %v3313_v38 = vpop.f32.mrb[7].mxu1 }
 0x118   :  { %v570_v39 = vmax.f32 %v567_v35, 0.0  ;;  %v3043_v40 = vpop.f32.mrb[5].mxu0 }
 0x119   :  { %v555_v41 = vsel %vm552_vm6, %v553_v31, %v554_v36  ;;  %v3044_v42 = vadd.f32 %v3043_v40, %v3042_v37  ;;  %v3045_v43 = vpop.f32.mrb[6].mxu0 }
 0x11a   :  { %v571_v44 = vmax.f32 %v555_v41, 0.0  ;;  %v3046_v45 = vpop.f32.mrb[7].mxu0  ;;  %v575_v48 = vsel %vm3753_vm14, %v570_v39, 0.0 }
 0x11b   :  { %v534_v46 = vadd.f32 %v3044_v42, %v533_v30  ;;  %v3047_v47 = vadd.f32 %v3046_v45, %v3045_v43 }
 0x11c   :  { %v576_v49 = vsel %vm3761_vm2, %v571_v44, 0.0  ;;  %v541_v50 = vpop.f32.mrb[8].mxu1 }
 0x11d   :  { %v2967_v51 = vpack.c.bf16 %v576_v49, %v575_v48  ;;  %v556_v52 = vrot.slane %v534_v46, 7  ;;  %v537_v53 = vadd.f32 %v3047_v47, %v536_v34  ;;  %v3316_v54 = vpop.f32.mrb[9].mxu1  ;;  %v3531_v46 = vld [vmem:[#allocation3 + $0x200] sm:$0xff]   ;;  %v3534_v49 = vld [vmem:[#allocation3 + $0x208] sm:$0xff]  }
 0x11e   :  { %v544_v55 = vpop.f32.mrb[10].mxu1  ;;  %v3532_v47 = vld [vmem:[#allocation3 + $0x1c0] sm:$0xff]   ;;  %v3539_v54 = vld [vmem:[#allocation3 + $0x190] sm:$0xff]  }
 0x11f   :  { %2968 = vst [vmem:[#allocation2] sm:$0xff] %v2967_v51   ;;  %v557_v56 = vsel %vm552_vm6, %v554_v36, %v556_v52  ;;  %v558_v57 = vrot.slane %v537_v53, 7  ;;  %v3048_v58 = vpop.f32.mrb[8].mxu0  ;;  %v3317_v59 = vpop.f32.mrb[11].mxu1  ;;  %v3533_v48 = vld [vmem:[#allocation3 + $0x180] sm:$0xff]   ;;  %3110 = vmatprep.subr.bf16.mxu0 %v3532_v47  ;;  %v3536_v51 = vld [vmem:[#allocation3 + $0x188] sm:$0xff]  }
 0x120   :  { %v572_v61 = vmax.f32 %v557_v56, 0.0  ;;  %v3049_v62 = vpop.f32.mrb[9].mxu0  ;;  %v3538_v53 = vld [vmem:[#allocation3 + $0x1d0] sm:$0xff]   ;;  %v3540_v55 = vld [vmem:[#allocation3 + $0x218] sm:$0xff]   ;;  %v3544_v59 = vld [vmem:[#allocation3 + $0x1e0] sm:$0xff]  }
 0x121   :  { %v559_v0 = vsel %vm552_vm6, %v556_v52, %v558_v57  ;;  %v3050_v2 = vadd.f32 %v3049_v62, %v3048_v58  ;;  %v3051_v3 = vpop.f32.mrb[10].mxu0  ;;  %v3537_v52 = vld [vmem:[#allocation3 + $0x210] sm:$0xff]   ;;  %v3541_v56 = vld [vmem:[#allocation3 + $0x1d8] sm:$0xff]   ;;  %v3543_v58 = vld [vmem:[#allocation3 + $0x220] sm:$0xff]  }
 0x122   :  { %v573_v4 = vmax.f32 %v559_v0, 0.0  ;;  %v3052_v5 = vpop.f32.mrb[11].mxu0  ;;  %v577_v8 = vsel %vm3774_vm3, %v572_v61, 0.0  ;;  %v3545_v61 = vld [vmem:[#allocation3 + $0x1a0] sm:$0xff]   ;;  %v3546_v62 = vld [vmem:[#allocation3 + $0x228] sm:$0xff]   ;;  %v3549_v3 = vld [vmem:[#allocation3 + $0x230] sm:$0xff]  }
 0x123   :  { %v542_v6 = vadd.f32 %v3050_v2, %v541_v50  ;;  %v3535_v50 = vld [vmem:[#allocation3 + $0x1c8] sm:$0xff]   ;;  %v3551_v5 = vld [vmem:[#allocation3 + $0x1b0] sm:$0xff]  }
 0x124   :  { %v578_v9 = vsel %vm3786_vm12, %v573_v4, 0.0  ;;  %v3547_v0 = vld [vmem:[#allocation3 + $0x1e8] sm:$0xff]   ;;  %v3550_v4 = vld [vmem:[#allocation3 + $0x1f0] sm:$0xff]  }
 0x125   :  { %v2972_v10 = vpack.c.bf16 %v578_v9, %v577_v8  ;;  %v560_v11 = vrot.slane %v542_v6, 7  ;;  %v3548_v2 = vld [vmem:[#allocation3 + $0x1a8] sm:$0xff]   ;;  %v3552_v6 = vld [vmem:[#allocation3 + $0x238] sm:$0xff]  }
 0x126   :  { %v607_v12 = vld [vmem:[#allocation2 + $0x4] sm:$0xf]  ;;  %v606_v13 = vld [vmem:[#allocation2] sm:$0xf]  ;;  %v3553_v8 = vld [vmem:[#allocation3 + $0x1f8] sm:$0xff]  }
 0x127   :  { %3015 = vst [vmem:[#allocation2 + $0x8] sm:$0xff] %v2972_v10   ;;  %v561_v14 = vsel %vm552_vm6, %v558_v57, %v560_v11  ;;  %v2759_v15 = vcombine.low %v606_v13, %v607_v12  ;;  %v612_v18 = vld [vmem:[#allocation2] sm:$0xe]  ;;  %v3542_v57 = vld [vmem:[#allocation3 + $0x198] sm:$0xff]  }
 0x128   :  { %v569_v16 = vsel %vm568_vm7, %v561_v14, 0.0  ;;  %v2763_v23 = vcombine.low %v612_v18, %v607_v12  ;;  %v3554_v9 = vld [vmem:[#allocation3 + $0x1b8] sm:$0xff]  }
 0x129   :  { %v574_v17 = vmax.f32 %v569_v16, 0.0  ;;  %v635_v19 = vshll.u32 %v2759_v15, 16  ;;  %v633_v29 = vshrl.u32 %v2759_v15, 16 }
 0x12a   :  { %v661_v27 = vrot.slane %v2763_v23, 1 }
 0x12b   :  { %v579_v21 = vsel %vm3792_vm1, %v574_v17, 0.0  ;;  %v637_v26 = vrot.slane %v635_v19, 1 }
 0x12c   :  { %v2933_v22 = vpack.c.bf16 %v579_v21, %v579_v21 }
 0x12d   :  { %v638_v32 = vor.u32 %v637_v26, %v633_v29 }
 0x12e   :  { %605 = vst [vmem:[#allocation2 + $0x10] sm:$0x3] %v2933_v22  ;;  %v3526_v25 = vld [vmem:[#allocation2 + $0x8] sm:$0xff]  }
 0x12f   :  { %v662_v28 = vrot.slane %v3526_v25, 1  ;;  %v640_v30 = vshll.u32 %v3526_v25, 16  ;;  %v644_v37 = vshrl.u32 %v3526_v25, 16 }
 0x131   :  { %v663_v31 = vsel %vm234_vm4, %v661_v27, %v662_v28  ;;  %v642_v33 = vrot.slane %v640_v30, 1 }
 0x132   :  { %3335 = vmatmul.mubr.bf16.vlgmr.msra.gmra.mrb[12].mxu1 %v663_v31 }
 0x133   :  { %v643_v34 = vsel %vm204_vm5, %v638_v32, %v642_v33  ;;  %3338 = vmatprep.mubr.msk.bf16.mxu1 %vm3680_vm0, %v3679_v1  ;;  %v646_v40 = vor.u32 %v644_v37, %v642_v33  ;;  %3347 = vmatpush3.bf16.msra.mxu1 %v3531_v46  ;;  %v3647_v32 = vld [vmem:[%s4051_s0] sm:$0xff] }
 0x134   :  { %894 = vmatprep.mubr.bf16.mxu0 %v643_v34  ;;  %3348 = vmatprep.subr.bf16.mxu1 %v3679_v1 }
 0x135   :  { %v3529_v35 = vld [vmem:[#allocation2 + $0x10] ss:$0 sps:$4 sm:$0x33]   ;;  %895 = vmatmul.mubr.bf16.vlgmr.msra.gmra.mrb[12].mxu0 %v2759_v15 }
 0x136   :  { %v664_v36 = vrot.slane %v3529_v35, 1  ;;  %v648_v38 = vshll.u32 %v3529_v35, 16  ;;  %v652_v43 = vshrl.u32 %v3529_v35, 16  ;;  %v3530_v45 = vld [vmem:[#allocation2 + $0x10] ss:$0 sps:$4 sm:$0x11]   ;;  %3111 = vmatpush3.bf16.msra.mxu0 %v3533_v48 }
 0x137   :  { %3349 = vmatpush3.bf16.msra.mxu1 %v3534_v49  ;;  %3112 = vmatprep.subr.bf16.mxu0 %v3535_v50 }
 0x138   :  { %v665_v39 = vsel %vm234_vm4, %v662_v28, %v664_v36  ;;  %v650_v41 = vrot.slane %v648_v38, 1  ;;  %3350 = vmatprep.subr.bf16.mxu1 %v3679_v1 }
 0x13a   :  { %3339 = vmatmul.mubr.bf16.gmra.mrb[16].mxu1 %v665_v39  ;;  %v651_v42 = vsel %vm204_vm5, %v646_v40, %v650_v41  ;;  %v654_v44 = vor.u32 %v652_v43, %v650_v41  ;;  %3113 = vmatpush3.bf16.msra.mxu0 %v3536_v51  ;;  %v3648_v39 = vld [vmem:[%s4051_s0 + $0x8] sm:$0xff] }
 0x13b   :  { %902 = vmatprep.mubr.bf16.mxu0 %v651_v42  ;;  %3342 = vmatprep.mubr.msk.bf16.mxu1 %vm3680_vm0, %v3679_v1 }
 0x13c   :  { %3351 = vmatpush3.bf16.msra.mxu1 %v3537_v52  ;;  %3114 = vmatprep.subr.bf16.mxu0 %v3538_v53 }
 0x13d   :  { %903 = vmatmul.mubr.bf16.gmra.mrb[16].mxu0 %v3526_v25  ;;  %3352 = vmatprep.subr.bf16.mxu1 %v3679_v1 }
 0x13e   :  { %910 = vmatprep.mubr.bf16.mxu0 %v654_v44  ;;  %3115 = vmatpush3.bf16.msra.mxu0 %v3539_v54 }
 0x13f   :  { %3116 = vmatprep.subr.bf16.mxu0 %v3541_v56 }
 0x140   :  { %3353 = vmatpush3.bf16.msra.mxu1 %v3540_v55 }
 0x141   :  { %3354 = vmatprep.subr.bf16.mxu1 %v3679_v1 }
 0x142   :  { %3343 = vmatmul.mubr.bf16.gmra.mrb[20].mxu1 %v664_v36  ;;  %3117 = vmatpush3.bf16.msra.mxu0 %v3542_v57  ;;  %v3649_v57 = vld [vmem:[%s4051_s0 + $0x10] sm:$0xff] }
 0x143   :  { %3362 = vmatprep.mubr.msk.bf16.mxu1 %vm3680_vm0, %v3679_v1  ;;  %3118 = vmatprep.subr.bf16.mxu0 %v3544_v59 }
 0x144   :  { %3355 = vmatpush3.bf16.msra.mxu1 %v3543_v58 }
 0x145   :  { %911 = vmatmul.mubr.bf16.gmra.mrb[20].mxu0 %v3530_v45  ;;  %3356 = vmatprep.subr.bf16.mxu1 %v3679_v1 }
 0x146   :  { %3119 = vmatpush3.bf16.msra.mxu0 %v3545_v61 }
 0x147   :  { %3120 = vmatprep.subr.bf16.mxu0 %v3547_v0 }
 0x148   :  { %3357 = vmatpush3.bf16.msra.mxu1 %v3546_v62 }
 0x149   :  { %3358 = vmatprep.subr.bf16.mxu1 %v3679_v1 }
 0x14a   :  { %3121 = vmatpush3.bf16.msra.mxu0 %v3548_v2 }
 0x14b   :  { %3122 = vmatprep.subr.bf16.mxu0 %v3550_v4 }
 0x14c   :  { %3359 = vmatpush3.bf16.msra.mxu1 %v3549_v3  ;;  %v3650_v3 = vld [vmem:[%s4051_s0 + $0x18] sm:$0xff] }
 0x14d   :  { %3360 = vmatprep.subr.bf16.mxu1 %v3679_v1 }
 0x14e   :  { %3123 = vmatpush3.bf16.msra.mxu0 %v3551_v5 }
 0x14f   :  { %3124 = vmatprep.subr.bf16.mxu0 %v3553_v8 }
 0x150   :  { %3361 = vmatpush3.bf16.msra.mxu1 %v3552_v6 }
 0x151   :  { %3374 = vmatprep.subr.bf16.mxu1 %v3679_v1 }
 0x152   :  { %3125 = vmatpush3.bf16.msra.mxu0 %v3554_v9 }
 0x205   :  { %v952_v10 = vpop.f32.mrb[12].mxu1 }
 0x206   :  { %v3336_v11 = vpop.f32.mrb[13].mxu1 }
 0x207   :  { %v955_v12 = vpop.f32.mrb[14].mxu1 }
 0x208   :  { %v3081_v13 = vpop.f32.mrb[12].mxu0  ;;  %v3337_v14 = vpop.f32.mrb[15].mxu1 }
 0x209   :  { %v3082_v15 = vpop.f32.mrb[13].mxu0 }
 0x20a   :  { %v3083_v16 = vadd.f32 %v3082_v15, %v3081_v13  ;;  %v3084_v17 = vpop.f32.mrb[14].mxu0 }
 0x20b   :  { %v3085_v18 = vpop.f32.mrb[15].mxu0 }
 0x20c   :  { %v953_v19 = vadd.f32 %v3083_v16, %v952_v10  ;;  %v3086_v21 = vadd.f32 %v3085_v18, %v3084_v17  ;;  %v3651_v16 = vld [vmem:[%s4051_s0 + $0x20] sm:$0xf] }
 0x20d   :  { %v960_v22 = vpop.f32.mrb[16].mxu1 }
 0x20e   :  { %v979_v23 = vrot.slane %v953_v19, 7  ;;  %v956_v25 = vadd.f32 %v3086_v21, %v955_v12  ;;  %v3340_v26 = vpop.f32.mrb[17].mxu1 }
 0x20f   :  { %v963_v27 = vpop.f32.mrb[18].mxu1 }
 0x210   :  { %v993_v28 = vsel %vm552_vm6, 0.0, %v979_v23  ;;  %v980_v29 = vrot.slane %v956_v25, 7  ;;  %v3087_v30 = vpop.f32.mrb[16].mxu0  ;;  %v3341_v31 = vpop.f32.mrb[19].mxu1 }
 0x211   :  { %v3854_v33 = vadd.f32 %v3647_v32, %v993_v28  ;;  %v3088_v34 = vpop.f32.mrb[17].mxu0 }
 0x212   :  { %v981_v35 = vsel %vm552_vm6, %v979_v23, %v980_v29  ;;  %v3089_v36 = vadd.f32 %v3088_v34, %v3087_v30  ;;  %v3090_v37 = vpop.f32.mrb[18].mxu0 }
 0x213   :  { %v1000_v38 = vmax.f32 %v3854_v33, 0.0  ;;  %v3861_v40 = vadd.f32 %v3648_v39, %v981_v35  ;;  %v3091_v41 = vpop.f32.mrb[19].mxu0 }
 0x214   :  { %v961_v42 = vadd.f32 %v3089_v36, %v960_v22  ;;  %v3092_v43 = vadd.f32 %v3091_v41, %v3090_v37 }
 0x215   :  { %v1001_v44 = vmax.f32 %v3861_v40, 0.0  ;;  %v968_v45 = vpop.f32.mrb[20].mxu1  ;;  %v1005_v49 = vsel %vm3753_vm14, %v1000_v38, 0.0 }
 0x216   :  { %v982_v46 = vrot.slane %v961_v42, 7  ;;  %v964_v47 = vadd.f32 %v3092_v43, %v963_v27  ;;  %v3344_v48 = vpop.f32.mrb[21].mxu1 }
 0x217   :  { %v1006_v50 = vsel %vm3761_vm2, %v1001_v44, 0.0  ;;  %v971_v51 = vpop.f32.mrb[22].mxu1 }
 0x218   :  { %v2977_v52 = vpack.c.bf16 %v1006_v50, %v1005_v49  ;;  %v983_v53 = vsel %vm552_vm6, %v980_v29, %v982_v46  ;;  %v984_v54 = vrot.slane %v964_v47, 7  ;;  %v3093_v55 = vpop.f32.mrb[20].mxu0  ;;  %v3345_v56 = vpop.f32.mrb[23].mxu1  ;;  %v3560_v51 = vld [vmem:[#allocation3 + $0x2c0] sm:$0xff]  }
 0x219   :  { %v3872_v58 = vadd.f32 %v3649_v57, %v983_v53  ;;  %v3094_v59 = vpop.f32.mrb[21].mxu0  ;;  %v3562_v53 = vld [vmem:[#allocation3 + $0x240] sm:$0xff]   ;;  %v3565_v56 = vld [vmem:[#allocation3 + $0x248] sm:$0xff]   ;;  %v3566_v57 = vld [vmem:[#allocation3 + $0x2d0] sm:$0xff]  }
 0x21a   :  { %2978 = vst [vmem:[#allocation2] sm:$0xff] %v2977_v52   ;;  %v985_v61 = vsel %vm552_vm6, %v982_v46, %v984_v54  ;;  %v3095_v62 = vadd.f32 %v3094_v59, %v3093_v55  ;;  %v3096_v0 = vpop.f32.mrb[22].mxu0  ;;  %v3561_v52 = vld [vmem:[#allocation3 + $0x280] sm:$0xff]   ;;  %v3564_v55 = vld [vmem:[#allocation3 + $0x288] sm:$0xff]   ;;  %v3567_v59 = vld [vmem:[#allocation3 + $0x290] sm:$0xff]  }
 0x21b   :  { %v1002_v2 = vmax.f32 %v3872_v58, 0.0  ;;  %v3879_v4 = vadd.f32 %v3650_v3, %v985_v61  ;;  %v3097_v5 = vpop.f32.mrb[23].mxu0  ;;  %3155 = vmatprep.subr.bf16.mxu0 %v3561_v52  ;;  %v3568_v61 = vld [vmem:[#allocation3 + $0x250] sm:$0xff]   ;;  %v3570_v0 = vld [vmem:[#allocation3 + $0x298] sm:$0xff]   ;;  %v3572_v3 = vld [vmem:[#allocation3 + $0x2e0] sm:$0xff]  }
 0x21c   :  { %v969_v6 = vadd.f32 %v3095_v62, %v968_v45  ;;  %v3569_v62 = vld [vmem:[#allocation3 + $0x2d8] sm:$0xff]   ;;  %v3573_v5 = vld [vmem:[#allocation3 + $0x2a0] sm:$0xff]  }
 0x21d   :  { %v1003_v8 = vmax.f32 %v3879_v4, 0.0  ;;  %v1007_v10 = vsel %vm3774_vm3, %v1002_v2, 0.0  ;;  %v3571_v2 = vld [vmem:[#allocation3 + $0x258] sm:$0xff]  }
 0x21e   :  { %v986_v9 = vrot.slane %v969_v6, 7  ;;  %v3574_v6 = vld [vmem:[#allocation3 + $0x260] sm:$0xff]  }
 0x21f   :  { %v1008_v11 = vsel %vm3786_vm12, %v1003_v8, 0.0  ;;  %v3575_v8 = vld [vmem:[#allocation3 + $0x2e8] sm:$0xff]  }
 0x220   :  { %v2982_v12 = vpack.c.bf16 %v1008_v11, %v1007_v10  ;;  %v987_v13 = vsel %vm552_vm6, %v984_v54, %v986_v9  ;;  %v3563_v54 = vld [vmem:[#allocation3 + $0x2c8] sm:$0xff]   ;;  %v3578_v11 = vld [vmem:[#allocation3 + $0x2f0] sm:$0xff]  }
 0x221   :  { %v994_v14 = vsel %vm568_vm7, %v987_v13, 0.0  ;;  %v1037_v15 = vld [vmem:[#allocation2 + $0x4] sm:$0xf]  ;;  %v1036_v18 = vld [vmem:[#allocation2] sm:$0xf] }
 0x222   :  { %3016 = vst [vmem:[#allocation2 + $0x8] sm:$0xff] %v2982_v12   ;;  %v3891_v17 = vadd.f32 %v3651_v16, %v994_v14  ;;  %v2793_v19 = vcombine.low %v1036_v18, %v1037_v15  ;;  %v1042_v22 = vld [vmem:[#allocation2] sm:$0xe]  ;;  %v3579_v12 = vld [vmem:[#allocation3 + $0x2b0] sm:$0xff]   ;;  %v3581_v14 = vld [vmem:[#allocation3 + $0x2f8] sm:$0xff]  }
 0x223   :  { %v2797_v27 = vcombine.low %v1042_v22, %v1037_v15  ;;  %v3576_v9 = vld [vmem:[#allocation3 + $0x2a8] sm:$0xff]   ;;  %v3580_v13 = vld [vmem:[#allocation3 + $0x270] sm:$0xff]   ;;  %v3582_v15 = vld [vmem:[#allocation3 + $0x2b8] sm:$0xff]  }
 0x224   :  { %v1004_v21 = vmax.f32 %v3891_v17, 0.0  ;;  %v1065_v23 = vshll.u32 %v2793_v19, 16  ;;  %v1063_v32 = vshrl.u32 %v2793_v19, 16  ;;  %v3577_v10 = vld [vmem:[#allocation3 + $0x268] sm:$0xff]   ;;  %v3583_v16 = vld [vmem:[#allocation3 + $0x278] sm:$0xff]  }
 0x225   :  { %v1091_v30 = vrot.slane %v2797_v27, 1 }
 0x226   :  { %v1009_v25 = vsel %vm3792_vm1, %v1004_v21, 0.0  ;;  %v1067_v29 = vrot.slane %v1065_v23, 1 }
 0x227   :  { %v2938_v26 = vpack.c.bf16 %v1009_v25, %v1009_v25 }
 0x228   :  { %v1068_v36 = vor.u32 %v1067_v29, %v1063_v32 }
 0x229   :  { %1035 = vst [vmem:[#allocation2 + $0x10] sm:$0x3] %v2938_v26  ;;  %v3555_v28 = vld [vmem:[#allocation2 + $0x8] sm:$0xff]  }
 0x22a   :  { %v1092_v31 = vrot.slane %v3555_v28, 1  ;;  %v1070_v34 = vshll.u32 %v3555_v28, 16  ;;  %v1074_v42 = vshrl.u32 %v3555_v28, 16 }
 0x22c   :  { %v1093_v35 = vsel %vm234_vm4, %v1091_v30, %v1092_v31  ;;  %v1072_v37 = vrot.slane %v1070_v34, 1 }
 0x22d   :  { %3363 = vmatmul.mubr.bf16.vlgmr.msra.gmra.mrb[24].mxu1 %v1093_v35 }
 0x22e   :  { %v1073_v38 = vsel %vm204_vm5, %v1068_v36, %v1072_v37  ;;  %3366 = vmatprep.mubr.msk.bf16.mxu1 %vm3680_vm0, %v3679_v1  ;;  %v1076_v45 = vor.u32 %v1074_v42, %v1072_v37  ;;  %3375 = vmatpush3.bf16.msra.mxu1 %v3560_v51 }
 0x22f   :  { %1324 = vmatprep.mubr.bf16.mxu0 %v1073_v38  ;;  %3376 = vmatprep.subr.bf16.mxu1 %v3679_v1 }
 0x230   :  { %v3558_v39 = vld [vmem:[#allocation2 + $0x10] ss:$0 sps:$4 sm:$0x33]   ;;  %1325 = vmatmul.mubr.bf16.vlgmr.msra.gmra.mrb[24].mxu0 %v2793_v19 }
 0x231   :  { %v1094_v41 = vrot.slane %v3558_v39, 1  ;;  %v1078_v43 = vshll.u32 %v3558_v39, 16  ;;  %v1082_v48 = vshrl.u32 %v3558_v39, 16  ;;  %v3559_v50 = vld [vmem:[#allocation2 + $0x10] ss:$0 sps:$4 sm:$0x11]   ;;  %3156 = vmatpush3.bf16.msra.mxu0 %v3562_v53 }
 0x232   :  { %3377 = vmatpush3.bf16.msra.mxu1 %v3563_v54  ;;  %3157 = vmatprep.subr.bf16.mxu0 %v3564_v55 }
 0x233   :  { %v1095_v44 = vsel %vm234_vm4, %v1092_v31, %v1094_v41  ;;  %v1080_v46 = vrot.slane %v1078_v43, 1  ;;  %3378 = vmatprep.subr.bf16.mxu1 %v3679_v1 }
 0x235   :  { %3367 = vmatmul.mubr.bf16.gmra.mrb[28].mxu1 %v1095_v44  ;;  %v1081_v47 = vsel %vm204_vm5, %v1076_v45, %v1080_v46  ;;  %v1084_v49 = vor.u32 %v1082_v48, %v1080_v46  ;;  %3158 = vmatpush3.bf16.msra.mxu0 %v3565_v56 }
 0x236   :  { %1332 = vmatprep.mubr.bf16.mxu0 %v1081_v47  ;;  %3370 = vmatprep.mubr.msk.bf16.mxu1 %vm3680_vm0, %v3679_v1 }
 0x237   :  { %3379 = vmatpush3.bf16.msra.mxu1 %v3566_v57  ;;  %3159 = vmatprep.subr.bf16.mxu0 %v3567_v59 }
 0x238   :  { %1333 = vmatmul.mubr.bf16.gmra.mrb[28].mxu0 %v3555_v28  ;;  %3380 = vmatprep.subr.bf16.mxu1 %v3679_v1 }
 0x239   :  { %1340 = vmatprep.mubr.bf16.mxu0 %v1084_v49  ;;  %3160 = vmatpush3.bf16.msra.mxu0 %v3568_v61 }
 0x23a   :  { %3161 = vmatprep.subr.bf16.mxu0 %v3570_v0 }
 0x23b   :  { %3381 = vmatpush3.bf16.msra.mxu1 %v3569_v62 }
 0x23c   :  { %3382 = vmatprep.subr.bf16.mxu1 %v3679_v1 }
 0x23d   :  { %3371 = vmatmul.mubr.bf16.gmra.mrb[32].mxu1 %v1094_v41  ;;  %3162 = vmatpush3.bf16.msra.mxu0 %v3571_v2 }
 0x23e   :  { %3390 = vmatprep.mubr.msk.bf16.mxu1 %vm3680_vm0, %v3679_v1  ;;  %3163 = vmatprep.subr.bf16.mxu0 %v3573_v5 }
 0x23f   :  { %3383 = vmatpush3.bf16.msra.mxu1 %v3572_v3 }
 0x240   :  { %1341 = vmatmul.mubr.bf16.gmra.mrb[32].mxu0 %v3559_v50  ;;  %3384 = vmatprep.subr.bf16.mxu1 %v3679_v1 }
 0x241   :  { %3164 = vmatpush3.bf16.msra.mxu0 %v3574_v6 }
 0x242   :  { %3165 = vmatprep.subr.bf16.mxu0 %v3576_v9 }
 0x243   :  { %3385 = vmatpush3.bf16.msra.mxu1 %v3575_v8 }
 0x244   :  { %3386 = vmatprep.subr.bf16.mxu1 %v3679_v1 }
 0x245   :  { %3166 = vmatpush3.bf16.msra.mxu0 %v3577_v10 }
 0x246   :  { %3167 = vmatprep.subr.bf16.mxu0 %v3579_v12 }
 0x247   :  { %3387 = vmatpush3.bf16.msra.mxu1 %v3578_v11 }
 0x248   :  { %3388 = vmatprep.subr.bf16.mxu1 %v3679_v1 }
 0x249   :  { %3168 = vmatpush3.bf16.msra.mxu0 %v3580_v13 }
 0x24a   :  { %3169 = vmatprep.subr.bf16.mxu0 %v3582_v15 }
 0x24b   :  { %3389 = vmatpush3.bf16.msra.mxu1 %v3581_v14 }
 0x24c   :  { %3402 = vmatprep.subr.bf16.mxu1 %v3679_v1 }
 0x24d   :  { %3170 = vmatpush3.bf16.msra.mxu0 %v3583_v16 }
 0x300   :  { %v1382_v18 = vpop.f32.mrb[24].mxu1 }
 0x301   :  { %v3364_v19 = vpop.f32.mrb[25].mxu1 }
 0x302   :  { %v1385_v21 = vpop.f32.mrb[26].mxu1 }
 0x303   :  { %v3126_v22 = vpop.f32.mrb[24].mxu0  ;;  %v3365_v23 = vpop.f32.mrb[27].mxu1 }
 0x304   :  { %v3127_v25 = vpop.f32.mrb[25].mxu0 }
 0x305   :  { %v3128_v26 = vadd.f32 %v3127_v25, %v3126_v22  ;;  %v3129_v27 = vpop.f32.mrb[26].mxu0 }
 0x306   :  { %v3130_v28 = vpop.f32.mrb[27].mxu0 }
 0x307   :  { %v1383_v29 = vadd.f32 %v3128_v26, %v1382_v18  ;;  %v3131_v30 = vadd.f32 %v3130_v28, %v3129_v27 }
 0x308   :  { %v1390_v31 = vpop.f32.mrb[28].mxu1 }
 0x309   :  { %v1409_v32 = vrot.slane %v1383_v29, 7  ;;  %v1386_v34 = vadd.f32 %v3131_v30, %v1385_v21  ;;  %v3368_v35 = vpop.f32.mrb[29].mxu1 }
 0x30a   :  { %v1393_v36 = vpop.f32.mrb[30].mxu1 }
 0x30b   :  { %v1423_v37 = vsel %vm552_vm6, 0.0, %v1409_v32  ;;  %v1410_v38 = vrot.slane %v1386_v34, 7  ;;  %v3132_v39 = vpop.f32.mrb[28].mxu0  ;;  %v3369_v41 = vpop.f32.mrb[31].mxu1 }
 0x30c   :  { %v1425_v42 = vmax.f32 %v1423_v37, 0.0  ;;  %v3133_v43 = vpop.f32.mrb[29].mxu0 }
 0x30d   :  { %v1411_v44 = vsel %vm552_vm6, %v1409_v32, %v1410_v38  ;;  %v3134_v45 = vadd.f32 %v3133_v43, %v3132_v39  ;;  %v3135_v46 = vpop.f32.mrb[30].mxu0 }
 0x30e   :  { %v1426_v47 = vmax.f32 %v1411_v44, 0.0  ;;  %v3136_v48 = vpop.f32.mrb[31].mxu0  ;;  %v1430_v51 = vsel %vm3753_vm14, %v1425_v42, 0.0 }
 0x30f   :  { %v1391_v49 = vadd.f32 %v3134_v45, %v1390_v31  ;;  %v3137_v50 = vadd.f32 %v3136_v48, %v3135_v46 }
 0x310   :  { %v1431_v52 = vsel %vm3761_vm2, %v1426_v47, 0.0  ;;  %v1398_v53 = vpop.f32.mrb[32].mxu1 }
 0x311   :  { %v2987_v54 = vpack.c.bf16 %v1431_v52, %v1430_v51  ;;  %v1412_v55 = vrot.slane %v1391_v49, 7  ;;  %v1394_v56 = vadd.f32 %v3137_v50, %v1393_v36  ;;  %v3372_v57 = vpop.f32.mrb[33].mxu1 }
 0x312   :  { %v1401_v59 = vpop.f32.mrb[34].mxu1  ;;  %v3592_v57 = vld [vmem:[#allocation3 + $0x388] sm:$0xff]  }
 0x313   :  { %2988 = vst [vmem:[#allocation2] sm:$0xff] %v2987_v54   ;;  %v1413_v61 = vsel %vm552_vm6, %v1410_v38, %v1412_v55  ;;  %v1414_v62 = vrot.slane %v1394_v56, 7  ;;  %v3138_v0 = vpop.f32.mrb[32].mxu0  ;;  %v3373_v2 = vpop.f32.mrb[35].mxu1  ;;  %v3589_v54 = vld [vmem:[#allocation3 + $0x380] sm:$0xff]   ;;  %v3593_v59 = vld [vmem:[#allocation3 + $0x348] sm:$0xff]  }
 0x314   :  { %v1427_v3 = vmax.f32 %v1413_v61, 0.0  ;;  %v3139_v5 = vpop.f32.mrb[33].mxu0  ;;  %v3591_v56 = vld [vmem:[#allocation3 + $0x300] sm:$0xff]   ;;  %v3594_v61 = vld [vmem:[#allocation3 + $0x308] sm:$0xff]   ;;  %v3597_v2 = vld [vmem:[#allocation3 + $0x310] sm:$0xff]  }
 0x315   :  { %v1415_v6 = vsel %vm552_vm6, %v1412_v55, %v1414_v62  ;;  %v3140_v8 = vadd.f32 %v3139_v5, %v3138_v0  ;;  %v3141_v9 = vpop.f32.mrb[34].mxu0  ;;  %v3590_v55 = vld [vmem:[#allocation3 + $0x340] sm:$0xff]   ;;  %v3596_v0 = vld [vmem:[#allocation3 + $0x350] sm:$0xff]   ;;  %v3599_v5 = vld [vmem:[#allocation3 + $0x358] sm:$0xff]  }
 0x316   :  { %v1428_v10 = vmax.f32 %v1415_v6, 0.0  ;;  %v3142_v11 = vpop.f32.mrb[35].mxu0  ;;  %v1432_v13 = vsel %vm3774_vm3, %v1427_v3, 0.0  ;;  %3200 = vmatprep.subr.bf16.mxu0 %v3590_v55  ;;  %v3598_v3 = vld [vmem:[#allocation3 + $0x398] sm:$0xff]   ;;  %v3602_v9 = vld [vmem:[#allocation3 + $0x360] sm:$0xff]  }
 0x317   :  { %v1399_v12 = vadd.f32 %v3140_v8, %v1398_v53  ;;  %v3600_v6 = vld [vmem:[#allocation3 + $0x318] sm:$0xff]   ;;  %v3601_v8 = vld [vmem:[#allocation3 + $0x3a0] sm:$0xff]   ;;  %v3604_v11 = vld [vmem:[#allocation3 + $0x3a8] sm:$0xff]  }
 0x318   :  { %v1433_v14 = vsel %vm3786_vm12, %v1428_v10, 0.0  ;;  %v3603_v10 = vld [vmem:[#allocation3 + $0x320] sm:$0xff]  }
 0x319   :  { %v2992_v15 = vpack.c.bf16 %v1433_v14, %v1432_v13  ;;  %v1416_v16 = vrot.slane %v1399_v12, 7  ;;  %v3605_v12 = vld [vmem:[#allocation3 + $0x368] sm:$0xff]   ;;  %v3607_v14 = vld [vmem:[#allocation3 + $0x3b0] sm:$0xff]  }
 0x31a   :  { %v1462_v18 = vld [vmem:[#allocation2 + $0x4] sm:$0xf]  ;;  %v1461_v19 = vld [vmem:[#allocation2] sm:$0xf] }
 0x31b   :  { %3017 = vst [vmem:[#allocation2 + $0x8] sm:$0xff] %v2992_v15   ;;  %v1417_v21 = vsel %vm552_vm6, %v1414_v62, %v1416_v16  ;;  %v2827_v22 = vcombine.low %v1461_v19, %v1462_v18  ;;  %v1467_v26 = vld [vmem:[#allocation2] sm:$0xe]  ;;  %v3595_v62 = vld [vmem:[#allocation3 + $0x390] sm:$0xff]   ;;  %v3611_v19 = vld [vmem:[#allocation3 + $0x378] sm:$0xff]  }
 0x31c   :  { %v1424_v23 = vsel %vm568_vm7, %v1417_v21, 0.0  ;;  %v2831_v30 = vcombine.low %v1467_v26, %v1462_v18  ;;  %v3606_v13 = vld [vmem:[#allocation3 + $0x328] sm:$0xff]   ;;  %v3608_v15 = vld [vmem:[#allocation3 + $0x370] sm:$0xff]   ;;  %v3610_v18 = vld [vmem:[#allocation3 + $0x3b8] sm:$0xff]  }
 0x31d   :  { %v1429_v25 = vmax.f32 %v1424_v23, 0.0  ;;  %v1490_v27 = vshll.u32 %v2827_v22, 16  ;;  %v1488_v36 = vshrl.u32 %v2827_v22, 16  ;;  %v3609_v16 = vld [vmem:[#allocation3 + $0x330] sm:$0xff]   ;;  %v3612_v21 = vld [vmem:[#allocation3 + $0x338] sm:$0xff]  }
 0x31e   :  { %v1516_v34 = vrot.slane %v2831_v30, 1 }
 0x31f   :  { %v1434_v28 = vsel %vm3792_vm1, %v1429_v25, 0.0  ;;  %v1492_v32 = vrot.slane %v1490_v27, 1 }
 0x320   :  { %v2943_v29 = vpack.c.bf16 %v1434_v28, %v1434_v28 }
 0x321   :  { %v1493_v39 = vor.u32 %v1492_v32, %v1488_v36 }
 0x322   :  { %1460 = vst [vmem:[#allocation2 + $0x10] sm:$0x3] %v2943_v29  ;;  %v3584_v31 = vld [vmem:[#allocation2 + $0x8] sm:$0xff]  }
 0x323   :  { %v1517_v35 = vrot.slane %v3584_v31, 1  ;;  %v1495_v37 = vshll.u32 %v3584_v31, 16  ;;  %v1499_v45 = vshrl.u32 %v3584_v31, 16 }
 0x325   :  { %v1518_v38 = vsel %vm234_vm4, %v1516_v34, %v1517_v35  ;;  %v1497_v41 = vrot.slane %v1495_v37, 1 }
 0x326   :  { %3391 = vmatmul.mubr.bf16.vlgmr.msra.gmra.mrb[36].mxu1 %v1518_v38 }
 0x327   :  { %v1498_v42 = vsel %vm204_vm5, %v1493_v39, %v1497_v41  ;;  %3394 = vmatprep.mubr.msk.bf16.mxu1 %vm3680_vm0, %v3679_v1  ;;  %v1501_v48 = vor.u32 %v1499_v45, %v1497_v41  ;;  %3403 = vmatpush3.bf16.msra.mxu1 %v3589_v54 }
 0x328   :  { %1749 = vmatprep.mubr.bf16.mxu0 %v1498_v42  ;;  %3404 = vmatprep.subr.bf16.mxu1 %v3679_v1 }
 0x329   :  { %v3587_v43 = vld [vmem:[#allocation2 + $0x10] ss:$0 sps:$4 sm:$0x33]   ;;  %1750 = vmatmul.mubr.bf16.vlgmr.msra.gmra.mrb[36].mxu0 %v2827_v22 }
 0x32a   :  { %v1519_v44 = vrot.slane %v3587_v43, 1  ;;  %v1503_v46 = vshll.u32 %v3587_v43, 16  ;;  %v1507_v51 = vshrl.u32 %v3587_v43, 16  ;;  %v3588_v53 = vld [vmem:[#allocation2 + $0x10] ss:$0 sps:$4 sm:$0x11]   ;;  %3201 = vmatpush3.bf16.msra.mxu0 %v3591_v56 }
 0x32b   :  { %3405 = vmatpush3.bf16.msra.mxu1 %v3592_v57  ;;  %3202 = vmatprep.subr.bf16.mxu0 %v3593_v59 }
 0x32c   :  { %v1520_v47 = vsel %vm234_vm4, %v1517_v35, %v1519_v44  ;;  %v1505_v49 = vrot.slane %v1503_v46, 1  ;;  %3406 = vmatprep.subr.bf16.mxu1 %v3679_v1 }
 0x32e   :  { %3395 = vmatmul.mubr.bf16.gmra.mrb[40].mxu1 %v1520_v47  ;;  %v1506_v50 = vsel %vm204_vm5, %v1501_v48, %v1505_v49  ;;  %v1509_v52 = vor.u32 %v1507_v51, %v1505_v49  ;;  %3203 = vmatpush3.bf16.msra.mxu0 %v3594_v61 }
 0x32f   :  { %1757 = vmatprep.mubr.bf16.mxu0 %v1506_v50  ;;  %3398 = vmatprep.mubr.msk.bf16.mxu1 %vm3680_vm0, %v3679_v1 }
 0x330   :  { %3407 = vmatpush3.bf16.msra.mxu1 %v3595_v62  ;;  %3204 = vmatprep.subr.bf16.mxu0 %v3596_v0 }
 0x331   :  { %1758 = vmatmul.mubr.bf16.gmra.mrb[40].mxu0 %v3584_v31  ;;  %3408 = vmatprep.subr.bf16.mxu1 %v3679_v1 }
 0x332   :  { %1765 = vmatprep.mubr.bf16.mxu0 %v1509_v52  ;;  %3205 = vmatpush3.bf16.msra.mxu0 %v3597_v2 }
 0x333   :  { %3206 = vmatprep.subr.bf16.mxu0 %v3599_v5 }
 0x334   :  { %3409 = vmatpush3.bf16.msra.mxu1 %v3598_v3 }
 0x335   :  { %3410 = vmatprep.subr.bf16.mxu1 %v3679_v1 }
 0x336   :  { %3399 = vmatmul.mubr.bf16.gmra.mrb[44].mxu1 %v1519_v44  ;;  %3207 = vmatpush3.bf16.msra.mxu0 %v3600_v6 }
 0x337   :  { %3418 = vmatprep.mubr.msk.bf16.mxu1 %vm3680_vm0, %v3679_v1  ;;  %3208 = vmatprep.subr.bf16.mxu0 %v3602_v9 }
 0x338   :  { %3411 = vmatpush3.bf16.msra.mxu1 %v3601_v8 }
 0x339   :  { %1766 = vmatmul.mubr.bf16.gmra.mrb[44].mxu0 %v3588_v53  ;;  %3412 = vmatprep.subr.bf16.mxu1 %v3679_v1 }
 0x33a   :  { %3209 = vmatpush3.bf16.msra.mxu0 %v3603_v10 }
 0x33b   :  { %3210 = vmatprep.subr.bf16.mxu0 %v3605_v12 }
 0x33c   :  { %3413 = vmatpush3.bf16.msra.mxu1 %v3604_v11 }
 0x33d   :  { %3414 = vmatprep.subr.bf16.mxu1 %v3679_v1 }
 0x33e   :  { %3211 = vmatpush3.bf16.msra.mxu0 %v3606_v13 }
 0x33f   :  { %3212 = vmatprep.subr.bf16.mxu0 %v3608_v15 }
 0x340   :  { %3415 = vmatpush3.bf16.msra.mxu1 %v3607_v14 }
 0x341   :  { %3416 = vmatprep.subr.bf16.mxu1 %v3679_v1 }
 0x342   :  { %3213 = vmatpush3.bf16.msra.mxu0 %v3609_v16 }
 0x343   :  { %3214 = vmatprep.subr.bf16.mxu0 %v3611_v19 }
 0x344   :  { %3417 = vmatpush3.bf16.msra.mxu1 %v3610_v18 }
 0x345   :  { %3430 = vmatprep.subr.bf16.mxu1 %v3679_v1 }
 0x346   :  { %3215 = vmatpush3.bf16.msra.mxu0 %v3612_v21 }
 0x3f9   :  { %v1807_v22 = vpop.f32.mrb[36].mxu1 }
 0x3fa   :  { %v3392_v23 = vpop.f32.mrb[37].mxu1 }
 0x3fb   :  { %v1810_v25 = vpop.f32.mrb[38].mxu1 }
 0x3fc   :  { %v3171_v26 = vpop.f32.mrb[36].mxu0  ;;  %v3393_v27 = vpop.f32.mrb[39].mxu1 }
 0x3fd   :  { %v3172_v28 = vpop.f32.mrb[37].mxu0 }
 0x3fe   :  { %v3173_v29 = vadd.f32 %v3172_v28, %v3171_v26  ;;  %v3174_v30 = vpop.f32.mrb[38].mxu0 }
 0x3ff   :  { %v3175_v31 = vpop.f32.mrb[39].mxu0 }
 0x400   :  { %v1808_v32 = vadd.f32 %v3173_v29, %v1807_v22  ;;  %v3176_v34 = vadd.f32 %v3175_v31, %v3174_v30 }
 0x401   :  { %v1815_v35 = vpop.f32.mrb[40].mxu1 }
 0x402   :  { %v1834_v36 = vrot.slane %v1808_v32, 7  ;;  %v1811_v37 = vadd.f32 %v3176_v34, %v1810_v25  ;;  %v3396_v38 = vpop.f32.mrb[41].mxu1 }
 0x403   :  { %v1818_v39 = vpop.f32.mrb[42].mxu1 }
 0x404   :  { %v1848_v41 = vsel %vm552_vm6, 0.0, %v1834_v36  ;;  %v1835_v42 = vrot.slane %v1811_v37, 7  ;;  %v3177_v43 = vpop.f32.mrb[40].mxu0  ;;  %v3397_v44 = vpop.f32.mrb[43].mxu1 }
 0x405   :  { %v3950_v45 = vadd.f32 %v1848_v41, %v3854_v33  ;;  %v3178_v46 = vpop.f32.mrb[41].mxu0 }
 0x406   :  { %v1836_v47 = vsel %vm552_vm6, %v1834_v36, %v1835_v42  ;;  %v3179_v48 = vadd.f32 %v3178_v46, %v3177_v43  ;;  %v3180_v49 = vpop.f32.mrb[42].mxu0 }
 0x407   :  { %v1855_v50 = vmax.f32 %v3950_v45, 0.0  ;;  %v3955_v51 = vadd.f32 %v1836_v47, %v3861_v40  ;;  %v3181_v52 = vpop.f32.mrb[43].mxu0 }
 0x408   :  { %v1816_v53 = vadd.f32 %v3179_v48, %v1815_v35  ;;  %v3182_v54 = vadd.f32 %v3181_v52, %v3180_v49 }
 0x409   :  { %v1856_v55 = vmax.f32 %v3955_v51, 0.0  ;;  %v1823_v56 = vpop.f32.mrb[44].mxu1  ;;  %v1860_v61 = vsel %vm3753_vm14, %v1855_v50, 0.0 }
 0x40a   :  { %v1837_v57 = vrot.slane %v1816_v53, 7  ;;  %v1819_v59 = vadd.f32 %v3182_v54, %v1818_v39  ;;  %v3400_v33 = vpop.f32.mrb[45].mxu1 }
 0x40b   :  { %v1861_v62 = vsel %vm3761_vm2, %v1856_v55, 0.0  ;;  %v1826_v0 = vpop.f32.mrb[46].mxu1  ;;  %v3618_v33 = vld [vmem:[#allocation3 + $0x440] sm:$0xff]  }
 0x40c   :  { %v2997_v2 = vpack.c.bf16 %v1861_v62, %v1860_v61  ;;  %v1838_v40 = vsel %vm552_vm6, %v1835_v42, %v1837_v57  ;;  %v1839_v3 = vrot.slane %v1819_v59, 7  ;;  %v3183_v5 = vpop.f32.mrb[44].mxu0  ;;  %v3401_v6 = vpop.f32.mrb[47].mxu1  ;;  %v3619_v61 = vld [vmem:[#allocation3 + $0x400] sm:$0xff]   ;;  %v3621_v0 = vld [vmem:[#allocation3 + $0x448] sm:$0xff]  }
 0x40d   :  { %v3964_v8 = vadd.f32 %v1838_v40, %v3872_v58  ;;  %v3184_v9 = vpop.f32.mrb[45].mxu0  ;;  %v3620_v62 = vld [vmem:[#allocation3 + $0x3c0] sm:$0xff]   ;;  %3245 = vmatprep.subr.bf16.mxu0 %v3619_v61  ;;  %v3623_v40 = vld [vmem:[#allocation3 + $0x3c8] sm:$0xff]   ;;  %v3626_v6 = vld [vmem:[#allocation3 + $0x3d0] sm:$0xff]  }
 0x40e   :  { %2998 = vst [vmem:[#allocation2] sm:$0xff] %v2997_v2   ;;  %v1840_v10 = vsel %vm552_vm6, %v1837_v57, %v1839_v3  ;;  %v3185_v11 = vadd.f32 %v3184_v9, %v3183_v5  ;;  %v3186_v12 = vpop.f32.mrb[46].mxu0  ;;  %v3622_v2 = vld [vmem:[#allocation3 + $0x408] sm:$0xff]   ;;  %v3625_v5 = vld [vmem:[#allocation3 + $0x410] sm:$0xff]   ;;  %v3627_v9 = vld [vmem:[#allocation3 + $0x458] sm:$0xff]  }
 0x40f   :  { %v1857_v13 = vmax.f32 %v3964_v8, 0.0  ;;  %v3969_v14 = vadd.f32 %v1840_v10, %v3879_v4  ;;  %v3187_v15 = vpop.f32.mrb[47].mxu0  ;;  %v3628_v10 = vld [vmem:[#allocation3 + $0x418] sm:$0xff]   ;;  %v3630_v12 = vld [vmem:[#allocation3 + $0x460] sm:$0xff]  }
 0x410   :  { %v1824_v16 = vadd.f32 %v3185_v11, %v1823_v56  ;;  %v3629_v11 = vld [vmem:[#allocation3 + $0x3d8] sm:$0xff]   ;;  %v3632_v15 = vld [vmem:[#allocation3 + $0x3e0] sm:$0xff]  }
 0x411   :  { %v1858_v18 = vmax.f32 %v3969_v14, 0.0  ;;  %v1862_v58 = vsel %vm3774_vm3, %v1857_v13, 0.0  ;;  %v3631_v13 = vld [vmem:[#allocation3 + $0x420] sm:$0xff]  }
 0x412   :  { %v1841_v19 = vrot.slane %v1824_v16, 7  ;;  %v3633_v16 = vld [vmem:[#allocation3 + $0x468] sm:$0xff]  }
 0x413   :  { %v1863_v21 = vsel %vm3786_vm12, %v1858_v18, 0.0  ;;  %v3634_v18 = vld [vmem:[#allocation3 + $0x428] sm:$0xff]  }
 0x414   :  { %v3002_v22 = vpack.c.bf16 %v1863_v21, %v1862_v58  ;;  %v1842_v23 = vsel %vm552_vm6, %v1839_v3, %v1841_v19  ;;  %v3624_v3 = vld [vmem:[#allocation3 + $0x450] sm:$0xff]   ;;  %v3635_v19 = vld [vmem:[#allocation3 + $0x3e8] sm:$0xff]  }
 0x415   :  { %v1849_v25 = vsel %vm568_vm7, %v1842_v23, 0.0  ;;  %v1892_v26 = vld [vmem:[#allocation2 + $0x4] sm:$0xf]  ;;  %v1891_v27 = vld [vmem:[#allocation2] sm:$0xf]  ;;  %v3639_v23 = vld [vmem:[#allocation3 + $0x478] sm:$0xff]  }
 0x416   :  { %3018 = vst [vmem:[#allocation2 + $0x8] sm:$0xff] %v3002_v22   ;;  %v3979_v4 = vadd.f32 %v1849_v25, %v3891_v17  ;;  %v2861_v28 = vcombine.low %v1891_v27, %v1892_v26  ;;  %v1897_v30 = vld [vmem:[#allocation2] sm:$0xe]  ;;  %v3636_v58 = vld [vmem:[#allocation3 + $0x470] sm:$0xff]   ;;  %v3640_v25 = vld [vmem:[#allocation3 + $0x438] sm:$0xff]  }
 0x417   :  { %v2865_v35 = vcombine.low %v1897_v30, %v1892_v26  ;;  %v3637_v21 = vld [vmem:[#allocation3 + $0x430] sm:$0xff]   ;;  %v3641_v26 = vld [vmem:[#allocation3 + $0x3f8] sm:$0xff]  }
 0x418   :  { %v1859_v29 = vmax.f32 %v3979_v4, 0.0  ;;  %v1920_v31 = vshll.u32 %v2861_v28, 16  ;;  %v1918_v41 = vshrl.u32 %v2861_v28, 16  ;;  %v3638_v22 = vld [vmem:[#allocation3 + $0x3f0] sm:$0xff]  }
 0x419   :  { %v1946_v38 = vrot.slane %v2865_v35, 1 }
 0x41a   :  { %v1864_v32 = vsel %vm3792_vm1, %v1859_v29, 0.0  ;;  %v1922_v37 = vrot.slane %v1920_v31, 1 }
 0x41b   :  { %v2948_v34 = vpack.c.bf16 %v1864_v32, %v1864_v32 }
 0x41c   :  { %v1923_v43 = vor.u32 %v1922_v37, %v1918_v41 }
 0x41d   :  { %1890 = vst [vmem:[#allocation2 + $0x10] sm:$0x3] %v2948_v34  ;;  %v3613_v36 = vld [vmem:[#allocation2 + $0x8] sm:$0xff]  }
 0x41e   :  { %v1947_v39 = vrot.slane %v3613_v36, 1  ;;  %v1925_v42 = vshll.u32 %v3613_v36, 16  ;;  %v1929_v49 = vshrl.u32 %v3613_v36, 16 }
 0x420   :  { %v1948_v17 = vsel %vm234_vm4, %v1946_v38, %v1947_v39  ;;  %v1927_v44 = vrot.slane %v1925_v42, 1 }
 0x421   :  { %3419 = vmatmul.mubr.bf16.vlgmr.msra.gmra.mrb[48].mxu1 %v1948_v17 }
 0x422   :  { %v1928_v46 = vsel %vm204_vm5, %v1923_v43, %v1927_v44  ;;  %3422 = vmatprep.mubr.msk.bf16.mxu1 %vm3680_vm0, %v3679_v1  ;;  %v1931_v53 = vor.u32 %v1929_v49, %v1927_v44  ;;  %3431 = vmatpush3.bf16.msra.mxu1 %v3618_v33 }
 0x423   :  { %2179 = vmatprep.mubr.bf16.mxu0 %v1928_v46  ;;  %3432 = vmatprep.subr.bf16.mxu1 %v3679_v1 }
 0x424   :  { %v3616_v47 = vld [vmem:[#allocation2 + $0x10] ss:$0 sps:$4 sm:$0x33]   ;;  %2180 = vmatmul.mubr.bf16.vlgmr.msra.gmra.mrb[48].mxu0 %v2861_v28 }
 0x425   :  { %v1949_v48 = vrot.slane %v3616_v47, 1  ;;  %v1933_v50 = vshll.u32 %v3616_v47, 16  ;;  %v1937_v56 = vshrl.u32 %v3616_v47, 16  ;;  %v3617_v59 = vld [vmem:[#allocation2 + $0x10] ss:$0 sps:$4 sm:$0x11]   ;;  %3246 = vmatpush3.bf16.msra.mxu0 %v3620_v62 }
 0x426   :  { %3433 = vmatpush3.bf16.msra.mxu1 %v3621_v0  ;;  %3247 = vmatprep.subr.bf16.mxu0 %v3622_v2 }
 0x427   :  { %v1950_v52 = vsel %vm234_vm4, %v1947_v39, %v1949_v48  ;;  %v1935_v54 = vrot.slane %v1933_v50, 1  ;;  %3434 = vmatprep.subr.bf16.mxu1 %v3679_v1 }
 0x429   :  { %3423 = vmatmul.mubr.bf16.gmra.mrb[52].mxu1 %v1950_v52  ;;  %v1936_v55 = vsel %vm204_vm5, %v1931_v53, %v1935_v54  ;;  %v1939_v57 = vor.u32 %v1937_v56, %v1935_v54  ;;  %3248 = vmatpush3.bf16.msra.mxu0 %v3623_v40 }
 0x42a   :  { %2187 = vmatprep.mubr.bf16.mxu0 %v1936_v55  ;;  %3426 = vmatprep.mubr.msk.bf16.mxu1 %vm3680_vm0, %v3679_v1 }
 0x42b   :  { %3435 = vmatpush3.bf16.msra.mxu1 %v3624_v3  ;;  %3249 = vmatprep.subr.bf16.mxu0 %v3625_v5 }
 0x42c   :  { %2188 = vmatmul.mubr.bf16.gmra.mrb[52].mxu0 %v3613_v36  ;;  %3436 = vmatprep.subr.bf16.mxu1 %v3679_v1 }
 0x42d   :  { %2195 = vmatprep.mubr.bf16.mxu0 %v1939_v57  ;;  %3250 = vmatpush3.bf16.msra.mxu0 %v3626_v6 }
 0x42e   :  { %3251 = vmatprep.subr.bf16.mxu0 %v3628_v10 }
 0x42f   :  { %3437 = vmatpush3.bf16.msra.mxu1 %v3627_v9 }
 0x430   :  { %3438 = vmatprep.subr.bf16.mxu1 %v3679_v1 }
 0x431   :  { %3427 = vmatmul.mubr.bf16.gmra.mrb[56].mxu1 %v1949_v48  ;;  %3252 = vmatpush3.bf16.msra.mxu0 %v3629_v11 }
 0x432   :  { %3446 = vmatprep.mubr.msk.bf16.mxu1 %vm3680_vm0, %v3679_v1  ;;  %3253 = vmatprep.subr.bf16.mxu0 %v3631_v13 }
 0x433   :  { %3439 = vmatpush3.bf16.msra.mxu1 %v3630_v12 }
 0x434   :  { %2196 = vmatmul.mubr.bf16.gmra.mrb[56].mxu0 %v3617_v59  ;;  %3440 = vmatprep.subr.bf16.mxu1 %v3679_v1 }
 0x435   :  { %3254 = vmatpush3.bf16.msra.mxu0 %v3632_v15 }
 0x436   :  { %3255 = vmatprep.subr.bf16.mxu0 %v3634_v18 }
 0x437   :  { %3441 = vmatpush3.bf16.msra.mxu1 %v3633_v16 }
 0x438   :  { %3442 = vmatprep.subr.bf16.mxu1 %v3679_v1 }
 0x439   :  { %3256 = vmatpush3.bf16.msra.mxu0 %v3635_v19 }
 0x43a   :  { %3257 = vmatprep.subr.bf16.mxu0 %v3637_v21 }
 0x43b   :  { %3443 = vmatpush3.bf16.msra.mxu1 %v3636_v58 }
 0x43c   :  { %3444 = vmatprep.subr.bf16.mxu1 %v3679_v1 }
 0x43d   :  { %3258 = vmatpush3.bf16.msra.mxu0 %v3638_v22 }
 0x43e   :  { %3259 = vmatprep.subr.bf16.mxu0 %v3640_v25 }
 0x43f   :  { %3445 = vmatpush3.bf16.msra.mxu1 %v3639_v23 }
 0x441   :  { %3260 = vmatpush3.bf16.msra.mxu0 %v3641_v26 }
 0x4f4   :  { %v2237_v27 = vpop.f32.mrb[48].mxu1 }
 0x4f5   :  { %v3420_v28 = vpop.f32.mrb[49].mxu1 }
 0x4f6   :  { %v2240_v29 = vpop.f32.mrb[50].mxu1 }
 0x4f7   :  { %v3216_v30 = vpop.f32.mrb[48].mxu0  ;;  %v3421_v31 = vpop.f32.mrb[51].mxu1 }
 0x4f8   :  { %v3217_v32 = vpop.f32.mrb[49].mxu0 }
 0x4f9   :  { %v3218_v34 = vadd.f32 %v3217_v32, %v3216_v30  ;;  %v3219_v35 = vpop.f32.mrb[50].mxu0 }
 0x4fa   :  { %v3220_v36 = vpop.f32.mrb[51].mxu0 }
 0x4fb   :  { %v2238_v37 = vadd.f32 %v3218_v34, %v2237_v27  ;;  %v3221_v38 = vadd.f32 %v3220_v36, %v3219_v35 }
 0x4fc   :  { %v2245_v39 = vpop.f32.mrb[52].mxu1 }
 0x4fd   :  { %v2264_v41 = vrot.slane %v2238_v37, 7  ;;  %v2241_v42 = vadd.f32 %v3221_v38, %v2240_v29  ;;  %v3424_v17 = vpop.f32.mrb[53].mxu1 }
 0x4fe   :  { %v2248_v43 = vpop.f32.mrb[54].mxu1 }
 0x4ff   :  { %v2278_v44 = vsel %vm552_vm6, 0.0, %v2264_v41  ;;  %v2265_v46 = vrot.slane %v2241_v42, 7  ;;  %v3222_v47 = vpop.f32.mrb[52].mxu0  ;;  %v3425_v48 = vpop.f32.mrb[55].mxu1 }
 0x500   :  { %v2280_v49 = vmax.f32 %v2278_v44, 0.0  ;;  %v3223_v50 = vpop.f32.mrb[53].mxu0 }
 0x501   :  { %v2266_v52 = vsel %vm552_vm6, %v2264_v41, %v2265_v46  ;;  %v3224_v53 = vadd.f32 %v3223_v50, %v3222_v47  ;;  %v3225_v54 = vpop.f32.mrb[54].mxu0 }
 0x502   :  { %v2281_v55 = vmax.f32 %v2266_v52, 0.0  ;;  %v3226_v56 = vpop.f32.mrb[55].mxu0  ;;  %v2285_v33 = vsel %vm3753_vm14, %v2280_v49, 0.0 }
 0x503   :  { %v2246_v57 = vadd.f32 %v3224_v53, %v2245_v39  ;;  %v3227_v59 = vadd.f32 %v3226_v56, %v3225_v54 }
 0x504   :  { %v2286_v61 = vsel %vm3761_vm2, %v2281_v55, 0.0  ;;  %v2253_v62 = vpop.f32.mrb[56].mxu1 }
 0x505   :  { %v3007_v0 = vpack.c.bf16 %v2286_v61, %v2285_v33  ;;  %v2267_v2 = vrot.slane %v2246_v57, 7  ;;  %v2249_v40 = vadd.f32 %v3227_v59, %v2248_v43  ;;  %v3428_v3 = vpop.f32.mrb[57].mxu1 }
 0x506   :  { %v2256_v5 = vpop.f32.mrb[58].mxu1 }
 0x507   :  { %3008 = vst [vmem:[#allocation2] sm:$0xff] %v3007_v0   ;;  %v2268_v6 = vsel %vm552_vm6, %v2265_v46, %v2267_v2  ;;  %v2269_v9 = vrot.slane %v2249_v40, 7  ;;  %v3228_v10 = vpop.f32.mrb[56].mxu0  ;;  %v3429_v11 = vpop.f32.mrb[59].mxu1 }
 0x508   :  { %v2282_v12 = vmax.f32 %v2268_v6, 0.0  ;;  %v3229_v13 = vpop.f32.mrb[57].mxu0 }
 0x509   :  { %v2270_v60 = vsel %vm552_vm6, %v2267_v2, %v2269_v9  ;;  %v3230_v15 = vadd.f32 %v3229_v13, %v3228_v10  ;;  %v3231_v16 = vpop.f32.mrb[58].mxu0 }
 0x50a   :  { %v2283_v63 = vmax.f32 %v2270_v60, 0.0  ;;  %v3232_v18 = vpop.f32.mrb[59].mxu0  ;;  %v2287_v58 = vsel %vm3774_vm3, %v2282_v12, 0.0 }
 0x50b   :  { %v2254_v19 = vadd.f32 %v3230_v15, %v2253_v62 }
 0x50c   :  { %v2288_v21 = vsel %vm3786_vm12, %v2283_v63, 0.0 }
 0x50d   :  { %v3012_v22 = vpack.c.bf16 %v2288_v21, %v2287_v58  ;;  %v2271_v23 = vrot.slane %v2254_v19, 7 }
 0x50e   :  { %v2317_v25 = vld [vmem:[#allocation2 + $0x4] sm:$0xf]  ;;  %v2316_v26 = vld [vmem:[#allocation2] sm:$0xf] }
 0x50f   :  { %3019 = vst [vmem:[#allocation2 + $0x8] sm:$0xff] %v3012_v22   ;;  %v2272_v27 = vsel %vm552_vm6, %v2269_v9, %v2271_v23  ;;  %v2895_v28 = vcombine.low %v2316_v26, %v2317_v25  ;;  %v2322_v31 = vld [vmem:[#allocation2] sm:$0xe] }
 0x510   :  { %v2279_v29 = vsel %vm568_vm7, %v2272_v27, 0.0  ;;  %v2899_v35 = vcombine.low %v2322_v31, %v2317_v25 }
 0x511   :  { %v2284_v30 = vmax.f32 %v2279_v29, 0.0  ;;  %v2345_v32 = vshll.u32 %v2895_v28, 16  ;;  %v2343_v39 = vshrl.u32 %v2895_v28, 16 }
 0x512   :  { %v2371_v37 = vrot.slane %v2899_v35, 1 }
 0x513   :  { %v2289_v7 = vsel %vm3792_vm1, %v2284_v30, 0.0  ;;  %v2347_v36 = vrot.slane %v2345_v32, 1 }
 0x514   :  { %v2953_v34 = vpack.c.bf16 %v2289_v7, %v2289_v7 }
 0x515   :  { %v2348_v17 = vor.u32 %v2347_v36, %v2343_v39 }
 0x516   :  { %2315 = vst [vmem:[#allocation2 + $0x10] sm:$0x3] %v2953_v34  ;;  %v3642_v20 = vld [vmem:[#allocation2 + $0x8] sm:$0xff]  }
 0x517   :  { %v2372_v38 = vrot.slane %v3642_v20, 1  ;;  %v2350_v41 = vshll.u32 %v3642_v20, 16  ;;  %v2354_v47 = vshrl.u32 %v3642_v20, 16 }
 0x519   :  { %v2373_v42 = vsel %vm234_vm4, %v2371_v37, %v2372_v38  ;;  %v2352_v43 = vrot.slane %v2350_v41, 1 }
 0x51a   :  { %3447 = vmatmul.mubr.bf16.vlgmr.msra.gmra.mrb[60].mxu1 %v2373_v42 }
 0x51b   :  { %v2353_v44 = vsel %vm204_vm5, %v2348_v17, %v2352_v43  ;;  %3450 = vmatprep.mubr.msk.bf16.mxu1 %vm3680_vm0, %v3679_v1  ;;  %v2356_v50 = vor.u32 %v2354_v47, %v2352_v43 }
 0x51c   :  { %2604 = vmatprep.mubr.bf16.mxu0 %v2353_v44 }
 0x51d   :  { %v3645_v24 = vld [vmem:[#allocation2 + $0x10] ss:$0 sps:$4 sm:$0x33]   ;;  %2605 = vmatmul.mubr.bf16.vlgmr.msra.gmra.mrb[60].mxu0 %v2895_v28 }
 0x51e   :  { %v2374_v46 = vrot.slane %v3645_v24, 1  ;;  %v2358_v48 = vshll.u32 %v3645_v24, 16  ;;  %v2362_v54 = vshrl.u32 %v3645_v24, 16  ;;  %v3646_v56 = vld [vmem:[#allocation2 + $0x10] ss:$0 sps:$4 sm:$0x11]  }
 0x520   :  { %v2375_v49 = vsel %vm234_vm4, %v2372_v38, %v2374_v46  ;;  %v2360_v52 = vrot.slane %v2358_v48, 1 }
 0x522   :  { %3451 = vmatmul.mubr.bf16.gmra.mrb[64].mxu1 %v2375_v49  ;;  %v2361_v53 = vsel %vm204_vm5, %v2356_v50, %v2360_v52  ;;  %v2364_v55 = vor.u32 %v2362_v54, %v2360_v52 }
 0x523   :  { %2612 = vmatprep.mubr.bf16.mxu0 %v2361_v53  ;;  %3454 = vmatprep.mubr.msk.bf16.mxu1 %vm3680_vm0, %v3679_v1 }
 0x525   :  { %2613 = vmatmul.mubr.bf16.gmra.mrb[64].mxu0 %v3642_v20 }
 0x526   :  { %2620 = vmatprep.mubr.bf16.mxu0 %v2364_v55 }
 0x52a   :  { %3455 = vmatmul.mubr.bf16.gmra.mrb[68].mxu1 %v2374_v46 }
 0x52d   :  { %2621 = vmatmul.mubr.bf16.gmra.mrb[68].mxu0 %v3646_v56 }
 0x5ed   :  { %v2662_v57 = vpop.f32.mrb[60].mxu1 }
 0x5ee   :  { %v3448_v59 = vpop.f32.mrb[61].mxu1 }
 0x5ef   :  { %v2665_v33 = vpop.f32.mrb[62].mxu1 }
 0x5f0   :  { %v3261_v61 = vpop.f32.mrb[60].mxu0  ;;  %v3449_v62 = vpop.f32.mrb[63].mxu1 }
 0x5f1   :  { %v3262_v0 = vpop.f32.mrb[61].mxu0 }
 0x5f2   :  { %v3263_v2 = vadd.f32 %v3262_v0, %v3261_v61  ;;  %v3264_v40 = vpop.f32.mrb[62].mxu0 }
 0x5f3   :  { %v3265_v3 = vpop.f32.mrb[63].mxu0 }
 0x5f4   :  { %v2663_v5 = vadd.f32 %v3263_v2, %v2662_v57  ;;  %v3266_v6 = vadd.f32 %v3265_v3, %v3264_v40 }
 0x5f5   :  { %v2670_v9 = vpop.f32.mrb[64].mxu1 }
 0x5f6   :  { %v2689_v10 = vrot.slane %v2663_v5, 7  ;;  %v2666_v1 = vadd.f32 %v3266_v6, %v2665_v33  ;;  %v3452_v11 = vpop.f32.mrb[65].mxu1 }
 0x5f7   :  { %v2673_v12 = vpop.f32.mrb[66].mxu1 }
 0x5f8   :  { %v2703_v13 = vsel %vm552_vm6, 0.0, %v2689_v10  ;;  %v2690_v60 = vrot.slane %v2666_v1, 7  ;;  %v3267_v15 = vpop.f32.mrb[64].mxu0  ;;  %v3453_v16 = vpop.f32.mrb[67].mxu1 }
 0x5f9   :  { %v2705_v63 = vadd.f32 %v2703_v13, %v3950_v45  ;;  %v3268_v18 = vpop.f32.mrb[65].mxu0 }
 0x5fa   :  { %v2691_v19 = vsel %vm552_vm6, %v2689_v10, %v2690_v60  ;;  %v3269_v58 = vadd.f32 %v3268_v18, %v3267_v15  ;;  %v3270_v21 = vpop.f32.mrb[66].mxu0 }
 0x5fb   :  { %2710 = vst [vmem:[%s4053_s2] sm:$0xff] %v2705_v63  ;;  %v2706_v22 = vadd.f32 %v2691_v19, %v3955_v51  ;;  %v3271_v23 = vpop.f32.mrb[67].mxu0 }
 0x5fc   :  { %v2671_v25 = vadd.f32 %v3269_v58, %v2670_v9  ;;  %v3272_v26 = vadd.f32 %v3271_v23, %v3270_v21 }
 0x5fd   :  { %2711 = vst [vmem:[%s4053_s2 + $0x8] sm:$0xff] %v2706_v22  ;;  %v2678_v27 = vpop.f32.mrb[68].mxu1 }
 0x5fe   :  { %v2692_v45 = vrot.slane %v2671_v25, 7  ;;  %v2674_v28 = vadd.f32 %v3272_v26, %v2673_v12  ;;  %v3456_v29 = vpop.f32.mrb[69].mxu1 }
 0x5ff   :  { %v2681_v30 = vpop.f32.mrb[70].mxu1 }
 0x600   :  { %v2693_v31 = vsel %vm552_vm6, %v2690_v60, %v2692_v45  ;;  %v2694_v32 = vrot.slane %v2674_v28, 7  ;;  %v3273_v7 = vpop.f32.mrb[68].mxu0  ;;  %v3457_v34 = vpop.f32.mrb[71].mxu1 }
 0x601   :  { %v2707_v35 = vadd.f32 %v2693_v31, %v3964_v8  ;;  %v3274_v51 = vpop.f32.mrb[69].mxu0 }
 0x602   :  { %v2695_v20 = vsel %vm552_vm6, %v2692_v45, %v2694_v32  ;;  %v3275_v36 = vadd.f32 %v3274_v51, %v3273_v7  ;;  %v3276_v37 = vpop.f32.mrb[70].mxu0 }
 0x603   :  { %2712 = vst [vmem:[%s4053_s2 + $0x10] sm:$0xff] %v2707_v35  ;;  %v2708_v38 = vadd.f32 %v2695_v20, %v3969_v14  ;;  %v3277_v39 = vpop.f32.mrb[71].mxu0 }
 0x604   :  { %v2679_v41 = vadd.f32 %v3275_v36, %v2678_v27 }
 0x605   :  { %2713 = vst [vmem:[%s4053_s2 + $0x18] sm:$0xff] %v2708_v38 }
 0x606   :  { %v2696_v42 = vrot.slane %v2679_v41, 7 }
 0x608   :  { %v2697_v8 = vsel %vm552_vm6, %v2694_v32, %v2696_v42 }
 0x609   :  { %v2704_v17 = vsel %vm568_vm7, %v2697_v8, 0.0 }
 0x60a   :  { %v2709_v43 = vadd.f32 %v2704_v17, %v3979_v4 }
 0x60c   :  { %2714 = vst [vmem:[%s4053_s2 + $0x20] sm:$0xf] %v2709_v43 }
 0x60d   :  { %2719 = vsyncpa [#allocation4], 1 }

// kernel: tpu_custom_call.1
= control target key start
LH: loop header
LB: loop body
LE: loop exit
PB: predicated region body
PF: predicated region fallthrough
CT: control target
= control target key end

     0   :  { %7 = vsyncpa [#allocation4], 0  ;;  %s3676_s9 = smov [#allocation3]   ;;  %s4051_s0 = inlined_call_operand.vmem [shape: f32[1,36,128], index: 0, kind: input, shape index: {}]   ;;  %s4052_s1 = inlined_call_operand.hbm [shape: bf16[6,384,128], index: 1, kind: input, shape index: {}]   ;;  %s4053_s2 = inlined_call_operand.vmem [shape: f32[1,36,128], index: 2, kind: output, shape index: {}]  }
   0x1   :  { %s15_s10 = sshll.u32 %s3676_s9, 4  ;;  %s3652_s13 = scalar_lea.hbm %s4052_s1, 18432  ;;  %s16_s10 = int_to_ptr.vmem [resolvable:$true] %s15_s10 }
   0x2   :  { %p3653_p0 = scmp.ne.s32.totalorder %s4052_s1, %s3652_s13  ;;  %p3656_p1 = scmp.lt.u32.totalorder %s3652_s13, %s4052_s1 }
   0x4   :  { %p3658_p2 = pnand %p3656_p1, %p3653_p0 }
   0x6   :  { %3661 = shalt.err (!%p3658_p2)
}
   0x7   :  { %s3662_s18 = scalar_lea.vmem %s16_s10, 18432  ;;  %p3667_p4 = scmp.lt.s32.totalorder %s16_s10, %s16_s10 }
   0x8   :  { %p3663_p3 = scmp.ne.s32.totalorder %s16_s10, %s3662_s18  ;;  %p3668_p5 = scmp.lt.s32.totalorder %s3662_s18, %s3662_s18 }
   0xa   :  { %p3669_p6 = por %p3668_p5, %p3667_p4 }
   0xc   :  { %p3670_p7 = pnand %p3669_p6, %p3663_p3 }
   0xe   :  { %3673 = shalt.err (!%p3670_p7)
}
   0xf   :  { %s3677_s19 = smov 64   ;;  %s3678_s20 = smov 4  }
  0x10   :  { %21 = dma.hbm_to_vmem [thread:$0]  %s4052_s1, 18432, %s16_s10, [#allocation4], %s3677_s19, %s3677_s19, %s3678_s20  }
  0x11   :  { %3674 = dma.done.wait [#allocation4], 18432  }
  0x12   :  { %3675 = vsyncadd [#allocation4], 4294948864  ;;  %v26_v0 = vlaneseq  ;;  %v3679_v1 = vmov 0.0   ;;  %vm3680_vm0 = vmmov 0   ;;  %v3473_v11 = vld [vmem:[#allocation3 + $0x40] sm:$0xff]   ;;  %v3476_v14 = vld [vmem:[#allocation3 + $0x48] sm:$0xff]  }
  0x13   :  { %3290 = vmatprep.subr.bf16.mxu1 %v3679_v1  ;;  %3306 = vmatprep.mubr.msk.bf16.mxu1 %vm3680_vm0, %v3679_v1  ;;  %v3474_v12 = vld [vmem:[#allocation3] sm:$0xff]   ;;  %v3477_v15 = vld [vmem:[#allocation3 + $0x8] sm:$0xff]   ;;  %v3479_v19 = vld [vmem:[#allocation3 + $0x50] sm:$0xff]  }
  0x14   :  { %v27_v2 = vshrl.u32 %v26_v0, 7  ;;  %3020 = vmatprep.subr.bf16.mxu0 %v3473_v11  ;;  %v3475_v13 = vld [vmem:[#allocation3 + $0x80] sm:$0xff]   ;;  %v3478_v17 = vld [vmem:[#allocation3 + $0x88] sm:$0xff]   ;;  %v3480_v21 = vld [vmem:[#allocation3 + $0x10] sm:$0xff]  }
  0x15   :  { %3021 = vmatpush3.bf16.msra.mxu0 %v3474_v12  ;;  %3291 = vmatpush3.bf16.msra.mxu1 %v3475_v13  ;;  %v3481_v22 = vld [vmem:[#allocation3 + $0x90] sm:$0xff]   ;;  %v3482_v24 = vld [vmem:[#allocation3 + $0x58] sm:$0xff]   ;;  %v3485_v29 = vld [vmem:[#allocation3 + $0x60] sm:$0xff]  }
  0x16   :  { %v28_v3 = vadd.s32 8, %v27_v2  ;;  %v29_v4 = vadd.s32 16, %v27_v2  ;;  %v3711_v5 = vmul.u32.u64.low 3817748708, %v27_v2  ;;  %v3712_v6 = vmul.u32.u64.high 3817748708, %v27_v2, %v3711_v5  ;;  %3022 = vmatprep.subr.bf16.mxu0 %v3476_v14  ;;  %3292 = vmatprep.subr.bf16.mxu1 %v3679_v1  ;;  %v3483_v26 = vld [vmem:[#allocation3 + $0x18] sm:$0xff]   ;;  %v3486_v32 = vld [vmem:[#allocation3 + $0x20] sm:$0xff]  }
  0x17   :  { %v3484_v28 = vld [vmem:[#allocation3 + $0x98] sm:$0xff]   ;;  %v3726_v33 = vadd.s32 24, %v27_v2  ;;  %v3487_v35 = vld [vmem:[#allocation3 + $0xa0] sm:$0xff]   ;;  %v3728_v36 = vadd.s32 32, %v27_v2  ;;  %v3488_v37 = vld [vmem:[#allocation3 + $0x68] sm:$0xff]  }
  0x18   :  { %v3714_v7 = vmul.u32.u64.low 3817748708, %v28_v3  ;;  %v3715_v8 = vmul.u32.u64.high 3817748708, %v28_v3, %v3714_v7  ;;  %v3717_v9 = vmul.u32.u64.low 3817748708, %v29_v4  ;;  %v3718_v10 = vmul.u32.u64.high 3817748708, %v29_v4, %v3717_v9  ;;  %v3489_v38 = vld [vmem:[#allocation3 + $0x28] sm:$0xff]   ;;  %v3491_v40 = vld [vmem:[#allocation3 + $0x70] sm:$0xff]  }
  0x19   :  { %v38_v16 = vshrl.u32 %v3712_v6, 4  ;;  %3023 = vmatpush3.bf16.msra.mxu0 %v3477_v15  ;;  %3293 = vmatpush3.bf16.msra.mxu1 %v3478_v17  ;;  %v3490_v39 = vld [vmem:[#allocation3 + $0xa8] sm:$0xff]   ;;  %v3492_v41 = vld [vmem:[#allocation3 + $0x30] sm:$0xff]   ;;  %v3494_v45 = vld [vmem:[#allocation3 + $0x78] sm:$0xff]   ;;  %v3733_v47 = vmul.u32.u64.low 3817748708, %v3726_v33  ;;  %v3734_v48 = vmul.u32.u64.high 3817748708, %v3726_v33, %v3733_v47 }
  0x1a   :  { %v49_v18 = vshrl.u32 %v3715_v8, 4  ;;  %v60_v20 = vshrl.u32 %v3718_v10, 4  ;;  %3024 = vmatprep.subr.bf16.mxu0 %v3479_v19  ;;  %3294 = vmatprep.subr.bf16.mxu1 %v3679_v1  ;;  %v3493_v43 = vld [vmem:[#allocation3 + $0xb0] sm:$0xff]   ;;  %v3745_v51 = vmul.u32.u64.low 3817748708, %v3728_v36  ;;  %v3746_v52 = vmul.u32.u64.high 3817748708, %v3728_v36, %v3745_v51  ;;  %v3495_v56 = vld [vmem:[#allocation3 + $0x38] sm:$0xff]  }
  0x1b   :  { %v39_v23 = vmul.u32 18, %v38_v16  ;;  %v127_v49 = vld [vmem:[%s4051_s0] sm:$0xff]  ;;  %v128_v50 = vld [vmem:[%s4051_s0 + $0x8] sm:$0xff]  ;;  %v129_v61 = vld [vmem:[%s4051_s0 + $0x10] sm:$0xff]  ;;  %v71_v62 = vshrl.u32 %v3734_v48, 4 }
  0x1c   :  { %v50_v25 = vmul.u32 18, %v49_v18  ;;  %v61_v27 = vmul.u32 18, %v60_v20  ;;  %v132_v54 = vmax.f32 %v127_v49, 0.0  ;;  %v133_v55 = vmax.f32 %v128_v50, 0.0  ;;  %v3496_v57 = vld [vmem:[#allocation3 + $0xb8] sm:$0xff]   ;;  %v130_v5 = vld [vmem:[%s4051_s0 + $0x18] sm:$0xff] }
  0x1d   :  { %3025 = vmatpush3.bf16.msra.mxu0 %v3480_v21  ;;  %3295 = vmatpush3.bf16.msra.mxu1 %v3481_v22  ;;  %v40_v30 = vsub.s32 %v27_v2, %v39_v23  ;;  %v134_v8 = vmax.f32 %v129_v61, 0.0  ;;  %v131_v10 = vld [vmem:[%s4051_s0 + $0x20] sm:$0xf]  ;;  %v135_v14 = vmax.f32 %v130_v5, 0.0  ;;  %v3509_v61 = vld [vmem:[#allocation3 + $0x110] sm:$0xff]   ;;  %v3515_v5 = vld [vmem:[#allocation3 + $0x120] sm:$0xff]  }
  0x1e   :  { %3026 = vmatprep.subr.bf16.mxu0 %v3482_v24  ;;  %3296 = vmatprep.subr.bf16.mxu1 %v3679_v1  ;;  %v51_v31 = vsub.s32 %v28_v3, %v50_v25  ;;  %v62_v34 = vsub.s32 %v29_v4, %v61_v27  ;;  %v82_v3 = vshrl.u32 %v3746_v52, 4  ;;  %v72_v4 = vmul.u32 18, %v71_v62  ;;  %v3510_v62 = vld [vmem:[#allocation3 + $0xd0] sm:$0xff]  }
  0x1f   :  { %vm87_vm1 = vcmp.ne.s32.totalorder %v40_v30, 0  ;;  %vm92_vm3 = vcmp.lt.s32.totalorder %v40_v30, 0  ;;  %v102_v42 = vadd.s32 18, %v40_v30  ;;  %v136_v18 = vmax.f32 %v131_v10, 0.0  ;;  %v3519_v10 = vld [vmem:[#allocation3 + $0xe8] sm:$0xff]  }
  0x20   :  { %vm88_vm2 = vcmp.ne.s32.totalorder %v51_v31, 0  ;;  %vm89_vm4 = vcmp.ne.s32.totalorder %v62_v34, 0  ;;  %vm93_vm5 = vcmp.lt.s32.totalorder %v51_v31, 0  ;;  %vm94_vm6 = vcmp.lt.s32.totalorder %v62_v34, 0  ;;  %vm97_vm7 = vmand %vm92_vm3, %vm87_vm1 }
  0x21   :  { %3027 = vmatpush3.bf16.msra.mxu0 %v3483_v26  ;;  %3297 = vmatpush3.bf16.msra.mxu1 %v3484_v28  ;;  %v103_v44 = vadd.s32 18, %v51_v31  ;;  %v104_v46 = vadd.s32 18, %v62_v34  ;;  %vm98_vm8 = vmand %vm93_vm5, %vm88_vm2  ;;  %v107_v53 = vsel %vm97_vm7, %v102_v42, %v40_v30  ;;  %v83_v9 = vmul.u32 18, %v82_v3  ;;  %v3513_v3 = vld [vmem:[#allocation3 + $0xd8] sm:$0xff]  }
  0x22   :  { %3028 = vmatprep.subr.bf16.mxu0 %v3485_v29  ;;  %3298 = vmatprep.subr.bf16.mxu1 %v3679_v1  ;;  %vm99_vm9 = vmand %vm94_vm6, %vm89_vm4  ;;  %vm112_vm10 = vcmp.ge.s32.totalorder %v107_v53, 1  ;;  %vm117_vm11 = vcmp.le.s32.totalorder %v107_v53, 16  ;;  %v73_v11 = vsub.s32 %v3726_v33, %v72_v4  ;;  %v3502_v53 = vld [vmem:[#allocation3 + $0x140] sm:$0xff]  }
  0x23   :  { %v108_v58 = vsel %vm98_vm8, %v103_v44, %v51_v31  ;;  %v109_v59 = vsel %vm99_vm9, %v104_v46, %v62_v34  ;;  %vm3753_vm14 = vmand %vm112_vm10, %vm117_vm11  ;;  %v84_v12 = vsub.s32 %v3728_v36, %v83_v9  ;;  %v3514_v4 = vld [vmem:[#allocation3 + $0x160] sm:$0xff]   ;;  %v3518_v9 = vld [vmem:[#allocation3 + $0x128] sm:$0xff]  }
  0x24   :  { %vm113_vm12 = vcmp.ge.s32.totalorder %v108_v58, 1  ;;  %vm118_vm13 = vcmp.le.s32.totalorder %v108_v58, 16  ;;  %vm114_vm15 = vcmp.ge.s32.totalorder %v109_v59, 1  ;;  %vm119_vm1 = vcmp.le.s32.totalorder %v109_v59, 16  ;;  %v3507_v58 = vld [vmem:[#allocation3 + $0xc8] sm:$0xff]   ;;  %v3508_v59 = vld [vmem:[#allocation3 + $0x150] sm:$0xff]  }
  0x25   :  { %3029 = vmatpush3.bf16.msra.mxu0 %v3486_v32  ;;  %3299 = vmatpush3.bf16.msra.mxu1 %v3487_v35  ;;  %vm3761_vm2 = vmand %vm113_vm12, %vm118_vm13  ;;  %v147_v0 = vsel %vm3753_vm14, %v132_v54, 0.0  ;;  %vm90_vm4 = vcmp.ne.s32.totalorder %v73_v11, 0  ;;  %vm95_vm5 = vcmp.lt.s32.totalorder %v73_v11, 0  ;;  %v105_v13 = vadd.s32 18, %v73_v11  ;;  %v3503_v54 = vld [vmem:[#allocation3 + $0x100] sm:$0xff]  }
  0x26   :  { %3030 = vmatprep.subr.bf16.mxu0 %v3488_v37  ;;  %3300 = vmatprep.subr.bf16.mxu1 %v3679_v1  ;;  %v148_v2 = vsel %vm3761_vm2, %v133_v55, 0.0  ;;  %vm3774_vm3 = vmand %vm114_vm15, %vm119_vm1  ;;  %vm91_vm7 = vcmp.ne.s32.totalorder %v84_v12, 0  ;;  %vm96_vm8 = vcmp.lt.s32.totalorder %v84_v12, 0  ;;  %v106_v15 = vadd.s32 18, %v84_v12  ;;  %v3504_v55 = vld [vmem:[#allocation3 + $0xc0] sm:$0xff]  }
  0x27   :  { %v2957_v6 = vpack.c.bf16 %v148_v2, %v147_v0  ;;  %vm100_vm6 = vmand %vm95_vm5, %vm90_vm4  ;;  %v149_v17 = vsel %vm3774_vm3, %v134_v8, 0.0  ;;  %vm234_vm4 = vcmask 1046528   ;;  %vm204_vm5 = vsmask.f32 7424  ;;  %v3511_v0 = vld [vmem:[#allocation3 + $0x158] sm:$0xff]   ;;  %v3517_v8 = vld [vmem:[#allocation3 + $0x168] sm:$0xff]  }
  0x28   :  { %v110_v16 = vsel %vm100_vm6, %v105_v13, %v73_v11  ;;  %vm101_vm9 = vmand %vm96_vm8, %vm91_vm7  ;;  %v3512_v2 = vld [vmem:[#allocation3 + $0x118] sm:$0xff]   ;;  %v3520_v11 = vld [vmem:[#allocation3 + $0x170] sm:$0xff]   ;;  %vm552_vm6 = vcmask 1040384   ;;  %vm568_vm7 = vcmask 1042432  }
  0x29   :  { %3031 = vmatpush3.bf16.msra.mxu0 %v3489_v38  ;;  %3301 = vmatpush3.bf16.msra.mxu1 %v3490_v39  ;;  %2958 = vst [vmem:[#allocation2] sm:$0xff] %v2957_v6   ;;  %vm115_vm10 = vcmp.ge.s32.totalorder %v110_v16, 1  ;;  %vm120_vm11 = vcmp.le.s32.totalorder %v110_v16, 16  ;;  %v111_v19 = vsel %vm101_vm9, %v106_v15, %v84_v12  ;;  %v3516_v6 = vld [vmem:[#allocation3 + $0xe0] sm:$0xff]   ;;  %v3521_v12 = vld [vmem:[#allocation3 + $0x130] sm:$0xff]   ;;  %v3524_v15 = vld [vmem:[#allocation3 + $0x138] sm:$0xff]  }
  0x2a   :  { %3032 = vmatprep.subr.bf16.mxu0 %v3491_v40  ;;  %3302 = vmatprep.subr.bf16.mxu1 %v3679_v1  ;;  %vm3786_vm12 = vmand %vm115_vm10, %vm120_vm11  ;;  %vm116_vm13 = vcmp.ge.s32.totalorder %v111_v19, 1  ;;  %vm121_vm15 = vcmp.le.s32.totalorder %v111_v19, 16  ;;  %v3522_v13 = vld [vmem:[#allocation3 + $0xf0] sm:$0xff]   ;;  %v3525_v16 = vld [vmem:[#allocation3 + $0xf8] sm:$0xff]  }
  0x2b   :  { %v150_v21 = vsel %vm3786_vm12, %v135_v14, 0.0  ;;  %vm3792_vm1 = vmand %vm116_vm13, %vm121_vm15  ;;  %v3523_v14 = vld [vmem:[#allocation3 + $0x178] sm:$0xff]  }
  0x2c   :  { %v2962_v25 = vpack.c.bf16 %v150_v21, %v149_v17  ;;  %v151_v28 = vsel %vm3792_vm1, %v136_v18, 0.0 }
  0x2d   :  { %3033 = vmatpush3.bf16.msra.mxu0 %v3492_v41  ;;  %3303 = vmatpush3.bf16.msra.mxu1 %v3493_v43  ;;  %v2928_v29 = vpack.c.bf16 %v151_v28, %v151_v28 }
  0x2e   :  { %3034 = vmatprep.subr.bf16.mxu0 %v3494_v45  ;;  %3304 = vmatprep.subr.bf16.mxu1 %v3679_v1  ;;  %3014 = vst [vmem:[#allocation2 + $0x8] sm:$0xff] %v2962_v25  }
  0x2f   :  { %177 = vst [vmem:[#allocation2 + $0x10] sm:$0x3] %v2928_v29 }
  0x30   :  { %v178_v22 = vld [vmem:[#allocation2] sm:$0xf]  ;;  %v179_v23 = vld [vmem:[#allocation2 + $0x4] sm:$0xf] }
  0x31   :  { %3035 = vmatpush3.bf16.msra.mxu0 %v3495_v56  ;;  %3305 = vmatpush3.bf16.msra.mxu1 %v3496_v57  ;;  %v2725_v26 = vcombine.low %v178_v22, %v179_v23  ;;  %v184_v27 = vld [vmem:[#allocation2] sm:$0xe] }
  0x32   :  { %3318 = vmatprep.subr.bf16.mxu1 %v3679_v1  ;;  %v2729_v33 = vcombine.low %v184_v27, %v179_v23  ;;  %3065 = vmatprep.subr.bf16.mxu0 %v3503_v54  ;;  %v3505_v56 = vld [vmem:[#allocation3 + $0x148] sm:$0xff]  }
  0x33   :  { %v208_v30 = vshll.u32 %v2725_v26, 16  ;;  %v206_v31 = vshrl.u32 %v2725_v26, 16  ;;  %v3506_v57 = vld [vmem:[#allocation3 + $0x108] sm:$0xff]  }
  0x34   :  { %v235_v35 = vrot.slane %v2729_v33, 1 }
  0x35   :  { %v210_v32 = vrot.slane %v208_v30, 1  ;;  %v3498_v34 = vld [vmem:[#allocation2 + $0x8] sm:$0xff]  }
  0x36   :  { %v3500_v36 = vld [vmem:[#allocation2 + $0x10] ss:$0 sps:$4 sm:$0x33]   ;;  %v213_v38 = vshll.u32 %v3498_v34, 16  ;;  %v236_v39 = vrot.slane %v3498_v34, 1  ;;  %v217_v40 = vshrl.u32 %v3498_v34, 16 }
  0x37   :  { %v211_v37 = vor.u32 %v210_v32, %v206_v31  ;;  %v221_v41 = vshll.u32 %v3500_v36, 16  ;;  %v238_v44 = vrot.slane %v3500_v36, 1  ;;  %v225_v46 = vshrl.u32 %v3500_v36, 16  ;;  %v3501_v52 = vld [vmem:[#allocation2 + $0x10] ss:$0 sps:$4 sm:$0x11]  }
  0x38   :  { %v215_v42 = vrot.slane %v213_v38, 1  ;;  %v237_v43 = vsel %vm234_vm4, %v235_v35, %v236_v39 }
  0x39   :  { %3307 = vmatmul.mubr.bf16.vlgmr.msra.gmra.mrb[0].mxu1 %v237_v43  ;;  %v223_v45 = vrot.slane %v221_v41, 1  ;;  %v239_v50 = vsel %vm234_vm4, %v236_v39, %v238_v44 }
  0x3a   :  { %v216_v47 = vsel %vm204_vm5, %v211_v37, %v215_v42  ;;  %v219_v48 = vor.u32 %v217_v40, %v215_v42  ;;  %3310 = vmatprep.mubr.msk.bf16.mxu1 %vm3680_vm0, %v3679_v1  ;;  %3319 = vmatpush3.bf16.msra.mxu1 %v3502_v53 }
  0x3b   :  { %467 = vmatprep.mubr.bf16.mxu0 %v216_v47  ;;  %v227_v51 = vor.u32 %v225_v46, %v223_v45  ;;  %3320 = vmatprep.subr.bf16.mxu1 %v3679_v1 }
  0x3c   :  { %468 = vmatmul.mubr.bf16.vlgmr.msra.gmra.mrb[0].mxu0 %v2725_v26  ;;  %v224_v49 = vsel %vm204_vm5, %v219_v48, %v223_v45 }
  0x3d   :  { %475 = vmatprep.mubr.bf16.mxu0 %v224_v49  ;;  %3066 = vmatpush3.bf16.msra.mxu0 %v3504_v55 }
  0x3e   :  { %3321 = vmatpush3.bf16.msra.mxu1 %v3505_v56  ;;  %3067 = vmatprep.subr.bf16.mxu0 %v3506_v57 }
  0x3f   :  { %3322 = vmatprep.subr.bf16.mxu1 %v3679_v1 }
  0x41   :  { %3311 = vmatmul.mubr.bf16.gmra.mrb[4].mxu1 %v239_v50  ;;  %3068 = vmatpush3.bf16.msra.mxu0 %v3507_v58 }
  0x42   :  { %3314 = vmatprep.mubr.msk.bf16.mxu1 %vm3680_vm0, %v3679_v1  ;;  %3323 = vmatpush3.bf16.msra.mxu1 %v3508_v59 }
  0x43   :  { %3324 = vmatprep.subr.bf16.mxu1 %v3679_v1  ;;  %3069 = vmatprep.subr.bf16.mxu0 %v3509_v61 }
  0x44   :  { %476 = vmatmul.mubr.bf16.gmra.mrb[4].mxu0 %v3498_v34 }
  0x45   :  { %483 = vmatprep.mubr.bf16.mxu0 %v227_v51  ;;  %3070 = vmatpush3.bf16.msra.mxu0 %v3510_v62 }
  0x46   :  { %3325 = vmatpush3.bf16.msra.mxu1 %v3511_v0  ;;  %3071 = vmatprep.subr.bf16.mxu0 %v3512_v2 }
  0x47   :  { %3326 = vmatprep.subr.bf16.mxu1 %v3679_v1 }
  0x49   :  { %3315 = vmatmul.mubr.bf16.gmra.mrb[8].mxu1 %v238_v44  ;;  %3072 = vmatpush3.bf16.msra.mxu0 %v3513_v3 }
  0x4a   :  { %3334 = vmatprep.mubr.msk.bf16.mxu1 %vm3680_vm0, %v3679_v1  ;;  %3327 = vmatpush3.bf16.msra.mxu1 %v3514_v4 }
  0x4b   :  { %3328 = vmatprep.subr.bf16.mxu1 %v3679_v1  ;;  %3073 = vmatprep.subr.bf16.mxu0 %v3515_v5 }
  0x4c   :  { %484 = vmatmul.mubr.bf16.gmra.mrb[8].mxu0 %v3501_v52 }
  0x4d   :  { %3074 = vmatpush3.bf16.msra.mxu0 %v3516_v6 }
  0x4e   :  { %3329 = vmatpush3.bf16.msra.mxu1 %v3517_v8  ;;  %3075 = vmatprep.subr.bf16.mxu0 %v3518_v9 }
  0x4f   :  { %3330 = vmatprep.subr.bf16.mxu1 %v3679_v1 }
  0x51   :  { %3076 = vmatpush3.bf16.msra.mxu0 %v3519_v10 }
  0x52   :  { %3331 = vmatpush3.bf16.msra.mxu1 %v3520_v11  ;;  %3077 = vmatprep.subr.bf16.mxu0 %v3521_v12 }
  0x53   :  { %3332 = vmatprep.subr.bf16.mxu1 %v3679_v1 }
  0x55   :  { %3078 = vmatpush3.bf16.msra.mxu0 %v3522_v13 }
  0x56   :  { %3333 = vmatpush3.bf16.msra.mxu1 %v3523_v14  ;;  %3079 = vmatprep.subr.bf16.mxu0 %v3524_v15 }
  0x57   :  { %3346 = vmatprep.subr.bf16.mxu1 %v3679_v1 }
  0x59   :  { %3080 = vmatpush3.bf16.msra.mxu0 %v3525_v16 }
 0x10c   :  { %v525_v17 = vpop.f32.mrb[0].mxu1 }
 0x10d   :  { %v3308_v18 = vpop.f32.mrb[1].mxu1 }
 0x10e   :  { %v528_v19 = vpop.f32.mrb[2].mxu1 }
 0x10f   :  { %v3036_v21 = vpop.f32.mrb[0].mxu0  ;;  %v3309_v22 = vpop.f32.mrb[3].mxu1 }
 0x110   :  { %v3037_v23 = vpop.f32.mrb[1].mxu0 }
 0x111   :  { %v3038_v25 = vadd.f32 %v3037_v23, %v3036_v21  ;;  %v3039_v26 = vpop.f32.mrb[2].mxu0 }
 0x112   :  { %v3040_v27 = vpop.f32.mrb[3].mxu0 }
 0x113   :  { %v526_v28 = vadd.f32 %v3038_v25, %v525_v17  ;;  %v3041_v29 = vadd.f32 %v3040_v27, %v3039_v26 }
 0x114   :  { %v533_v30 = vpop.f32.mrb[4].mxu1 }
 0x115   :  { %v553_v31 = vrot.slane %v526_v28, 7  ;;  %v529_v32 = vadd.f32 %v3041_v29, %v528_v19  ;;  %v3312_v33 = vpop.f32.mrb[5].mxu1 }
 0x116   :  { %v536_v34 = vpop.f32.mrb[6].mxu1 }
 0x117   :  { %v567_v35 = vsel %vm552_vm6, 0.0, %v553_v31  ;;  %v554_v36 = vrot.slane %v529_v32, 7  ;;  %v3042_v37 = vpop.f32.mrb[4].mxu0  ;;  %v3313_v38 = vpop.f32.mrb[7].mxu1 }
 0x118   :  { %v570_v39 = vmax.f32 %v567_v35, 0.0  ;;  %v3043_v40 = vpop.f32.mrb[5].mxu0 }
 0x119   :  { %v555_v41 = vsel %vm552_vm6, %v553_v31, %v554_v36  ;;  %v3044_v42 = vadd.f32 %v3043_v40, %v3042_v37  ;;  %v3045_v43 = vpop.f32.mrb[6].mxu0 }
 0x11a   :  { %v571_v44 = vmax.f32 %v555_v41, 0.0  ;;  %v3046_v45 = vpop.f32.mrb[7].mxu0  ;;  %v575_v48 = vsel %vm3753_vm14, %v570_v39, 0.0 }
 0x11b   :  { %v534_v46 = vadd.f32 %v3044_v42, %v533_v30  ;;  %v3047_v47 = vadd.f32 %v3046_v45, %v3045_v43 }
 0x11c   :  { %v576_v49 = vsel %vm3761_vm2, %v571_v44, 0.0  ;;  %v541_v50 = vpop.f32.mrb[8].mxu1 }
 0x11d   :  { %v2967_v51 = vpack.c.bf16 %v576_v49, %v575_v48  ;;  %v556_v52 = vrot.slane %v534_v46, 7  ;;  %v537_v53 = vadd.f32 %v3047_v47, %v536_v34  ;;  %v3316_v54 = vpop.f32.mrb[9].mxu1  ;;  %v3531_v46 = vld [vmem:[#allocation3 + $0x200] sm:$0xff]   ;;  %v3534_v49 = vld [vmem:[#allocation3 + $0x208] sm:$0xff]  }
 0x11e   :  { %v544_v55 = vpop.f32.mrb[10].mxu1  ;;  %v3532_v47 = vld [vmem:[#allocation3 + $0x1c0] sm:$0xff]   ;;  %v3539_v54 = vld [vmem:[#allocation3 + $0x190] sm:$0xff]  }
 0x11f   :  { %2968 = vst [vmem:[#allocation2] sm:$0xff] %v2967_v51   ;;  %v557_v56 = vsel %vm552_vm6, %v554_v36, %v556_v52  ;;  %v558_v57 = vrot.slane %v537_v53, 7  ;;  %v3048_v58 = vpop.f32.mrb[8].mxu0  ;;  %v3317_v59 = vpop.f32.mrb[11].mxu1  ;;  %v3533_v48 = vld [vmem:[#allocation3 + $0x180] sm:$0xff]   ;;  %3110 = vmatprep.subr.bf16.mxu0 %v3532_v47  ;;  %v3536_v51 = vld [vmem:[#allocation3 + $0x188] sm:$0xff]  }
 0x120   :  { %v572_v61 = vmax.f32 %v557_v56, 0.0  ;;  %v3049_v62 = vpop.f32.mrb[9].mxu0  ;;  %v3538_v53 = vld [vmem:[#allocation3 + $0x1d0] sm:$0xff]   ;;  %v3540_v55 = vld [vmem:[#allocation3 + $0x218] sm:$0xff]   ;;  %v3544_v59 = vld [vmem:[#allocation3 + $0x1e0] sm:$0xff]  }
 0x121   :  { %v559_v0 = vsel %vm552_vm6, %v556_v52, %v558_v57  ;;  %v3050_v2 = vadd.f32 %v3049_v62, %v3048_v58  ;;  %v3051_v3 = vpop.f32.mrb[10].mxu0  ;;  %v3537_v52 = vld [vmem:[#allocation3 + $0x210] sm:$0xff]   ;;  %v3541_v56 = vld [vmem:[#allocation3 + $0x1d8] sm:$0xff]   ;;  %v3543_v58 = vld [vmem:[#allocation3 + $0x220] sm:$0xff]  }
 0x122   :  { %v573_v4 = vmax.f32 %v559_v0, 0.0  ;;  %v3052_v5 = vpop.f32.mrb[11].mxu0  ;;  %v577_v8 = vsel %vm3774_vm3, %v572_v61, 0.0  ;;  %v3545_v61 = vld [vmem:[#allocation3 + $0x1a0] sm:$0xff]   ;;  %v3546_v62 = vld [vmem:[#allocation3 + $0x228] sm:$0xff]   ;;  %v3549_v3 = vld [vmem:[#allocation3 + $0x230] sm:$0xff]  }
 0x123   :  { %v542_v6 = vadd.f32 %v3050_v2, %v541_v50  ;;  %v3535_v50 = vld [vmem:[#allocation3 + $0x1c8] sm:$0xff]   ;;  %v3551_v5 = vld [vmem:[#allocation3 + $0x1b0] sm:$0xff]  }
 0x124   :  { %v578_v9 = vsel %vm3786_vm12, %v573_v4, 0.0  ;;  %v3547_v0 = vld [vmem:[#allocation3 + $0x1e8] sm:$0xff]   ;;  %v3550_v4 = vld [vmem:[#allocation3 + $0x1f0] sm:$0xff]  }
 0x125   :  { %v2972_v10 = vpack.c.bf16 %v578_v9, %v577_v8  ;;  %v560_v11 = vrot.slane %v542_v6, 7  ;;  %v3548_v2 = vld [vmem:[#allocation3 + $0x1a8] sm:$0xff]   ;;  %v3552_v6 = vld [vmem:[#allocation3 + $0x238] sm:$0xff]  }
 0x126   :  { %v607_v12 = vld [vmem:[#allocation2 + $0x4] sm:$0xf]  ;;  %v606_v13 = vld [vmem:[#allocation2] sm:$0xf]  ;;  %v3553_v8 = vld [vmem:[#allocation3 + $0x1f8] sm:$0xff]  }
 0x127   :  { %3015 = vst [vmem:[#allocation2 + $0x8] sm:$0xff] %v2972_v10   ;;  %v561_v14 = vsel %vm552_vm6, %v558_v57, %v560_v11  ;;  %v2759_v15 = vcombine.low %v606_v13, %v607_v12  ;;  %v612_v18 = vld [vmem:[#allocation2] sm:$0xe]  ;;  %v3542_v57 = vld [vmem:[#allocation3 + $0x198] sm:$0xff]  }
 0x128   :  { %v569_v16 = vsel %vm568_vm7, %v561_v14, 0.0  ;;  %v2763_v23 = vcombine.low %v612_v18, %v607_v12  ;;  %v3554_v9 = vld [vmem:[#allocation3 + $0x1b8] sm:$0xff]  }
 0x129   :  { %v574_v17 = vmax.f32 %v569_v16, 0.0  ;;  %v635_v19 = vshll.u32 %v2759_v15, 16  ;;  %v633_v29 = vshrl.u32 %v2759_v15, 16 }
 0x12a   :  { %v661_v27 = vrot.slane %v2763_v23, 1 }
 0x12b   :  { %v579_v21 = vsel %vm3792_vm1, %v574_v17, 0.0  ;;  %v637_v26 = vrot.slane %v635_v19, 1 }
 0x12c   :  { %v2933_v22 = vpack.c.bf16 %v579_v21, %v579_v21 }
 0x12d   :  { %v638_v32 = vor.u32 %v637_v26, %v633_v29 }
 0x12e   :  { %605 = vst [vmem:[#allocation2 + $0x10] sm:$0x3] %v2933_v22  ;;  %v3526_v25 = vld [vmem:[#allocation2 + $0x8] sm:$0xff]  }
 0x12f   :  { %v662_v28 = vrot.slane %v3526_v25, 1  ;;  %v640_v30 = vshll.u32 %v3526_v25, 16  ;;  %v644_v37 = vshrl.u32 %v3526_v25, 16 }
 0x131   :  { %v663_v31 = vsel %vm234_vm4, %v661_v27, %v662_v28  ;;  %v642_v33 = vrot.slane %v640_v30, 1 }
 0x132   :  { %3335 = vmatmul.mubr.bf16.vlgmr.msra.gmra.mrb[12].mxu1 %v663_v31 }
 0x133   :  { %v643_v34 = vsel %vm204_vm5, %v638_v32, %v642_v33  ;;  %3338 = vmatprep.mubr.msk.bf16.mxu1 %vm3680_vm0, %v3679_v1  ;;  %v646_v40 = vor.u32 %v644_v37, %v642_v33  ;;  %3347 = vmatpush3.bf16.msra.mxu1 %v3531_v46  ;;  %v3647_v32 = vld [vmem:[%s4051_s0] sm:$0xff] }
 0x134   :  { %894 = vmatprep.mubr.bf16.mxu0 %v643_v34  ;;  %3348 = vmatprep.subr.bf16.mxu1 %v3679_v1 }
 0x135   :  { %v3529_v35 = vld [vmem:[#allocation2 + $0x10] ss:$0 sps:$4 sm:$0x33]   ;;  %895 = vmatmul.mubr.bf16.vlgmr.msra.gmra.mrb[12].mxu0 %v2759_v15 }
 0x136   :  { %v664_v36 = vrot.slane %v3529_v35, 1  ;;  %v648_v38 = vshll.u32 %v3529_v35, 16  ;;  %v652_v43 = vshrl.u32 %v3529_v35, 16  ;;  %v3530_v45 = vld [vmem:[#allocation2 + $0x10] ss:$0 sps:$4 sm:$0x11]   ;;  %3111 = vmatpush3.bf16.msra.mxu0 %v3533_v48 }
 0x137   :  { %3349 = vmatpush3.bf16.msra.mxu1 %v3534_v49  ;;  %3112 = vmatprep.subr.bf16.mxu0 %v3535_v50 }
 0x138   :  { %v665_v39 = vsel %vm234_vm4, %v662_v28, %v664_v36  ;;  %v650_v41 = vrot.slane %v648_v38, 1  ;;  %3350 = vmatprep.subr.bf16.mxu1 %v3679_v1 }
 0x13a   :  { %3339 = vmatmul.mubr.bf16.gmra.mrb[16].mxu1 %v665_v39  ;;  %v651_v42 = vsel %vm204_vm5, %v646_v40, %v650_v41  ;;  %v654_v44 = vor.u32 %v652_v43, %v650_v41  ;;  %3113 = vmatpush3.bf16.msra.mxu0 %v3536_v51  ;;  %v3648_v39 = vld [vmem:[%s4051_s0 + $0x8] sm:$0xff] }
 0x13b   :  { %902 = vmatprep.mubr.bf16.mxu0 %v651_v42  ;;  %3342 = vmatprep.mubr.msk.bf16.mxu1 %vm3680_vm0, %v3679_v1 }
 0x13c   :  { %3351 = vmatpush3.bf16.msra.mxu1 %v3537_v52  ;;  %3114 = vmatprep.subr.bf16.mxu0 %v3538_v53 }
 0x13d   :  { %903 = vmatmul.mubr.bf16.gmra.mrb[16].mxu0 %v3526_v25  ;;  %3352 = vmatprep.subr.bf16.mxu1 %v3679_v1 }
 0x13e   :  { %910 = vmatprep.mubr.bf16.mxu0 %v654_v44  ;;  %3115 = vmatpush3.bf16.msra.mxu0 %v3539_v54 }
 0x13f   :  { %3116 = vmatprep.subr.bf16.mxu0 %v3541_v56 }
 0x140   :  { %3353 = vmatpush3.bf16.msra.mxu1 %v3540_v55 }
 0x141   :  { %3354 = vmatprep.subr.bf16.mxu1 %v3679_v1 }
 0x142   :  { %3343 = vmatmul.mubr.bf16.gmra.mrb[20].mxu1 %v664_v36  ;;  %3117 = vmatpush3.bf16.msra.mxu0 %v3542_v57  ;;  %v3649_v57 = vld [vmem:[%s4051_s0 + $0x10] sm:$0xff] }
 0x143   :  { %3362 = vmatprep.mubr.msk.bf16.mxu1 %vm3680_vm0, %v3679_v1  ;;  %3118 = vmatprep.subr.bf16.mxu0 %v3544_v59 }
 0x144   :  { %3355 = vmatpush3.bf16.msra.mxu1 %v3543_v58 }
 0x145   :  { %911 = vmatmul.mubr.bf16.gmra.mrb[20].mxu0 %v3530_v45  ;;  %3356 = vmatprep.subr.bf16.mxu1 %v3679_v1 }
 0x146   :  { %3119 = vmatpush3.bf16.msra.mxu0 %v3545_v61 }
 0x147   :  { %3120 = vmatprep.subr.bf16.mxu0 %v3547_v0 }
 0x148   :  { %3357 = vmatpush3.bf16.msra.mxu1 %v3546_v62 }
 0x149   :  { %3358 = vmatprep.subr.bf16.mxu1 %v3679_v1 }
 0x14a   :  { %3121 = vmatpush3.bf16.msra.mxu0 %v3548_v2 }
 0x14b   :  { %3122 = vmatprep.subr.bf16.mxu0 %v3550_v4 }
 0x14c   :  { %3359 = vmatpush3.bf16.msra.mxu1 %v3549_v3  ;;  %v3650_v3 = vld [vmem:[%s4051_s0 + $0x18] sm:$0xff] }
 0x14d   :  { %3360 = vmatprep.subr.bf16.mxu1 %v3679_v1 }
 0x14e   :  { %3123 = vmatpush3.bf16.msra.mxu0 %v3551_v5 }
 0x14f   :  { %3124 = vmatprep.subr.bf16.mxu0 %v3553_v8 }
 0x150   :  { %3361 = vmatpush3.bf16.msra.mxu1 %v3552_v6 }
 0x151   :  { %3374 = vmatprep.subr.bf16.mxu1 %v3679_v1 }
 0x152   :  { %3125 = vmatpush3.bf16.msra.mxu0 %v3554_v9 }
 0x205   :  { %v952_v10 = vpop.f32.mrb[12].mxu1 }
 0x206   :  { %v3336_v11 = vpop.f32.mrb[13].mxu1 }
 0x207   :  { %v955_v12 = vpop.f32.mrb[14].mxu1 }
 0x208   :  { %v3081_v13 = vpop.f32.mrb[12].mxu0  ;;  %v3337_v14 = vpop.f32.mrb[15].mxu1 }
 0x209   :  { %v3082_v15 = vpop.f32.mrb[13].mxu0 }
 0x20a   :  { %v3083_v16 = vadd.f32 %v3082_v15, %v3081_v13  ;;  %v3084_v17 = vpop.f32.mrb[14].mxu0 }
 0x20b   :  { %v3085_v18 = vpop.f32.mrb[15].mxu0 }
 0x20c   :  { %v953_v19 = vadd.f32 %v3083_v16, %v952_v10  ;;  %v3086_v21 = vadd.f32 %v3085_v18, %v3084_v17  ;;  %v3651_v16 = vld [vmem:[%s4051_s0 + $0x20] sm:$0xf] }
 0x20d   :  { %v960_v22 = vpop.f32.mrb[16].mxu1 }
 0x20e   :  { %v979_v23 = vrot.slane %v953_v19, 7  ;;  %v956_v25 = vadd.f32 %v3086_v21, %v955_v12  ;;  %v3340_v26 = vpop.f32.mrb[17].mxu1 }
 0x20f   :  { %v963_v27 = vpop.f32.mrb[18].mxu1 }
 0x210   :  { %v993_v28 = vsel %vm552_vm6, 0.0, %v979_v23  ;;  %v980_v29 = vrot.slane %v956_v25, 7  ;;  %v3087_v30 = vpop.f32.mrb[16].mxu0  ;;  %v3341_v31 = vpop.f32.mrb[19].mxu1 }
 0x211   :  { %v3854_v33 = vadd.f32 %v3647_v32, %v993_v28  ;;  %v3088_v34 = vpop.f32.mrb[17].mxu0 }
 0x212   :  { %v981_v35 = vsel %vm552_vm6, %v979_v23, %v980_v29  ;;  %v3089_v36 = vadd.f32 %v3088_v34, %v3087_v30  ;;  %v3090_v37 = vpop.f32.mrb[18].mxu0 }
 0x213   :  { %v1000_v38 = vmax.f32 %v3854_v33, 0.0  ;;  %v3861_v40 = vadd.f32 %v3648_v39, %v981_v35  ;;  %v3091_v41 = vpop.f32.mrb[19].mxu0 }
 0x214   :  { %v961_v42 = vadd.f32 %v3089_v36, %v960_v22  ;;  %v3092_v43 = vadd.f32 %v3091_v41, %v3090_v37 }
 0x215   :  { %v1001_v44 = vmax.f32 %v3861_v40, 0.0  ;;  %v968_v45 = vpop.f32.mrb[20].mxu1  ;;  %v1005_v49 = vsel %vm3753_vm14, %v1000_v38, 0.0 }
 0x216   :  { %v982_v46 = vrot.slane %v961_v42, 7  ;;  %v964_v47 = vadd.f32 %v3092_v43, %v963_v27  ;;  %v3344_v48 = vpop.f32.mrb[21].mxu1 }
 0x217   :  { %v1006_v50 = vsel %vm3761_vm2, %v1001_v44, 0.0  ;;  %v971_v51 = vpop.f32.mrb[22].mxu1 }
 0x218   :  { %v2977_v52 = vpack.c.bf16 %v1006_v50, %v1005_v49  ;;  %v983_v53 = vsel %vm552_vm6, %v980_v29, %v982_v46  ;;  %v984_v54 = vrot.slane %v964_v47, 7  ;;  %v3093_v55 = vpop.f32.mrb[20].mxu0  ;;  %v3345_v56 = vpop.f32.mrb[23].mxu1  ;;  %v3560_v51 = vld [vmem:[#allocation3 + $0x2c0] sm:$0xff]  }
 0x219   :  { %v3872_v58 = vadd.f32 %v3649_v57, %v983_v53  ;;  %v3094_v59 = vpop.f32.mrb[21].mxu0  ;;  %v3562_v53 = vld [vmem:[#allocation3 + $0x240] sm:$0xff]   ;;  %v3565_v56 = vld [vmem:[#allocation3 + $0x248] sm:$0xff]   ;;  %v3566_v57 = vld [vmem:[#allocation3 + $0x2d0] sm:$0xff]  }
 0x21a   :  { %2978 = vst [vmem:[#allocation2] sm:$0xff] %v2977_v52   ;;  %v985_v61 = vsel %vm552_vm6, %v982_v46, %v984_v54  ;;  %v3095_v62 = vadd.f32 %v3094_v59, %v3093_v55  ;;  %v3096_v0 = vpop.f32.mrb[22].mxu0  ;;  %v3561_v52 = vld [vmem:[#allocation3 + $0x280] sm:$0xff]   ;;  %v3564_v55 = vld [vmem:[#allocation3 + $0x288] sm:$0xff]   ;;  %v3567_v59 = vld [vmem:[#allocation3 + $0x290] sm:$0xff]  }
 0x21b   :  { %v1002_v2 = vmax.f32 %v3872_v58, 0.0  ;;  %v3879_v4 = vadd.f32 %v3650_v3, %v985_v61  ;;  %v3097_v5 = vpop.f32.mrb[23].mxu0  ;;  %3155 = vmatprep.subr.bf16.mxu0 %v3561_v52  ;;  %v3568_v61 = vld [vmem:[#allocation3 + $0x250] sm:$0xff]   ;;  %v3570_v0 = vld [vmem:[#allocation3 + $0x298] sm:$0xff]   ;;  %v3572_v3 = vld [vmem:[#allocation3 + $0x2e0] sm:$0xff]  }
 0x21c   :  { %v969_v6 = vadd.f32 %v3095_v62, %v968_v45  ;;  %v3569_v62 = vld [vmem:[#allocation3 + $0x2d8] sm:$0xff]   ;;  %v3573_v5 = vld [vmem:[#allocation3 + $0x2a0] sm:$0xff]  }
 0x21d   :  { %v1003_v8 = vmax.f32 %v3879_v4, 0.0  ;;  %v1007_v10 = vsel %vm3774_vm3, %v1002_v2, 0.0  ;;  %v3571_v2 = vld [vmem:[#allocation3 + $0x258] sm:$0xff]  }
 0x21e   :  { %v986_v9 = vrot.slane %v969_v6, 7  ;;  %v3574_v6 = vld [vmem:[#allocation3 + $0x260] sm:$0xff]  }
 0x21f   :  { %v1008_v11 = vsel %vm3786_vm12, %v1003_v8, 0.0  ;;  %v3575_v8 = vld [vmem:[#allocation3 + $0x2e8] sm:$0xff]  }
 0x220   :  { %v2982_v12 = vpack.c.bf16 %v1008_v11, %v1007_v10  ;;  %v987_v13 = vsel %vm552_vm6, %v984_v54, %v986_v9  ;;  %v3563_v54 = vld [vmem:[#allocation3 + $0x2c8] sm:$0xff]   ;;  %v3578_v11 = vld [vmem:[#allocation3 + $0x2f0] sm:$0xff]  }
 0x221   :  { %v994_v14 = vsel %vm568_vm7, %v987_v13, 0.0  ;;  %v1037_v15 = vld [vmem:[#allocation2 + $0x4] sm:$0xf]  ;;  %v1036_v18 = vld [vmem:[#allocation2] sm:$0xf] }
 0x222   :  { %3016 = vst [vmem:[#allocation2 + $0x8] sm:$0xff] %v2982_v12   ;;  %v3891_v17 = vadd.f32 %v3651_v16, %v994_v14  ;;  %v2793_v19 = vcombine.low %v1036_v18, %v1037_v15  ;;  %v1042_v22 = vld [vmem:[#allocation2] sm:$0xe]  ;;  %v3579_v12 = vld [vmem:[#allocation3 + $0x2b0] sm:$0xff]   ;;  %v3581_v14 = vld [vmem:[#allocation3 + $0x2f8] sm:$0xff]  }
 0x223   :  { %v2797_v27 = vcombine.low %v1042_v22, %v1037_v15  ;;  %v3576_v9 = vld [vmem:[#allocation3 + $0x2a8] sm:$0xff]   ;;  %v3580_v13 = vld [vmem:[#allocation3 + $0x270] sm:$0xff]   ;;  %v3582_v15 = vld [vmem:[#allocation3 + $0x2b8] sm:$0xff]  }
 0x224   :  { %v1004_v21 = vmax.f32 %v3891_v17, 0.0  ;;  %v1065_v23 = vshll.u32 %v2793_v19, 16  ;;  %v1063_v32 = vshrl.u32 %v2793_v19, 16  ;;  %v3577_v10 = vld [vmem:[#allocation3 + $0x268] sm:$0xff]   ;;  %v3583_v16 = vld [vmem:[#allocation3 + $0x278] sm:$0xff]  }
 0x225   :  { %v1091_v30 = vrot.slane %v2797_v27, 1 }
 0x226   :  { %v1009_v25 = vsel %vm3792_vm1, %v1004_v21, 0.0  ;;  %v1067_v29 = vrot.slane %v1065_v23, 1 }
 0x227   :  { %v2938_v26 = vpack.c.bf16 %v1009_v25, %v1009_v25 }
 0x228   :  { %v1068_v36 = vor.u32 %v1067_v29, %v1063_v32 }
 0x229   :  { %1035 = vst [vmem:[#allocation2 + $0x10] sm:$0x3] %v2938_v26  ;;  %v3555_v28 = vld [vmem:[#allocation2 + $0x8] sm:$0xff]  }
 0x22a   :  { %v1092_v31 = vrot.slane %v3555_v28, 1  ;;  %v1070_v34 = vshll.u32 %v3555_v28, 16  ;;  %v1074_v42 = vshrl.u32 %v3555_v28, 16 }
 0x22c   :  { %v1093_v35 = vsel %vm234_vm4, %v1091_v30, %v1092_v31  ;;  %v1072_v37 = vrot.slane %v1070_v34, 1 }
 0x22d   :  { %3363 = vmatmul.mubr.bf16.vlgmr.msra.gmra.mrb[24].mxu1 %v1093_v35 }
 0x22e   :  { %v1073_v38 = vsel %vm204_vm5, %v1068_v36, %v1072_v37  ;;  %3366 = vmatprep.mubr.msk.bf16.mxu1 %vm3680_vm0, %v3679_v1  ;;  %v1076_v45 = vor.u32 %v1074_v42, %v1072_v37  ;;  %3375 = vmatpush3.bf16.msra.mxu1 %v3560_v51 }
 0x22f   :  { %1324 = vmatprep.mubr.bf16.mxu0 %v1073_v38  ;;  %3376 = vmatprep.subr.bf16.mxu1 %v3679_v1 }
 0x230   :  { %v3558_v39 = vld [vmem:[#allocation2 + $0x10] ss:$0 sps:$4 sm:$0x33]   ;;  %1325 = vmatmul.mubr.bf16.vlgmr.msra.gmra.mrb[24].mxu0 %v2793_v19 }
 0x231   :  { %v1094_v41 = vrot.slane %v3558_v39, 1  ;;  %v1078_v43 = vshll.u32 %v3558_v39, 16  ;;  %v1082_v48 = vshrl.u32 %v3558_v39, 16  ;;  %v3559_v50 = vld [vmem:[#allocation2 + $0x10] ss:$0 sps:$4 sm:$0x11]   ;;  %3156 = vmatpush3.bf16.msra.mxu0 %v3562_v53 }
 0x232   :  { %3377 = vmatpush3.bf16.msra.mxu1 %v3563_v54  ;;  %3157 = vmatprep.subr.bf16.mxu0 %v3564_v55 }
 0x233   :  { %v1095_v44 = vsel %vm234_vm4, %v1092_v31, %v1094_v41  ;;  %v1080_v46 = vrot.slane %v1078_v43, 1  ;;  %3378 = vmatprep.subr.bf16.mxu1 %v3679_v1 }
 0x235   :  { %3367 = vmatmul.mubr.bf16.gmra.mrb[28].mxu1 %v1095_v44  ;;  %v1081_v47 = vsel %vm204_vm5, %v1076_v45, %v1080_v46  ;;  %v1084_v49 = vor.u32 %v1082_v48, %v1080_v46  ;;  %3158 = vmatpush3.bf16.msra.mxu0 %v3565_v56 }
 0x236   :  { %1332 = vmatprep.mubr.bf16.mxu0 %v1081_v47  ;;  %3370 = vmatprep.mubr.msk.bf16.mxu1 %vm3680_vm0, %v3679_v1 }
 0x237   :  { %3379 = vmatpush3.bf16.msra.mxu1 %v3566_v57  ;;  %3159 = vmatprep.subr.bf16.mxu0 %v3567_v59 }
 0x238   :  { %1333 = vmatmul.mubr.bf16.gmra.mrb[28].mxu0 %v3555_v28  ;;  %3380 = vmatprep.subr.bf16.mxu1 %v3679_v1 }
 0x239   :  { %1340 = vmatprep.mubr.bf16.mxu0 %v1084_v49  ;;  %3160 = vmatpush3.bf16.msra.mxu0 %v3568_v61 }
 0x23a   :  { %3161 = vmatprep.subr.bf16.mxu0 %v3570_v0 }
 0x23b   :  { %3381 = vmatpush3.bf16.msra.mxu1 %v3569_v62 }
 0x23c   :  { %3382 = vmatprep.subr.bf16.mxu1 %v3679_v1 }
 0x23d   :  { %3371 = vmatmul.mubr.bf16.gmra.mrb[32].mxu1 %v1094_v41  ;;  %3162 = vmatpush3.bf16.msra.mxu0 %v3571_v2 }
 0x23e   :  { %3390 = vmatprep.mubr.msk.bf16.mxu1 %vm3680_vm0, %v3679_v1  ;;  %3163 = vmatprep.subr.bf16.mxu0 %v3573_v5 }
 0x23f   :  { %3383 = vmatpush3.bf16.msra.mxu1 %v3572_v3 }
 0x240   :  { %1341 = vmatmul.mubr.bf16.gmra.mrb[32].mxu0 %v3559_v50  ;;  %3384 = vmatprep.subr.bf16.mxu1 %v3679_v1 }
 0x241   :  { %3164 = vmatpush3.bf16.msra.mxu0 %v3574_v6 }
 0x242   :  { %3165 = vmatprep.subr.bf16.mxu0 %v3576_v9 }
 0x243   :  { %3385 = vmatpush3.bf16.msra.mxu1 %v3575_v8 }
 0x244   :  { %3386 = vmatprep.subr.bf16.mxu1 %v3679_v1 }
 0x245   :  { %3166 = vmatpush3.bf16.msra.mxu0 %v3577_v10 }
 0x246   :  { %3167 = vmatprep.subr.bf16.mxu0 %v3579_v12 }
 0x247   :  { %3387 = vmatpush3.bf16.msra.mxu1 %v3578_v11 }
 0x248   :  { %3388 = vmatprep.subr.bf16.mxu1 %v3679_v1 }
 0x249   :  { %3168 = vmatpush3.bf16.msra.mxu0 %v3580_v13 }
 0x24a   :  { %3169 = vmatprep.subr.bf16.mxu0 %v3582_v15 }
 0x24b   :  { %3389 = vmatpush3.bf16.msra.mxu1 %v3581_v14 }
 0x24c   :  { %3402 = vmatprep.subr.bf16.mxu1 %v3679_v1 }
 0x24d   :  { %3170 = vmatpush3.bf16.msra.mxu0 %v3583_v16 }
 0x300   :  { %v1382_v18 = vpop.f32.mrb[24].mxu1 }
 0x301   :  { %v3364_v19 = vpop.f32.mrb[25].mxu1 }
 0x302   :  { %v1385_v21 = vpop.f32.mrb[26].mxu1 }
 0x303   :  { %v3126_v22 = vpop.f32.mrb[24].mxu0  ;;  %v3365_v23 = vpop.f32.mrb[27].mxu1 }
 0x304   :  { %v3127_v25 = vpop.f32.mrb[25].mxu0 }
 0x305   :  { %v3128_v26 = vadd.f32 %v3127_v25, %v3126_v22  ;;  %v3129_v27 = vpop.f32.mrb[26].mxu0 }
 0x306   :  { %v3130_v28 = vpop.f32.mrb[27].mxu0 }
 0x307   :  { %v1383_v29 = vadd.f32 %v3128_v26, %v1382_v18  ;;  %v3131_v30 = vadd.f32 %v3130_v28, %v3129_v27 }
 0x308   :  { %v1390_v31 = vpop.f32.mrb[28].mxu1 }
 0x309   :  { %v1409_v32 = vrot.slane %v1383_v29, 7  ;;  %v1386_v34 = vadd.f32 %v3131_v30, %v1385_v21  ;;  %v3368_v35 = vpop.f32.mrb[29].mxu1 }
 0x30a   :  { %v1393_v36 = vpop.f32.mrb[30].mxu1 }
 0x30b   :  { %v1423_v37 = vsel %vm552_vm6, 0.0, %v1409_v32  ;;  %v1410_v38 = vrot.slane %v1386_v34, 7  ;;  %v3132_v39 = vpop.f32.mrb[28].mxu0  ;;  %v3369_v41 = vpop.f32.mrb[31].mxu1 }
 0x30c   :  { %v1425_v42 = vmax.f32 %v1423_v37, 0.0  ;;  %v3133_v43 = vpop.f32.mrb[29].mxu0 }
 0x30d   :  { %v1411_v44 = vsel %vm552_vm6, %v1409_v32, %v1410_v38  ;;  %v3134_v45 = vadd.f32 %v3133_v43, %v3132_v39  ;;  %v3135_v46 = vpop.f32.mrb[30].mxu0 }
 0x30e   :  { %v1426_v47 = vmax.f32 %v1411_v44, 0.0  ;;  %v3136_v48 = vpop.f32.mrb[31].mxu0  ;;  %v1430_v51 = vsel %vm3753_vm14, %v1425_v42, 0.0 }
 0x30f   :  { %v1391_v49 = vadd.f32 %v3134_v45, %v1390_v31  ;;  %v3137_v50 = vadd.f32 %v3136_v48, %v3135_v46 }
 0x310   :  { %v1431_v52 = vsel %vm3761_vm2, %v1426_v47, 0.0  ;;  %v1398_v53 = vpop.f32.mrb[32].mxu1 }
 0x311   :  { %v2987_v54 = vpack.c.bf16 %v1431_v52, %v1430_v51  ;;  %v1412_v55 = vrot.slane %v1391_v49, 7  ;;  %v1394_v56 = vadd.f32 %v3137_v50, %v1393_v36  ;;  %v3372_v57 = vpop.f32.mrb[33].mxu1 }
 0x312   :  { %v1401_v59 = vpop.f32.mrb[34].mxu1  ;;  %v3592_v57 = vld [vmem:[#allocation3 + $0x388] sm:$0xff]  }
 0x313   :  { %2988 = vst [vmem:[#allocation2] sm:$0xff] %v2987_v54   ;;  %v1413_v61 = vsel %vm552_vm6, %v1410_v38, %v1412_v55  ;;  %v1414_v62 = vrot.slane %v1394_v56, 7  ;;  %v3138_v0 = vpop.f32.mrb[32].mxu0  ;;  %v3373_v2 = vpop.f32.mrb[35].mxu1  ;;  %v3589_v54 = vld [vmem:[#allocation3 + $0x380] sm:$0xff]   ;;  %v3593_v59 = vld [vmem:[#allocation3 + $0x348] sm:$0xff]  }
 0x314   :  { %v1427_v3 = vmax.f32 %v1413_v61, 0.0  ;;  %v3139_v5 = vpop.f32.mrb[33].mxu0  ;;  %v3591_v56 = vld [vmem:[#allocation3 + $0x300] sm:$0xff]   ;;  %v3594_v61 = vld [vmem:[#allocation3 + $0x308] sm:$0xff]   ;;  %v3597_v2 = vld [vmem:[#allocation3 + $0x310] sm:$0xff]  }
 0x315   :  { %v1415_v6 = vsel %vm552_vm6, %v1412_v55, %v1414_v62  ;;  %v3140_v8 = vadd.f32 %v3139_v5, %v3138_v0  ;;  %v3141_v9 = vpop.f32.mrb[34].mxu0  ;;  %v3590_v55 = vld [vmem:[#allocation3 + $0x340] sm:$0xff]   ;;  %v3596_v0 = vld [vmem:[#allocation3 + $0x350] sm:$0xff]   ;;  %v3599_v5 = vld [vmem:[#allocation3 + $0x358] sm:$0xff]  }
 0x316   :  { %v1428_v10 = vmax.f32 %v1415_v6, 0.0  ;;  %v3142_v11 = vpop.f32.mrb[35].mxu0  ;;  %v1432_v13 = vsel %vm3774_vm3, %v1427_v3, 0.0  ;;  %3200 = vmatprep.subr.bf16.mxu0 %v3590_v55  ;;  %v3598_v3 = vld [vmem:[#allocation3 + $0x398] sm:$0xff]   ;;  %v3602_v9 = vld [vmem:[#allocation3 + $0x360] sm:$0xff]  }
 0x317   :  { %v1399_v12 = vadd.f32 %v3140_v8, %v1398_v53  ;;  %v3600_v6 = vld [vmem:[#allocation3 + $0x318] sm:$0xff]   ;;  %v3601_v8 = vld [vmem:[#allocation3 + $0x3a0] sm:$0xff]   ;;  %v3604_v11 = vld [vmem:[#allocation3 + $0x3a8] sm:$0xff]  }
 0x318   :  { %v1433_v14 = vsel %vm3786_vm12, %v1428_v10, 0.0  ;;  %v3603_v10 = vld [vmem:[#allocation3 + $0x320] sm:$0xff]  }
 0x319   :  { %v2992_v15 = vpack.c.bf16 %v1433_v14, %v1432_v13  ;;  %v1416_v16 = vrot.slane %v1399_v12, 7  ;;  %v3605_v12 = vld [vmem:[#allocation3 + $0x368] sm:$0xff]   ;;  %v3607_v14 = vld [vmem:[#allocation3 + $0x3b0] sm:$0xff]  }
 0x31a   :  { %v1462_v18 = vld [vmem:[#allocation2 + $0x4] sm:$0xf]  ;;  %v1461_v19 = vld [vmem:[#allocation2] sm:$0xf] }
 0x31b   :  { %3017 = vst [vmem:[#allocation2 + $0x8] sm:$0xff] %v2992_v15   ;;  %v1417_v21 = vsel %vm552_vm6, %v1414_v62, %v1416_v16  ;;  %v2827_v22 = vcombine.low %v1461_v19, %v1462_v18  ;;  %v1467_v26 = vld [vmem:[#allocation2] sm:$0xe]  ;;  %v3595_v62 = vld [vmem:[#allocation3 + $0x390] sm:$0xff]   ;;  %v3611_v19 = vld [vmem:[#allocation3 + $0x378] sm:$0xff]  }
 0x31c   :  { %v1424_v23 = vsel %vm568_vm7, %v1417_v21, 0.0  ;;  %v2831_v30 = vcombine.low %v1467_v26, %v1462_v18  ;;  %v3606_v13 = vld [vmem:[#allocation3 + $0x328] sm:$0xff]   ;;  %v3608_v15 = vld [vmem:[#allocation3 + $0x370] sm:$0xff]   ;;  %v3610_v18 = vld [vmem:[#allocation3 + $0x3b8] sm:$0xff]  }
 0x31d   :  { %v1429_v25 = vmax.f32 %v1424_v23, 0.0  ;;  %v1490_v27 = vshll.u32 %v2827_v22, 16  ;;  %v1488_v36 = vshrl.u32 %v2827_v22, 16  ;;  %v3609_v16 = vld [vmem:[#allocation3 + $0x330] sm:$0xff]   ;;  %v3612_v21 = vld [vmem:[#allocation3 + $0x338] sm:$0xff]  }
 0x31e   :  { %v1516_v34 = vrot.slane %v2831_v30, 1 }
 0x31f   :  { %v1434_v28 = vsel %vm3792_vm1, %v1429_v25, 0.0  ;;  %v1492_v32 = vrot.slane %v1490_v27, 1 }
 0x320   :  { %v2943_v29 = vpack.c.bf16 %v1434_v28, %v1434_v28 }
 0x321   :  { %v1493_v39 = vor.u32 %v1492_v32, %v1488_v36 }
 0x322   :  { %1460 = vst [vmem:[#allocation2 + $0x10] sm:$0x3] %v2943_v29  ;;  %v3584_v31 = vld [vmem:[#allocation2 + $0x8] sm:$0xff]  }
 0x323   :  { %v1517_v35 = vrot.slane %v3584_v31, 1  ;;  %v1495_v37 = vshll.u32 %v3584_v31, 16  ;;  %v1499_v45 = vshrl.u32 %v3584_v31, 16 }
 0x325   :  { %v1518_v38 = vsel %vm234_vm4, %v1516_v34, %v1517_v35  ;;  %v1497_v41 = vrot.slane %v1495_v37, 1 }
 0x326   :  { %3391 = vmatmul.mubr.bf16.vlgmr.msra.gmra.mrb[36].mxu1 %v1518_v38 }
 0x327   :  { %v1498_v42 = vsel %vm204_vm5, %v1493_v39, %v1497_v41  ;;  %3394 = vmatprep.mubr.msk.bf16.mxu1 %vm3680_vm0, %v3679_v1  ;;  %v1501_v48 = vor.u32 %v1499_v45, %v1497_v41  ;;  %3403 = vmatpush3.bf16.msra.mxu1 %v3589_v54 }
 0x328   :  { %1749 = vmatprep.mubr.bf16.mxu0 %v1498_v42  ;;  %3404 = vmatprep.subr.bf16.mxu1 %v3679_v1 }
 0x329   :  { %v3587_v43 = vld [vmem:[#allocation2 + $0x10] ss:$0 sps:$4 sm:$0x33]   ;;  %1750 = vmatmul.mubr.bf16.vlgmr.msra.gmra.mrb[36].mxu0 %v2827_v22 }
 0x32a   :  { %v1519_v44 = vrot.slane %v3587_v43, 1  ;;  %v1503_v46 = vshll.u32 %v3587_v43, 16  ;;  %v1507_v51 = vshrl.u32 %v3587_v43, 16  ;;  %v3588_v53 = vld [vmem:[#allocation2 + $0x10] ss:$0 sps:$4 sm:$0x11]   ;;  %3201 = vmatpush3.bf16.msra.mxu0 %v3591_v56 }
 0x32b   :  { %3405 = vmatpush3.bf16.msra.mxu1 %v3592_v57  ;;  %3202 = vmatprep.subr.bf16.mxu0 %v3593_v59 }
 0x32c   :  { %v1520_v47 = vsel %vm234_vm4, %v1517_v35, %v1519_v44  ;;  %v1505_v49 = vrot.slane %v1503_v46, 1  ;;  %3406 = vmatprep.subr.bf16.mxu1 %v3679_v1 }
 0x32e   :  { %3395 = vmatmul.mubr.bf16.gmra.mrb[40].mxu1 %v1520_v47  ;;  %v1506_v50 = vsel %vm204_vm5, %v1501_v48, %v1505_v49  ;;  %v1509_v52 = vor.u32 %v1507_v51, %v1505_v49  ;;  %3203 = vmatpush3.bf16.msra.mxu0 %v3594_v61 }
 0x32f   :  { %1757 = vmatprep.mubr.bf16.mxu0 %v1506_v50  ;;  %3398 = vmatprep.mubr.msk.bf16.mxu1 %vm3680_vm0, %v3679_v1 }
 0x330   :  { %3407 = vmatpush3.bf16.msra.mxu1 %v3595_v62  ;;  %3204 = vmatprep.subr.bf16.mxu0 %v3596_v0 }
 0x331   :  { %1758 = vmatmul.mubr.bf16.gmra.mrb[40].mxu0 %v3584_v31  ;;  %3408 = vmatprep.subr.bf16.mxu1 %v3679_v1 }
 0x332   :  { %1765 = vmatprep.mubr.bf16.mxu0 %v1509_v52  ;;  %3205 = vmatpush3.bf16.msra.mxu0 %v3597_v2 }
 0x333   :  { %3206 = vmatprep.subr.bf16.mxu0 %v3599_v5 }
 0x334   :  { %3409 = vmatpush3.bf16.msra.mxu1 %v3598_v3 }
 0x335   :  { %3410 = vmatprep.subr.bf16.mxu1 %v3679_v1 }
 0x336   :  { %3399 = vmatmul.mubr.bf16.gmra.mrb[44].mxu1 %v1519_v44  ;;  %3207 = vmatpush3.bf16.msra.mxu0 %v3600_v6 }
 0x337   :  { %3418 = vmatprep.mubr.msk.bf16.mxu1 %vm3680_vm0, %v3679_v1  ;;  %3208 = vmatprep.subr.bf16.mxu0 %v3602_v9 }
 0x338   :  { %3411 = vmatpush3.bf16.msra.mxu1 %v3601_v8 }
 0x339   :  { %1766 = vmatmul.mubr.bf16.gmra.mrb[44].mxu0 %v3588_v53  ;;  %3412 = vmatprep.subr.bf16.mxu1 %v3679_v1 }
 0x33a   :  { %3209 = vmatpush3.bf16.msra.mxu0 %v3603_v10 }
 0x33b   :  { %3210 = vmatprep.subr.bf16.mxu0 %v3605_v12 }
 0x33c   :  { %3413 = vmatpush3.bf16.msra.mxu1 %v3604_v11 }
 0x33d   :  { %3414 = vmatprep.subr.bf16.mxu1 %v3679_v1 }
 0x33e   :  { %3211 = vmatpush3.bf16.msra.mxu0 %v3606_v13 }
 0x33f   :  { %3212 = vmatprep.subr.bf16.mxu0 %v3608_v15 }
 0x340   :  { %3415 = vmatpush3.bf16.msra.mxu1 %v3607_v14 }
 0x341   :  { %3416 = vmatprep.subr.bf16.mxu1 %v3679_v1 }
 0x342   :  { %3213 = vmatpush3.bf16.msra.mxu0 %v3609_v16 }
 0x343   :  { %3214 = vmatprep.subr.bf16.mxu0 %v3611_v19 }
 0x344   :  { %3417 = vmatpush3.bf16.msra.mxu1 %v3610_v18 }
 0x345   :  { %3430 = vmatprep.subr.bf16.mxu1 %v3679_v1 }
 0x346   :  { %3215 = vmatpush3.bf16.msra.mxu0 %v3612_v21 }
 0x3f9   :  { %v1807_v22 = vpop.f32.mrb[36].mxu1 }
 0x3fa   :  { %v3392_v23 = vpop.f32.mrb[37].mxu1 }
 0x3fb   :  { %v1810_v25 = vpop.f32.mrb[38].mxu1 }
 0x3fc   :  { %v3171_v26 = vpop.f32.mrb[36].mxu0  ;;  %v3393_v27 = vpop.f32.mrb[39].mxu1 }
 0x3fd   :  { %v3172_v28 = vpop.f32.mrb[37].mxu0 }
 0x3fe   :  { %v3173_v29 = vadd.f32 %v3172_v28, %v3171_v26  ;;  %v3174_v30 = vpop.f32.mrb[38].mxu0 }
 0x3ff   :  { %v3175_v31 = vpop.f32.mrb[39].mxu0 }
 0x400   :  { %v1808_v32 = vadd.f32 %v3173_v29, %v1807_v22  ;;  %v3176_v34 = vadd.f32 %v3175_v31, %v3174_v30 }
 0x401   :  { %v1815_v35 = vpop.f32.mrb[40].mxu1 }
 0x402   :  { %v1834_v36 = vrot.slane %v1808_v32, 7  ;;  %v1811_v37 = vadd.f32 %v3176_v34, %v1810_v25  ;;  %v3396_v38 = vpop.f32.mrb[41].mxu1 }
 0x403   :  { %v1818_v39 = vpop.f32.mrb[42].mxu1 }
 0x404   :  { %v1848_v41 = vsel %vm552_vm6, 0.0, %v1834_v36  ;;  %v1835_v42 = vrot.slane %v1811_v37, 7  ;;  %v3177_v43 = vpop.f32.mrb[40].mxu0  ;;  %v3397_v44 = vpop.f32.mrb[43].mxu1 }
 0x405   :  { %v3950_v45 = vadd.f32 %v1848_v41, %v3854_v33  ;;  %v3178_v46 = vpop.f32.mrb[41].mxu0 }
 0x406   :  { %v1836_v47 = vsel %vm552_vm6, %v1834_v36, %v1835_v42  ;;  %v3179_v48 = vadd.f32 %v3178_v46, %v3177_v43  ;;  %v3180_v49 = vpop.f32.mrb[42].mxu0 }
 0x407   :  { %v1855_v50 = vmax.f32 %v3950_v45, 0.0  ;;  %v3955_v51 = vadd.f32 %v1836_v47, %v3861_v40  ;;  %v3181_v52 = vpop.f32.mrb[43].mxu0 }
 0x408   :  { %v1816_v53 = vadd.f32 %v3179_v48, %v1815_v35  ;;  %v3182_v54 = vadd.f32 %v3181_v52, %v3180_v49 }
 0x409   :  { %v1856_v55 = vmax.f32 %v3955_v51, 0.0  ;;  %v1823_v56 = vpop.f32.mrb[44].mxu1  ;;  %v1860_v61 = vsel %vm3753_vm14, %v1855_v50, 0.0 }
 0x40a   :  { %v1837_v57 = vrot.slane %v1816_v53, 7  ;;  %v1819_v59 = vadd.f32 %v3182_v54, %v1818_v39  ;;  %v3400_v33 = vpop.f32.mrb[45].mxu1 }
 0x40b   :  { %v1861_v62 = vsel %vm3761_vm2, %v1856_v55, 0.0  ;;  %v1826_v0 = vpop.f32.mrb[46].mxu1  ;;  %v3618_v33 = vld [vmem:[#allocation3 + $0x440] sm:$0xff]  }
 0x40c   :  { %v2997_v2 = vpack.c.bf16 %v1861_v62, %v1860_v61  ;;  %v1838_v40 = vsel %vm552_vm6, %v1835_v42, %v1837_v57  ;;  %v1839_v3 = vrot.slane %v1819_v59, 7  ;;  %v3183_v5 = vpop.f32.mrb[44].mxu0  ;;  %v3401_v6 = vpop.f32.mrb[47].mxu1  ;;  %v3619_v61 = vld [vmem:[#allocation3 + $0x400] sm:$0xff]   ;;  %v3621_v0 = vld [vmem:[#allocation3 + $0x448] sm:$0xff]  }
 0x40d   :  { %v3964_v8 = vadd.f32 %v1838_v40, %v3872_v58  ;;  %v3184_v9 = vpop.f32.mrb[45].mxu0  ;;  %v3620_v62 = vld [vmem:[#allocation3 + $0x3c0] sm:$0xff]   ;;  %3245 = vmatprep.subr.bf16.mxu0 %v3619_v61  ;;  %v3623_v40 = vld [vmem:[#allocation3 + $0x3c8] sm:$0xff]   ;;  %v3626_v6 = vld [vmem:[#allocation3 + $0x3d0] sm:$0xff]  }
 0x40e   :  { %2998 = vst [vmem:[#allocation2] sm:$0xff] %v2997_v2   ;;  %v1840_v10 = vsel %vm552_vm6, %v1837_v57, %v1839_v3  ;;  %v3185_v11 = vadd.f32 %v3184_v9, %v3183_v5  ;;  %v3186_v12 = vpop.f32.mrb[46].mxu0  ;;  %v3622_v2 = vld [vmem:[#allocation3 + $0x408] sm:$0xff]   ;;  %v3625_v5 = vld [vmem:[#allocation3 + $0x410] sm:$0xff]   ;;  %v3627_v9 = vld [vmem:[#allocation3 + $0x458] sm:$0xff]  }
 0x40f   :  { %v1857_v13 = vmax.f32 %v3964_v8, 0.0  ;;  %v3969_v14 = vadd.f32 %v1840_v10, %v3879_v4  ;;  %v3187_v15 = vpop.f32.mrb[47].mxu0  ;;  %v3628_v10 = vld [vmem:[#allocation3 + $0x418] sm:$0xff]   ;;  %v3630_v12 = vld [vmem:[#allocation3 + $0x460] sm:$0xff]  }
 0x410   :  { %v1824_v16 = vadd.f32 %v3185_v11, %v1823_v56  ;;  %v3629_v11 = vld [vmem:[#allocation3 + $0x3d8] sm:$0xff]   ;;  %v3632_v15 = vld [vmem:[#allocation3 + $0x3e0] sm:$0xff]  }
 0x411   :  { %v1858_v18 = vmax.f32 %v3969_v14, 0.0  ;;  %v1862_v58 = vsel %vm3774_vm3, %v1857_v13, 0.0  ;;  %v3631_v13 = vld [vmem:[#allocation3 + $0x420] sm:$0xff]  }
 0x412   :  { %v1841_v19 = vrot.slane %v1824_v16, 7  ;;  %v3633_v16 = vld [vmem:[#allocation3 + $0x468] sm:$0xff]  }
 0x413   :  { %v1863_v21 = vsel %vm3786_vm12, %v1858_v18, 0.0  ;;  %v3634_v18 = vld [vmem:[#allocation3 + $0x428] sm:$0xff]  }
 0x414   :  { %v3002_v22 = vpack.c.bf16 %v1863_v21, %v1862_v58  ;;  %v1842_v23 = vsel %vm552_vm6, %v1839_v3, %v1841_v19  ;;  %v3624_v3 = vld [vmem:[#allocation3 + $0x450] sm:$0xff]   ;;  %v3635_v19 = vld [vmem:[#allocation3 + $0x3e8] sm:$0xff]  }
 0x415   :  { %v1849_v25 = vsel %vm568_vm7, %v1842_v23, 0.0  ;;  %v1892_v26 = vld [vmem:[#allocation2 + $0x4] sm:$0xf]  ;;  %v1891_v27 = vld [vmem:[#allocation2] sm:$0xf]  ;;  %v3639_v23 = vld [vmem:[#allocation3 + $0x478] sm:$0xff]  }
 0x416   :  { %3018 = vst [vmem:[#allocation2 + $0x8] sm:$0xff] %v3002_v22   ;;  %v3979_v4 = vadd.f32 %v1849_v25, %v3891_v17  ;;  %v2861_v28 = vcombine.low %v1891_v27, %v1892_v26  ;;  %v1897_v30 = vld [vmem:[#allocation2] sm:$0xe]  ;;  %v3636_v58 = vld [vmem:[#allocation3 + $0x470] sm:$0xff]   ;;  %v3640_v25 = vld [vmem:[#allocation3 + $0x438] sm:$0xff]  }
 0x417   :  { %v2865_v35 = vcombine.low %v1897_v30, %v1892_v26  ;;  %v3637_v21 = vld [vmem:[#allocation3 + $0x430] sm:$0xff]   ;;  %v3641_v26 = vld [vmem:[#allocation3 + $0x3f8] sm:$0xff]  }
 0x418   :  { %v1859_v29 = vmax.f32 %v3979_v4, 0.0  ;;  %v1920_v31 = vshll.u32 %v2861_v28, 16  ;;  %v1918_v41 = vshrl.u32 %v2861_v28, 16  ;;  %v3638_v22 = vld [vmem:[#allocation3 + $0x3f0] sm:$0xff]  }
 0x419   :  { %v1946_v38 = vrot.slane %v2865_v35, 1 }
 0x41a   :  { %v1864_v32 = vsel %vm3792_vm1, %v1859_v29, 0.0  ;;  %v1922_v37 = vrot.slane %v1920_v31, 1 }
 0x41b   :  { %v2948_v34 = vpack.c.bf16 %v1864_v32, %v1864_v32 }
 0x41c   :  { %v1923_v43 = vor.u32 %v1922_v37, %v1918_v41 }
 0x41d   :  { %1890 = vst [vmem:[#allocation2 + $0x10] sm:$0x3] %v2948_v34  ;;  %v3613_v36 = vld [vmem:[#allocation2 + $0x8] sm:$0xff]  }
 0x41e   :  { %v1947_v39 = vrot.slane %v3613_v36, 1  ;;  %v1925_v42 = vshll.u32 %v3613_v36, 16  ;;  %v1929_v49 = vshrl.u32 %v3613_v36, 16 }
 0x420   :  { %v1948_v17 = vsel %vm234_vm4, %v1946_v38, %v1947_v39  ;;  %v1927_v44 = vrot.slane %v1925_v42, 1 }
 0x421   :  { %3419 = vmatmul.mubr.bf16.vlgmr.msra.gmra.mrb[48].mxu1 %v1948_v17 }
 0x422   :  { %v1928_v46 = vsel %vm204_vm5, %v1923_v43, %v1927_v44  ;;  %3422 = vmatprep.mubr.msk.bf16.mxu1 %vm3680_vm0, %v3679_v1  ;;  %v1931_v53 = vor.u32 %v1929_v49, %v1927_v44  ;;  %3431 = vmatpush3.bf16.msra.mxu1 %v3618_v33 }
 0x423   :  { %2179 = vmatprep.mubr.bf16.mxu0 %v1928_v46  ;;  %3432 = vmatprep.subr.bf16.mxu1 %v3679_v1 }
 0x424   :  { %v3616_v47 = vld [vmem:[#allocation2 + $0x10] ss:$0 sps:$4 sm:$0x33]   ;;  %2180 = vmatmul.mubr.bf16.vlgmr.msra.gmra.mrb[48].mxu0 %v2861_v28 }
 0x425   :  { %v1949_v48 = vrot.slane %v3616_v47, 1  ;;  %v1933_v50 = vshll.u32 %v3616_v47, 16  ;;  %v1937_v56 = vshrl.u32 %v3616_v47, 16  ;;  %v3617_v59 = vld [vmem:[#allocation2 + $0x10] ss:$0 sps:$4 sm:$0x11]   ;;  %3246 = vmatpush3.bf16.msra.mxu0 %v3620_v62 }
 0x426   :  { %3433 = vmatpush3.bf16.msra.mxu1 %v3621_v0  ;;  %3247 = vmatprep.subr.bf16.mxu0 %v3622_v2 }
 0x427   :  { %v1950_v52 = vsel %vm234_vm4, %v1947_v39, %v1949_v48  ;;  %v1935_v54 = vrot.slane %v1933_v50, 1  ;;  %3434 = vmatprep.subr.bf16.mxu1 %v3679_v1 }
 0x429   :  { %3423 = vmatmul.mubr.bf16.gmra.mrb[52].mxu1 %v1950_v52  ;;  %v1936_v55 = vsel %vm204_vm5, %v1931_v53, %v1935_v54  ;;  %v1939_v57 = vor.u32 %v1937_v56, %v1935_v54  ;;  %3248 = vmatpush3.bf16.msra.mxu0 %v3623_v40 }
 0x42a   :  { %2187 = vmatprep.mubr.bf16.mxu0 %v1936_v55  ;;  %3426 = vmatprep.mubr.msk.bf16.mxu1 %vm3680_vm0, %v3679_v1 }
 0x42b   :  { %3435 = vmatpush3.bf16.msra.mxu1 %v3624_v3  ;;  %3249 = vmatprep.subr.bf16.mxu0 %v3625_v5 }
 0x42c   :  { %2188 = vmatmul.mubr.bf16.gmra.mrb[52].mxu0 %v3613_v36  ;;  %3436 = vmatprep.subr.bf16.mxu1 %v3679_v1 }
 0x42d   :  { %2195 = vmatprep.mubr.bf16.mxu0 %v1939_v57  ;;  %3250 = vmatpush3.bf16.msra.mxu0 %v3626_v6 }
 0x42e   :  { %3251 = vmatprep.subr.bf16.mxu0 %v3628_v10 }
 0x42f   :  { %3437 = vmatpush3.bf16.msra.mxu1 %v3627_v9 }
 0x430   :  { %3438 = vmatprep.subr.bf16.mxu1 %v3679_v1 }
 0x431   :  { %3427 = vmatmul.mubr.bf16.gmra.mrb[56].mxu1 %v1949_v48  ;;  %3252 = vmatpush3.bf16.msra.mxu0 %v3629_v11 }
 0x432   :  { %3446 = vmatprep.mubr.msk.bf16.mxu1 %vm3680_vm0, %v3679_v1  ;;  %3253 = vmatprep.subr.bf16.mxu0 %v3631_v13 }
 0x433   :  { %3439 = vmatpush3.bf16.msra.mxu1 %v3630_v12 }
 0x434   :  { %2196 = vmatmul.mubr.bf16.gmra.mrb[56].mxu0 %v3617_v59  ;;  %3440 = vmatprep.subr.bf16.mxu1 %v3679_v1 }
 0x435   :  { %3254 = vmatpush3.bf16.msra.mxu0 %v3632_v15 }
 0x436   :  { %3255 = vmatprep.subr.bf16.mxu0 %v3634_v18 }
 0x437   :  { %3441 = vmatpush3.bf16.msra.mxu1 %v3633_v16 }
 0x438   :  { %3442 = vmatprep.subr.bf16.mxu1 %v3679_v1 }
 0x439   :  { %3256 = vmatpush3.bf16.msra.mxu0 %v3635_v19 }
 0x43a   :  { %3257 = vmatprep.subr.bf16.mxu0 %v3637_v21 }
 0x43b   :  { %3443 = vmatpush3.bf16.msra.mxu1 %v3636_v58 }
 0x43c   :  { %3444 = vmatprep.subr.bf16.mxu1 %v3679_v1 }
 0x43d   :  { %3258 = vmatpush3.bf16.msra.mxu0 %v3638_v22 }
 0x43e   :  { %3259 = vmatprep.subr.bf16.mxu0 %v3640_v25 }
 0x43f   :  { %3445 = vmatpush3.bf16.msra.mxu1 %v3639_v23 }
 0x441   :  { %3260 = vmatpush3.bf16.msra.mxu0 %v3641_v26 }
 0x4f4   :  { %v2237_v27 = vpop.f32.mrb[48].mxu1 }
 0x4f5   :  { %v3420_v28 = vpop.f32.mrb[49].mxu1 }
 0x4f6   :  { %v2240_v29 = vpop.f32.mrb[50].mxu1 }
 0x4f7   :  { %v3216_v30 = vpop.f32.mrb[48].mxu0  ;;  %v3421_v31 = vpop.f32.mrb[51].mxu1 }
 0x4f8   :  { %v3217_v32 = vpop.f32.mrb[49].mxu0 }
 0x4f9   :  { %v3218_v34 = vadd.f32 %v3217_v32, %v3216_v30  ;;  %v3219_v35 = vpop.f32.mrb[50].mxu0 }
 0x4fa   :  { %v3220_v36 = vpop.f32.mrb[51].mxu0 }
 0x4fb   :  { %v2238_v37 = vadd.f32 %v3218_v34, %v2237_v27  ;;  %v3221_v38 = vadd.f32 %v3220_v36, %v3219_v35 }
 0x4fc   :  { %v2245_v39 = vpop.f32.mrb[52].mxu1 }
 0x4fd   :  { %v2264_v41 = vrot.slane %v2238_v37, 7  ;;  %v2241_v42 = vadd.f32 %v3221_v38, %v2240_v29  ;;  %v3424_v17 = vpop.f32.mrb[53].mxu1 }
 0x4fe   :  { %v2248_v43 = vpop.f32.mrb[54].mxu1 }
 0x4ff   :  { %v2278_v44 = vsel %vm552_vm6, 0.0, %v2264_v41  ;;  %v2265_v46 = vrot.slane %v2241_v42, 7  ;;  %v3222_v47 = vpop.f32.mrb[52].mxu0  ;;  %v3425_v48 = vpop.f32.mrb[55].mxu1 }
 0x500   :  { %v2280_v49 = vmax.f32 %v2278_v44, 0.0  ;;  %v3223_v50 = vpop.f32.mrb[53].mxu0 }
 0x501   :  { %v2266_v52 = vsel %vm552_vm6, %v2264_v41, %v2265_v46  ;;  %v3224_v53 = vadd.f32 %v3223_v50, %v3222_v47  ;;  %v3225_v54 = vpop.f32.mrb[54].mxu0 }
 0x502   :  { %v2281_v55 = vmax.f32 %v2266_v52, 0.0  ;;  %v3226_v56 = vpop.f32.mrb[55].mxu0  ;;  %v2285_v33 = vsel %vm3753_vm14, %v2280_v49, 0.0 }
 0x503   :  { %v2246_v57 = vadd.f32 %v3224_v53, %v2245_v39  ;;  %v3227_v59 = vadd.f32 %v3226_v56, %v3225_v54 }
 0x504   :  { %v2286_v61 = vsel %vm3761_vm2, %v2281_v55, 0.0  ;;  %v2253_v62 = vpop.f32.mrb[56].mxu1 }
 0x505   :  { %v3007_v0 = vpack.c.bf16 %v2286_v61, %v2285_v33  ;;  %v2267_v2 = vrot.slane %v2246_v57, 7  ;;  %v2249_v40 = vadd.f32 %v3227_v59, %v2248_v43  ;;  %v3428_v3 = vpop.f32.mrb[57].mxu1 }
 0x506   :  { %v2256_v5 = vpop.f32.mrb[58].mxu1 }
 0x507   :  { %3008 = vst [vmem:[#allocation2] sm:$0xff] %v3007_v0   ;;  %v2268_v6 = vsel %vm552_vm6, %v2265_v46, %v2267_v2  ;;  %v2269_v9 = vrot.slane %v2249_v40, 7  ;;  %v3228_v10 = vpop.f32.mrb[56].mxu0  ;;  %v3429_v11 = vpop.f32.mrb[59].mxu1 }
 0x508   :  { %v2282_v12 = vmax.f32 %v2268_v6, 0.0  ;;  %v3229_v13 = vpop.f32.mrb[57].mxu0 }
 0x509   :  { %v2270_v60 = vsel %vm552_vm6, %v2267_v2, %v2269_v9  ;;  %v3230_v15 = vadd.f32 %v3229_v13, %v3228_v10  ;;  %v3231_v16 = vpop.f32.mrb[58].mxu0 }
 0x50a   :  { %v2283_v63 = vmax.f32 %v2270_v60, 0.0  ;;  %v3232_v18 = vpop.f32.mrb[59].mxu0  ;;  %v2287_v58 = vsel %vm3774_vm3, %v2282_v12, 0.0 }
 0x50b   :  { %v2254_v19 = vadd.f32 %v3230_v15, %v2253_v62 }
 0x50c   :  { %v2288_v21 = vsel %vm3786_vm12, %v2283_v63, 0.0 }
 0x50d   :  { %v3012_v22 = vpack.c.bf16 %v2288_v21, %v2287_v58  ;;  %v2271_v23 = vrot.slane %v2254_v19, 7 }
 0x50e   :  { %v2317_v25 = vld [vmem:[#allocation2 + $0x4] sm:$0xf]  ;;  %v2316_v26 = vld [vmem:[#allocation2] sm:$0xf] }
 0x50f   :  { %3019 = vst [vmem:[#allocation2 + $0x8] sm:$0xff] %v3012_v22   ;;  %v2272_v27 = vsel %vm552_vm6, %v2269_v9, %v2271_v23  ;;  %v2895_v28 = vcombine.low %v2316_v26, %v2317_v25  ;;  %v2322_v31 = vld [vmem:[#allocation2] sm:$0xe] }
 0x510   :  { %v2279_v29 = vsel %vm568_vm7, %v2272_v27, 0.0  ;;  %v2899_v35 = vcombine.low %v2322_v31, %v2317_v25 }
 0x511   :  { %v2284_v30 = vmax.f32 %v2279_v29, 0.0  ;;  %v2345_v32 = vshll.u32 %v2895_v28, 16  ;;  %v2343_v39 = vshrl.u32 %v2895_v28, 16 }
 0x512   :  { %v2371_v37 = vrot.slane %v2899_v35, 1 }
 0x513   :  { %v2289_v7 = vsel %vm3792_vm1, %v2284_v30, 0.0  ;;  %v2347_v36 = vrot.slane %v2345_v32, 1 }
 0x514   :  { %v2953_v34 = vpack.c.bf16 %v2289_v7, %v2289_v7 }
 0x515   :  { %v2348_v17 = vor.u32 %v2347_v36, %v2343_v39 }
 0x516   :  { %2315 = vst [vmem:[#allocation2 + $0x10] sm:$0x3] %v2953_v34  ;;  %v3642_v20 = vld [vmem:[#allocation2 + $0x8] sm:$0xff]  }
 0x517   :  { %v2372_v38 = vrot.slane %v3642_v20, 1  ;;  %v2350_v41 = vshll.u32 %v3642_v20, 16  ;;  %v2354_v47 = vshrl.u32 %v3642_v20, 16 }
 0x519   :  { %v2373_v42 = vsel %vm234_vm4, %v2371_v37, %v2372_v38  ;;  %v2352_v43 = vrot.slane %v2350_v41, 1 }
 0x51a   :  { %3447 = vmatmul.mubr.bf16.vlgmr.msra.gmra.mrb[60].mxu1 %v2373_v42 }
 0x51b   :  { %v2353_v44 = vsel %vm204_vm5, %v2348_v17, %v2352_v43  ;;  %3450 = vmatprep.mubr.msk.bf16.mxu1 %vm3680_vm0, %v3679_v1  ;;  %v2356_v50 = vor.u32 %v2354_v47, %v2352_v43 }
 0x51c   :  { %2604 = vmatprep.mubr.bf16.mxu0 %v2353_v44 }
 0x51d   :  { %v3645_v24 = vld [vmem:[#allocation2 + $0x10] ss:$0 sps:$4 sm:$0x33]   ;;  %2605 = vmatmul.mubr.bf16.vlgmr.msra.gmra.mrb[60].mxu0 %v2895_v28 }
 0x51e   :  { %v2374_v46 = vrot.slane %v3645_v24, 1  ;;  %v2358_v48 = vshll.u32 %v3645_v24, 16  ;;  %v2362_v54 = vshrl.u32 %v3645_v24, 16  ;;  %v3646_v56 = vld [vmem:[#allocation2 + $0x10] ss:$0 sps:$4 sm:$0x11]  }
 0x520   :  { %v2375_v49 = vsel %vm234_vm4, %v2372_v38, %v2374_v46  ;;  %v2360_v52 = vrot.slane %v2358_v48, 1 }
 0x522   :  { %3451 = vmatmul.mubr.bf16.gmra.mrb[64].mxu1 %v2375_v49  ;;  %v2361_v53 = vsel %vm204_vm5, %v2356_v50, %v2360_v52  ;;  %v2364_v55 = vor.u32 %v2362_v54, %v2360_v52 }
 0x523   :  { %2612 = vmatprep.mubr.bf16.mxu0 %v2361_v53  ;;  %3454 = vmatprep.mubr.msk.bf16.mxu1 %vm3680_vm0, %v3679_v1 }
 0x525   :  { %2613 = vmatmul.mubr.bf16.gmra.mrb[64].mxu0 %v3642_v20 }
 0x526   :  { %2620 = vmatprep.mubr.bf16.mxu0 %v2364_v55 }
 0x52a   :  { %3455 = vmatmul.mubr.bf16.gmra.mrb[68].mxu1 %v2374_v46 }
 0x52d   :  { %2621 = vmatmul.mubr.bf16.gmra.mrb[68].mxu0 %v3646_v56 }
 0x5ed   :  { %v2662_v57 = vpop.f32.mrb[60].mxu1 }
 0x5ee   :  { %v3448_v59 = vpop.f32.mrb[61].mxu1 }
 0x5ef   :  { %v2665_v33 = vpop.f32.mrb[62].mxu1 }
 0x5f0   :  { %v3261_v61 = vpop.f32.mrb[60].mxu0  ;;  %v3449_v62 = vpop.f32.mrb[63].mxu1 }
 0x5f1   :  { %v3262_v0 = vpop.f32.mrb[61].mxu0 }
 0x5f2   :  { %v3263_v2 = vadd.f32 %v3262_v0, %v3261_v61  ;;  %v3264_v40 = vpop.f32.mrb[62].mxu0 }
 0x5f3   :  { %v3265_v3 = vpop.f32.mrb[63].mxu0 }
 0x5f4   :  { %v2663_v5 = vadd.f32 %v3263_v2, %v2662_v57  ;;  %v3266_v6 = vadd.f32 %v3265_v3, %v3264_v40 }
 0x5f5   :  { %v2670_v9 = vpop.f32.mrb[64].mxu1 }
 0x5f6   :  { %v2689_v10 = vrot.slane %v2663_v5, 7  ;;  %v2666_v1 = vadd.f32 %v3266_v6, %v2665_v33  ;;  %v3452_v11 = vpop.f32.mrb[65].mxu1 }
 0x5f7   :  { %v2673_v12 = vpop.f32.mrb[66].mxu1 }
 0x5f8   :  { %v2703_v13 = vsel %vm552_vm6, 0.0, %v2689_v10  ;;  %v2690_v60 = vrot.slane %v2666_v1, 7  ;;  %v3267_v15 = vpop.f32.mrb[64].mxu0  ;;  %v3453_v16 = vpop.f32.mrb[67].mxu1 }
 0x5f9   :  { %v2705_v63 = vadd.f32 %v2703_v13, %v3950_v45  ;;  %v3268_v18 = vpop.f32.mrb[65].mxu0 }
 0x5fa   :  { %v2691_v19 = vsel %vm552_vm6, %v2689_v10, %v2690_v60  ;;  %v3269_v58 = vadd.f32 %v3268_v18, %v3267_v15  ;;  %v3270_v21 = vpop.f32.mrb[66].mxu0 }
 0x5fb   :  { %2710 = vst [vmem:[%s4053_s2] sm:$0xff] %v2705_v63  ;;  %v2706_v22 = vadd.f32 %v2691_v19, %v3955_v51  ;;  %v3271_v23 = vpop.f32.mrb[67].mxu0 }
 0x5fc   :  { %v2671_v25 = vadd.f32 %v3269_v58, %v2670_v9  ;;  %v3272_v26 = vadd.f32 %v3271_v23, %v3270_v21 }
 0x5fd   :  { %2711 = vst [vmem:[%s4053_s2 + $0x8] sm:$0xff] %v2706_v22  ;;  %v2678_v27 = vpop.f32.mrb[68].mxu1 }
 0x5fe   :  { %v2692_v45 = vrot.slane %v2671_v25, 7  ;;  %v2674_v28 = vadd.f32 %v3272_v26, %v2673_v12  ;;  %v3456_v29 = vpop.f32.mrb[69].mxu1 }
 0x5ff   :  { %v2681_v30 = vpop.f32.mrb[70].mxu1 }
 0x600   :  { %v2693_v31 = vsel %vm552_vm6, %v2690_v60, %v2692_v45  ;;  %v2694_v32 = vrot.slane %v2674_v28, 7  ;;  %v3273_v7 = vpop.f32.mrb[68].mxu0  ;;  %v3457_v34 = vpop.f32.mrb[71].mxu1 }
 0x601   :  { %v2707_v35 = vadd.f32 %v2693_v31, %v3964_v8  ;;  %v3274_v51 = vpop.f32.mrb[69].mxu0 }
 0x602   :  { %v2695_v20 = vsel %vm552_vm6, %v2692_v45, %v2694_v32  ;;  %v3275_v36 = vadd.f32 %v3274_v51, %v3273_v7  ;;  %v3276_v37 = vpop.f32.mrb[70].mxu0 }
 0x603   :  { %2712 = vst [vmem:[%s4053_s2 + $0x10] sm:$0xff] %v2707_v35  ;;  %v2708_v38 = vadd.f32 %v2695_v20, %v3969_v14  ;;  %v3277_v39 = vpop.f32.mrb[71].mxu0 }
 0x604   :  { %v2679_v41 = vadd.f32 %v3275_v36, %v2678_v27 }
 0x605   :  { %2713 = vst [vmem:[%s4053_s2 + $0x18] sm:$0xff] %v2708_v38 }
 0x606   :  { %v2696_v42 = vrot.slane %v2679_v41, 7 }
 0x608   :  { %v2697_v8 = vsel %vm552_vm6, %v2694_v32, %v2696_v42 }
 0x609   :  { %v2704_v17 = vsel %vm568_vm7, %v2697_v8, 0.0 }
 0x60a   :  { %v2709_v43 = vadd.f32 %v2704_v17, %v3979_v4 }
 0x60c   :  { %2714 = vst [vmem:[%s4053_s2 + $0x20] sm:$0xf] %v2709_v43 }
 0x60d   :  { %2719 = vsyncpa [#allocation4], 1 }

</bundles_post_ra>
